<compile_context>
chip_gen: v6e
topology: v6e:2x2x1
jax: 0.10.0
libtpu: 0.0.40
codegen_flags: <defaults>
</compile_context>

<pallas_src>
import functools

import jax
import jax.numpy as jnp
from jax.experimental import pallas as pl
from jax.experimental.pallas import tpu as pltpu


# ----------------------------------------------------------------------------
# Fused kernel: encode -> streaming top-k threshold -> masked decode
# ----------------------------------------------------------------------------
def _fused_usae_kernel(k: int, nh: int, prune_topk: bool):
    def kernel(emb_ref, we_ref, be_ref, wd_ref, bd_ref,   # inputs
               enc_ref, recon_ref,                        # outputs
               slab_ref, run_ref, thr_ref, acc_ref):      # VMEM scratch
        j = pl.program_id(1)

        # ------------------------- encode phase (j < nh) --------------------
        @pl.when(j < nh)
        def _encode():
            @pl.when(j == 0)
            def _():
                run_ref[...] = jnp.full(run_ref.shape, -jnp.inf, run_ref.dtype)

            enc = (
                jnp.dot(emb_ref[...], we_ref[...],
                        preferred_element_type=jnp.float32)
                + be_ref[...].astype(jnp.float32)
            )
            enc_ref[...] = enc.astype(enc_ref.dtype)
            slab_ref[j] = enc                 # keep resident for decode phase

            work0 = jnp.abs(enc)              # (tb, th)

            def merge():
                # Unrolled iterative arg-max merge of this tile's |enc| with
                # the per-row running top-k (k is small & static).
                neg_inf = jnp.float32(-jnp.inf)
                work = work0
                runv = run_ref[...]                               # (tb, k)
                col = jax.lax.broadcasted_iota(jnp.int32, runv.shape, 1)
                new_run = jnp.full(runv.shape, -jnp.inf, jnp.float32)
                for t in range(k):
                    m_work = jnp.max(work, axis=-1, keepdims=True)   # (tb, 1)
                    m_run = jnp.max(runv, axis=-1, keepdims=True)    # (tb, 1)
                    take_work = m_work >= m_run
                    m = jnp.maximum(m_work, m_run)
                    new_run = jnp.where(col == t, m, new_run)
                    # Exact duplicates of the current max are all knocked out
                    # while only one slot gets the value; with exact ties the
                    # threshold may drop below the true k-th largest (decode
                    # then keeps >= k entries — measure zero for random data).
                    work = jnp.where(
                        jnp.logical_and(take_work, work == m_work),
                        neg_inf, work)
                    runv = jnp.where(
                        jnp.logical_and(jnp.logical_not(take_work),
                                        runv == m_run),
                        neg_inf, runv)
                run_ref[...] = new_run

            if prune_topk:
                # Skip the k-pass merge unless this tile can actually change
                # the running top-k (its max beats the running k-th largest).
                tile_max = jnp.max(work0)             # scalar
                cur_min = jnp.min(run_ref[...])       # scalar (-inf at j == 0)

                @pl.when(tile_max > cur_min)
                def _():
                    merge()
            else:
                merge()

            @pl.when(j == nh - 1)
            def _():
                # Per-row k-th largest |enc| over the full hidden dim.
                thr_ref[...] = jnp.min(run_ref[...], axis=-1, keepdims=True)

        # ------------------------- decode phase (j >= nh) -------------------
        @pl.when(j >= nh)
        def _decode():
            jd = j - nh

            @pl.when(jd == 0)
            def _():
                acc_ref[...] = jnp.zeros_like(acc_ref)

            e = slab_ref[jd]                                      # (tb, th) f32
            h = jnp.where(jnp.abs(e) >= thr_ref[...], e, jnp.float32(0.0))
            acc_ref[...] += jnp.dot(h.astype(wd_ref.dtype), wd_ref[...],
                                    preferred_element_type=jnp.float32)

            @pl.when(jd == nh - 1)
            def _():
                recon_ref[...] = (
                    acc_ref[...] + bd_ref[...].astype(jnp.float32)
                ).astype(recon_ref.dtype)

    return kernel


# ----------------------------------------------------------------------------
# Wrapper
# ----------------------------------------------------------------------------
def _vmem_limit_bytes(need_bytes: int) -> int:
    # Cap at 3/4 of this generation's VMEM (v7x: 64 MiB -> 48 MiB cap,
    # v5e/v6e: 128 MiB -> up to 96/100 MiB); 48 MiB fallback is safe everywhere.
    cap = 48 << 20
    try:
        cap = min(int(pltpu.get_tpu_info().vmem_capacity_bytes * 3 // 4),
                  100 << 20)
    except Exception:  # older jax: keep the universally-safe cap
        pass
    return int(max(min(need_bytes + (8 << 20), cap), 32 << 20))


@functools.partial(jax.jit, static_argnames=("k", "tb", "th", "prune_topk"))
def usae_forward(emb, w_enc_t, b_enc, w_dec_t, b_dec, *, k, tb=256, th=512,
                 prune_topk=True):
    """Returns (enc, recon), matching USAE.forward applied per row of emb.

    w_enc_t = W_enc.T with shape (D, H); w_dec_t = W_dec.T with shape (H, D).
    Weights / emb may be bf16 (dots accumulate in f32).
    """
    B, D = emb.shape
    H = w_enc_t.shape[1]

    tb = min(tb, B)
    th = min(th, H)
    # Guarantee >= 2 batch tiles when possible so the "parallel" axis can span
    # both v7x TensorCores (no-op on single-TC v5e / v6e).
    if B // tb < 2 and B >= 16 and (B // 2) % 8 == 0:
        tb = B // 2

    assert B % tb == 0 and (tb == B or tb % 8 == 0), "batch tile must be 8-aligned"
    assert H % th == 0 and (th == H or th % 128 == 0), "hidden tile must be 128-aligned"
    assert D % 128 == 0, "inp_dim must be lane-dense (multiple of 128)"
    assert 0 < k <= th, "k must be <= the hidden tile size"
    nb, nh = B // tb, H // th
    hclamp = nh - 1

    b_enc2 = b_enc.reshape(1, H)
    b_dec2 = b_dec.reshape(1, D)

    emb_b = emb.dtype.itemsize
    w_b = w_enc_t.dtype.itemsize
    need = (2 * emb_b * tb * D                        # emb (double-buffered)
            + 2 * w_b * (D * th + th)                 # W_enc.T tile + b_enc
            + 2 * w_b * (th * D + D)                  # W_dec.T tile + b_dec
            + 2 * 4 * tb * th + 2 * 4 * tb * D        # enc / recon out tiles
            + 4 * (nh * tb * th + tb * 128 + 8 * 128 + tb * D))  # scratch

    enc, recon = pl.pallas_call(
        _fused_usae_kernel(k, nh, prune_topk),
        out_shape=(
            jax.ShapeDtypeStruct((B, H), jnp.float32),
            jax.ShapeDtypeStruct((B, D), jnp.float32),
        ),
        grid_spec=pltpu.PrefetchScalarGridSpec(
            num_scalar_prefetch=0,
            grid=(nb, 2 * nh),                        # batch outer, phases inner
            in_specs=[
                # emb: resident across all phases for this batch tile.
                pl.BlockSpec((tb, D), lambda i, j: (i, 0)),
                # W_enc.T / b_enc: advance during encode, hold last tile after
                # (same block index -> no re-DMA during the decode phase).
                pl.BlockSpec((D, th), lambda i, j: (0, jnp.minimum(j, hclamp))),
                pl.BlockSpec((1, th), lambda i, j: (0, jnp.minimum(j, hclamp))),
                # W_dec.T: holds tile 0 during encode (free prefetch), then
                # advances during decode.
                pl.BlockSpec((th, D), lambda i, j: (jnp.maximum(j - nh, 0), 0)),
                pl.BlockSpec((1, D), lambda i, j: (0, 0)),
            ],
            out_specs=(
                # enc: one lane-dense tile per encode step; index is clamped so
                # nothing is re-written during the decode phase.
                pl.BlockSpec((tb, th), lambda i, j: (i, jnp.minimum(j, hclamp))),
                # recon: resident accumulator, written once per batch tile.
                pl.BlockSpec((tb, D), lambda i, j: (i, 0)),
            ),
            scratch_shapes=[
                pltpu.VMEM((nh, tb, th), jnp.float32),   # resident enc slab
                pltpu.VMEM((tb, k), jnp.float32),        # running top-k |enc|
                pltpu.VMEM((tb, 1), jnp.float32),        # per-row threshold
                pltpu.VMEM((tb, D), jnp.float32),        # recon accumulator
            ],
        ),
        compiler_params=pltpu.CompilerParams(
            dimension_semantics=("parallel", "arbitrary"),
            vmem_limit_bytes=_vmem_limit_bytes(need),
        ),
        cost_estimate=pl.CostEstimate(
            flops=int(4 * B * D * H),
            transcendentals=0,
            bytes_accessed=int(emb_b * B * D
                               + w_b * nb * 2 * D * H   # weights re-read per batch tile
                               + w_b * (H + D)
                               + 4 * (B * H + B * D)),
        ),
    )(emb, w_enc_t, b_enc2, w_dec_t, b_dec2)

    return enc, recon


# ----------------------------------------------------------------------------
# Pure-JAX references
# ----------------------------------------------------------------------------
def usae_reference(emb, w_enc_t, b_enc, w_dec_t, b_dec, k):
    hp = jax.lax.Precision.HIGHEST
    enc = jnp.dot(emb, w_enc_t, precision=hp) + b_enc
    _, idx = jax.lax.top_k(jnp.abs(enc), k)                         # (B, k)
    mask = jnp.sum(jax.nn.one_hot(idx, enc.shape[-1]), axis=1) > 0
    h = jnp.where(mask, enc, 0.0)
    recon = jnp.dot(h, w_dec_t, precision=hp) + b_dec
    return enc, recon


def decode_reference(enc, w_dec_t, b_dec, k):
    """Top-k mask + decode applied to a given enc (isolates decode logic)."""
    hp = jax.lax.Precision.HIGHEST
    _, idx = jax.lax.top_k(jnp.abs(enc), k)
    mask = jnp.sum(jax.nn.one_hot(idx, enc.shape[-1]), axis=1) > 0
    h = jnp.where(mask, enc, 0.0)
    return jnp.dot(h, w_dec_t, precision=hp) + b_dec


if __name__ == "__main__":
    B, INP_DIM, HIDDEN_DIM, K = 16, 256, 1024, 8

    key = jax.random.PRNGKey(0)
    k_emb, k_we, k_be, k_wd, k_bd = jax.random.split(key, 5)

    emb = jax.random.normal(k_emb, (B, INP_DIM), dtype=jnp.float32)
    bound_e = 1.0 / jnp.sqrt(jnp.float32(INP_DIM))
    bound_d = 1.0 / jnp.sqrt(jnp.float32(HIDDEN_DIM))
    w_enc_t = jax.random.uniform(k_we, (INP_DIM, HIDDEN_DIM), jnp.float32,
                                 -bound_e, bound_e)                  # = W_enc.T
    b_enc = jax.random.uniform(k_be, (HIDDEN_DIM,), jnp.float32, -bound_e, bound_e)
    w_dec_t = jax.random.uniform(k_wd, (HIDDEN_DIM, INP_DIM), jnp.float32,
                                 -bound_d, bound_d)                  # = W_dec.T
    b_dec = jax.random.uniform(k_bd, (INP_DIM,), jnp.float32, -bound_d, bound_d)

    # Small tiles to exercise the (batch x phase) grid at demo size:
    # grid = (16/8, 2*1024/256) = (2, 8).  Production should use tb>=128/256.
    def run(prune):
        out = usae_forward(emb, w_enc_t, b_enc, w_dec_t, b_dec, k=K,
                           tb=8, th=256, prune_topk=prune)
        jax.block_until_ready(out)
        return out

    try:
        enc, recon = run(True)
    except Exception:
        # Safety net: if the data-dependent merge-skip fails to lower on this
        # jax/libtpu version, fall back to the always-merge variant.
        enc, recon = run(False)

    assert enc.shape == (B, HIDDEN_DIM) and recon.shape == (B, INP_DIM)

    enc_ref, recon_ref = usae_reference(emb, w_enc_t, b_enc, w_dec_t, b_dec, K)
    # enc: tolerance is agnostic to the MXU's f32 matmul pass count; genuine
    # bugs (wrong tile / bias / indexing) produce O(0.5) errors here.
    assert jnp.allclose(enc, enc_ref, atol=3e-2, rtol=1e-3), "enc mismatch"
    # Decode check against the kernel's own enc isolates the top-k threshold +
    # masked-decode logic from encode matmul precision (a selection bug shows
    # up as O(3e-2) per-element differences).
    recon_chk = decode_reference(enc, w_dec_t, b_dec, K)
    assert jnp.allclose(recon, recon_chk, atol=5e-3, rtol=1e-3), \
        "recon mismatch vs decode of kernel enc"
    # End-to-end sanity vs. the pure f32 reference.
    assert jnp.allclose(recon, recon_ref, atol=3e-2, rtol=1e-3), "recon mismatch"

    print("KERNEL_OK")
</pallas_src>

<mosaic_0001>
module attributes {stable_mosaic.version = 11 : i64} {
  func.func @kernel(%arg0: i32, %arg1: i32, %arg2: memref<8x256xf32, #tpu.memory_space<vmem>>, %arg3: memref<256x256xf32, #tpu.memory_space<vmem>>, %arg4: memref<1x256xf32, #tpu.memory_space<vmem>>, %arg5: memref<256x256xf32, #tpu.memory_space<vmem>>, %arg6: memref<1x256xf32, #tpu.memory_space<vmem>>, %arg7: memref<8x256xf32, #tpu.memory_space<vmem>>, %arg8: memref<8x256xf32, #tpu.memory_space<vmem>>, %arg9: memref<4x8x256xf32, #tpu.memory_space<vmem>>, %arg10: memref<8x8xf32, #tpu.memory_space<vmem>>, %arg11: memref<8x1xf32, #tpu.memory_space<vmem>>, %arg12: memref<8x256xf32, #tpu.memory_space<vmem>>) attributes {dimension_semantics = [#tpu.dimension_semantics<parallel>, #tpu.dimension_semantics<arbitrary>], iteration_bounds = array<i64: 2, 8>, scalar_prefetch = 0 : i64, scratch_operands = 4 : i64, tpu.core_type = #tpu.core_type<tc>, window_params = [{transform_indices = @transform_0, window_bounds = array<i64: 8, 256>}, {transform_indices = @transform_1, window_bounds = array<i64: 256, 256>}, {transform_indices = @transform_2, window_bounds = array<i64: 1, 256>}, {transform_indices = @transform_3, window_bounds = array<i64: 256, 256>}, {pipeline_mode = #tpu.pipeline_mode<synchronous>, transform_indices = @transform_4, window_bounds = array<i64: 1, 256>}, {transform_indices = @transform_5, window_bounds = array<i64: 8, 256>}, {transform_indices = @transform_6, window_bounds = array<i64: 8, 256>}]} {
    %c4_i32 = arith.constant 4 : i32
    %0 = arith.cmpi slt, %arg1, %c4_i32 : i32
    %1 = arith.extui %0 : i1 to i32
    %c0_i32 = arith.constant 0 : i32
    %2 = arith.cmpi ne, %1, %c0_i32 : i32
    scf.if %2 {
      %c0_i32_2 = arith.constant 0 : i32
      %6 = arith.cmpi eq, %arg1, %c0_i32_2 : i32
      %7 = arith.extui %6 : i1 to i32
      %c0_i32_3 = arith.constant 0 : i32
      %8 = arith.cmpi ne, %7, %c0_i32_3 : i32
      scf.if %8 {
        %cst_19 = arith.constant 0xFF800000 : f32
        %36 = vector.broadcast %cst_19 : f32 to vector<8x8xf32>
        %c0_20 = arith.constant 0 : index
        %c0_21 = arith.constant 0 : index
        %37 = vector.load %arg10[%c0_20, %c0_21] : memref<8x8xf32, #tpu.memory_space<vmem>>, vector<8x8xf32>
        tpu.vector_store %arg10[%c0_20, %c0_21], %36 {strides = array<i32>} : memref<8x8xf32, #tpu.memory_space<vmem>>, vector<8x8xf32>,
      } else {
      }
      %c0 = arith.constant 0 : index
      %c0_4 = arith.constant 0 : index
      %9 = vector.load %arg2[%c0, %c0_4] : memref<8x256xf32, #tpu.memory_space<vmem>>, vector<8x256xf32>
      %c0_5 = arith.constant 0 : index
      %c0_6 = arith.constant 0 : index
      %10 = vector.load %arg3[%c0_5, %c0_6] : memref<256x256xf32, #tpu.memory_space<vmem>>, vector<256x256xf32>
      %cst = arith.constant dense<0.000000e+00> : vector<8x256xf32>
      %11 = tpu.matmul %9, %10, %cst {dimension_numbers = #tpu.dot_dimension_numbers<[1], [0], [0], [1], [0, 0, 1, 1], [], []>} : vector<8x256xf32>, vector<256x256xf32>, vector<8x256xf32> -> vector<8x256xf32>
      %c0_7 = arith.constant 0 : index
      %c0_8 = arith.constant 0 : index
      %12 = vector.load %arg4[%c0_7, %c0_8] : memref<1x256xf32, #tpu.memory_space<vmem>>, vector<1x256xf32>
      %13 = vector.broadcast %12 : vector<1x256xf32> to vector<8x256xf32>
      %14 = arith.addf %11, %13 : vector<8x256xf32>
      %c0_9 = arith.constant 0 : index
      %c0_10 = arith.constant 0 : index
      %15 = vector.load %arg7[%c0_9, %c0_10] : memref<8x256xf32, #tpu.memory_space<vmem>>, vector<8x256xf32>
      tpu.vector_store %arg7[%c0_9, %c0_10], %14 {strides = array<i32>} : memref<8x256xf32, #tpu.memory_space<vmem>>, vector<8x256xf32>,
      %16 = arith.index_cast %arg1 : i32 to index
      %c0_11 = arith.constant 0 : index
      %c0_12 = arith.constant 0 : index
      %17 = vector.load %arg9[%16, %c0_11, %c0_12] : memref<4x8x256xf32, #tpu.memory_space<vmem>>, vector<1x8x256xf32>
      %18 = vector.shape_cast %17 : vector<1x8x256xf32> to vector<8x256xf32>
      %19 = vector.shape_cast %14 : vector<8x256xf32> to vector<1x8x256xf32>
      tpu.vector_store %arg9[%16, %c0_11, %c0_12], %19 {strides = array<i32>} : memref<4x8x256xf32, #tpu.memory_space<vmem>>, vector<1x8x256xf32>,
      %20 = math.absf %14 : vector<8x256xf32>
      %21 = vector.shape_cast %20 : vector<8x256xf32> to vector<1x8x256xf32>
      %cst_13 = arith.constant dense<0xFF800000> : vector<1xf32>
      %22 = vector.multi_reduction <maximumf>, %21, %cst_13 [1, 2] : vector<1x8x256xf32> to vector<1xf32>
      %23 = vector.shape_cast %22 : vector<1xf32> to vector<1x1x1xf32>
      %24 = vector.extract %23[0, 0, 0] : f32 from vector<1x1x1xf32>
      %c0_14 = arith.constant 0 : index
      %c0_15 = arith.constant 0 : index
      %25 = vector.load %arg10[%c0_14, %c0_15] : memref<8x8xf32, #tpu.memory_space<vmem>>, vector<8x8xf32>
      %26 = vector.shape_cast %25 : vector<8x8xf32> to vector<1x8x8xf32>
      %cst_16 = arith.constant dense<0x7F800000> : vector<1xf32>
      %27 = vector.multi_reduction <minimumf>, %26, %cst_16 [1, 2] : vector<1x8x8xf32> to vector<1xf32>
      %28 = vector.shape_cast %27 : vector<1xf32> to vector<1x1x1xf32>
      %29 = vector.extract %28[0, 0, 0] : f32 from vector<1x1x1xf32>
      %30 = arith.cmpf ogt, %24, %29 : f32
      %31 = arith.extui %30 : i1 to i32
      %c0_i32_17 = arith.constant 0 : i32
      %32 = arith.cmpi ne, %31, %c0_i32_17 : i32
      scf.if %32 {
        %c0_19 = arith.constant 0 : index
        %c0_20 = arith.constant 0 : index
        %36 = vector.load %arg10[%c0_19, %c0_20] : memref<8x8xf32, #tpu.memory_space<vmem>>, vector<8x8xf32>
        %37 = tpu.iota {dimensions = array<i32: 1>} : vector<8x8xi32>
        %cst_21 = arith.constant 0xFF800000 : f32
        %38 = vector.broadcast %cst_21 : f32 to vector<8x8xf32>
        %cst_22 = arith.constant dense<0xFF800000> : vector<8xf32>
        %39 = vector.multi_reduction <maximumf>, %20, %cst_22 [1] : vector<8x256xf32> to vector<8xf32>
        %40 = vector.shape_cast %39 : vector<8xf32> to vector<8x1xf32>
        %cst_23 = arith.constant dense<0xFF800000> : vector<8xf32>
        %41 = vector.multi_reduction <maximumf>, %36, %cst_23 [1] : vector<8x8xf32> to vector<8xf32>
        %42 = vector.shape_cast %41 : vector<8xf32> to vector<8x1xf32>
        %43 = arith.cmpf oge, %40, %42 : vector<8x1xf32>
        %44 = arith.maximumf %40, %42 : vector<8x1xf32>
        %c0_i32_24 = arith.constant 0 : i32
        %45 = vector.broadcast %c0_i32_24 : i32 to vector<8x8xi32>
        %46 = arith.cmpi eq, %37, %45 : vector<8x8xi32>
        %47 = vector.shape_cast %44 : vector<8x1xf32> to vector<8x1xf32>
        %48 = vector.broadcast %47 : vector<8x1xf32> to vector<8x8xf32>
        %49 = arith.select %46, %48, %38 : vector<8x8xi1>, vector<8x8xf32>
        %50 = vector.broadcast %40 : vector<8x1xf32> to vector<8x256xf32>
        %51 = arith.cmpf oeq, %20, %50 : vector<8x256xf32>
        %52 = vector.broadcast %43 : vector<8x1xi1> to vector<8x256xi1>
        %53 = arith.andi %52, %51 : vector<8x256xi1>
        %cst_25 = arith.constant 0xFF800000 : f32
        %54 = vector.broadcast %cst_25 : f32 to vector<8x256xf32>
        %55 = arith.select %53, %54, %20 : vector<8x256xi1>, vector<8x256xf32>
        %cst_26 = arith.constant dense<true> : vector<8x1xi1>
        %56 = arith.xori %43, %cst_26 : vector<8x1xi1>
        %57 = vector.broadcast %42 : vector<8x1xf32> to vector<8x8xf32>
        %58 = arith.cmpf oeq, %36, %57 : vector<8x8xf32>
        %59 = vector.broadcast %56 : vector<8x1xi1> to vector<8x8xi1>
        %60 = arith.andi %59, %58 : vector<8x8xi1>
        %cst_27 = arith.constant 0xFF800000 : f32
        %61 = vector.broadcast %cst_27 : f32 to vector<8x8xf32>
        %62 = arith.select %60, %61, %36 : vector<8x8xi1>, vector<8x8xf32>
        %cst_28 = arith.constant dense<0xFF800000> : vector<8xf32>
        %63 = vector.multi_reduction <maximumf>, %55, %cst_28 [1] : vector<8x256xf32> to vector<8xf32>
        %64 = vector.shape_cast %63 : vector<8xf32> to vector<8x1xf32>
        %cst_29 = arith.constant dense<0xFF800000> : vector<8xf32>
        %65 = vector.multi_reduction <maximumf>, %62, %cst_29 [1] : vector<8x8xf32> to vector<8xf32>
        %66 = vector.shape_cast %65 : vector<8xf32> to vector<8x1xf32>
        %67 = arith.cmpf oge, %64, %66 : vector<8x1xf32>
        %68 = arith.maximumf %64, %66 : vector<8x1xf32>
        %c1_i32 = arith.constant 1 : i32
        %69 = vector.broadcast %c1_i32 : i32 to vector<8x8xi32>
        %70 = arith.cmpi eq, %37, %69 : vector<8x8xi32>
        %71 = vector.shape_cast %68 : vector<8x1xf32> to vector<8x1xf32>
        %72 = vector.broadcast %71 : vector<8x1xf32> to vector<8x8xf32>
        %73 = arith.select %70, %72, %49 : vector<8x8xi1>, vector<8x8xf32>
        %74 = vector.broadcast %64 : vector<8x1xf32> to vector<8x256xf32>
        %75 = arith.cmpf oeq, %55, %74 : vector<8x256xf32>
        %76 = vector.broadcast %67 : vector<8x1xi1> to vector<8x256xi1>
        %77 = arith.andi %76, %75 : vector<8x256xi1>
        %cst_30 = arith.constant 0xFF800000 : f32
        %78 = vector.broadcast %cst_30 : f32 to vector<8x256xf32>
        %79 = arith.select %77, %78, %55 : vector<8x256xi1>, vector<8x256xf32>
        %cst_31 = arith.constant dense<true> : vector<8x1xi1>
        %80 = arith.xori %67, %cst_31 : vector<8x1xi1>
        %81 = vector.broadcast %66 : vector<8x1xf32> to vector<8x8xf32>
        %82 = arith.cmpf oeq, %62, %81 : vector<8x8xf32>
        %83 = vector.broadcast %80 : vector<8x1xi1> to vector<8x8xi1>
        %84 = arith.andi %83, %82 : vector<8x8xi1>
        %cst_32 = arith.constant 0xFF800000 : f32
        %85 = vector.broadcast %cst_32 : f32 to vector<8x8xf32>
        %86 = arith.select %84, %85, %62 : vector<8x8xi1>, vector<8x8xf32>
        %cst_33 = arith.constant dense<0xFF800000> : vector<8xf32>
        %87 = vector.multi_reduction <maximumf>, %79, %cst_33 [1] : vector<8x256xf32> to vector<8xf32>
        %88 = vector.shape_cast %87 : vector<8xf32> to vector<8x1xf32>
        %cst_34 = arith.constant dense<0xFF800000> : vector<8xf32>
        %89 = vector.multi_reduction <maximumf>, %86, %cst_34 [1] : vector<8x8xf32> to vector<8xf32>
        %90 = vector.shape_cast %89 : vector<8xf32> to vector<8x1xf32>
        %91 = arith.cmpf oge, %88, %90 : vector<8x1xf32>
        %92 = arith.maximumf %88, %90 : vector<8x1xf32>
        %c2_i32 = arith.constant 2 : i32
        %93 = vector.broadcast %c2_i32 : i32 to vector<8x8xi32>
        %94 = arith.cmpi eq, %37, %93 : vector<8x8xi32>
        %95 = vector.shape_cast %92 : vector<8x1xf32> to vector<8x1xf32>
        %96 = vector.broadcast %95 : vector<8x1xf32> to vector<8x8xf32>
        %97 = arith.select %94, %96, %73 : vector<8x8xi1>, vector<8x8xf32>
        %98 = vector.broadcast %88 : vector<8x1xf32> to vector<8x256xf32>
        %99 = arith.cmpf oeq, %79, %98 : vector<8x256xf32>
        %100 = vector.broadcast %91 : vector<8x1xi1> to vector<8x256xi1>
        %101 = arith.andi %100, %99 : vector<8x256xi1>
        %cst_35 = arith.constant 0xFF800000 : f32
        %102 = vector.broadcast %cst_35 : f32 to vector<8x256xf32>
        %103 = arith.select %101, %102, %79 : vector<8x256xi1>, vector<8x256xf32>
        %cst_36 = arith.constant dense<true> : vector<8x1xi1>
        %104 = arith.xori %91, %cst_36 : vector<8x1xi1>
        %105 = vector.broadcast %90 : vector<8x1xf32> to vector<8x8xf32>
        %106 = arith.cmpf oeq, %86, %105 : vector<8x8xf32>
        %107 = vector.broadcast %104 : vector<8x1xi1> to vector<8x8xi1>
        %108 = arith.andi %107, %106 : vector<8x8xi1>
        %cst_37 = arith.constant 0xFF800000 : f32
        %109 = vector.broadcast %cst_37 : f32 to vector<8x8xf32>
        %110 = arith.select %108, %109, %86 : vector<8x8xi1>, vector<8x8xf32>
        %cst_38 = arith.constant dense<0xFF800000> : vector<8xf32>
        %111 = vector.multi_reduction <maximumf>, %103, %cst_38 [1] : vector<8x256xf32> to vector<8xf32>
        %112 = vector.shape_cast %111 : vector<8xf32> to vector<8x1xf32>
        %cst_39 = arith.constant dense<0xFF800000> : vector<8xf32>
        %113 = vector.multi_reduction <maximumf>, %110, %cst_39 [1] : vector<8x8xf32> to vector<8xf32>
        %114 = vector.shape_cast %113 : vector<8xf32> to vector<8x1xf32>
        %115 = arith.cmpf oge, %112, %114 : vector<8x1xf32>
        %116 = arith.maximumf %112, %114 : vector<8x1xf32>
        %c3_i32_40 = arith.constant 3 : i32
        %117 = vector.broadcast %c3_i32_40 : i32 to vector<8x8xi32>
        %118 = arith.cmpi eq, %37, %117 : vector<8x8xi32>
        %119 = vector.shape_cast %116 : vector<8x1xf32> to vector<8x1xf32>
        %120 = vector.broadcast %119 : vector<8x1xf32> to vector<8x8xf32>
        %121 = arith.select %118, %120, %97 : vector<8x8xi1>, vector<8x8xf32>
        %122 = vector.broadcast %112 : vector<8x1xf32> to vector<8x256xf32>
        %123 = arith.cmpf oeq, %103, %122 : vector<8x256xf32>
        %124 = vector.broadcast %115 : vector<8x1xi1> to vector<8x256xi1>
        %125 = arith.andi %124, %123 : vector<8x256xi1>
        %cst_41 = arith.constant 0xFF800000 : f32
        %126 = vector.broadcast %cst_41 : f32 to vector<8x256xf32>
        %127 = arith.select %125, %126, %103 : vector<8x256xi1>, vector<8x256xf32>
        %cst_42 = arith.constant dense<true> : vector<8x1xi1>
        %128 = arith.xori %115, %cst_42 : vector<8x1xi1>
        %129 = vector.broadcast %114 : vector<8x1xf32> to vector<8x8xf32>
        %130 = arith.cmpf oeq, %110, %129 : vector<8x8xf32>
        %131 = vector.broadcast %128 : vector<8x1xi1> to vector<8x8xi1>
        %132 = arith.andi %131, %130 : vector<8x8xi1>
        %cst_43 = arith.constant 0xFF800000 : f32
        %133 = vector.broadcast %cst_43 : f32 to vector<8x8xf32>
        %134 = arith.select %132, %133, %110 : vector<8x8xi1>, vector<8x8xf32>
        %cst_44 = arith.constant dense<0xFF800000> : vector<8xf32>
        %135 = vector.multi_reduction <maximumf>, %127, %cst_44 [1] : vector<8x256xf32> to vector<8xf32>
        %136 = vector.shape_cast %135 : vector<8xf32> to vector<8x1xf32>
        %cst_45 = arith.constant dense<0xFF800000> : vector<8xf32>
        %137 = vector.multi_reduction <maximumf>, %134, %cst_45 [1] : vector<8x8xf32> to vector<8xf32>
        %138 = vector.shape_cast %137 : vector<8xf32> to vector<8x1xf32>
        %139 = arith.cmpf oge, %136, %138 : vector<8x1xf32>
        %140 = arith.maximumf %136, %138 : vector<8x1xf32>
        %c4_i32_46 = arith.constant 4 : i32
        %141 = vector.broadcast %c4_i32_46 : i32 to vector<8x8xi32>
        %142 = arith.cmpi eq, %37, %141 : vector<8x8xi32>
        %143 = vector.shape_cast %140 : vector<8x1xf32> to vector<8x1xf32>
        %144 = vector.broadcast %143 : vector<8x1xf32> to vector<8x8xf32>
        %145 = arith.select %142, %144, %121 : vector<8x8xi1>, vector<8x8xf32>
        %146 = vector.broadcast %136 : vector<8x1xf32> to vector<8x256xf32>
        %147 = arith.cmpf oeq, %127, %146 : vector<8x256xf32>
        %148 = vector.broadcast %139 : vector<8x1xi1> to vector<8x256xi1>
        %149 = arith.andi %148, %147 : vector<8x256xi1>
        %cst_47 = arith.constant 0xFF800000 : f32
        %150 = vector.broadcast %cst_47 : f32 to vector<8x256xf32>
        %151 = arith.select %149, %150, %127 : vector<8x256xi1>, vector<8x256xf32>
        %cst_48 = arith.constant dense<true> : vector<8x1xi1>
        %152 = arith.xori %139, %cst_48 : vector<8x1xi1>
        %153 = vector.broadcast %138 : vector<8x1xf32> to vector<8x8xf32>
        %154 = arith.cmpf oeq, %134, %153 : vector<8x8xf32>
        %155 = vector.broadcast %152 : vector<8x1xi1> to vector<8x8xi1>
        %156 = arith.andi %155, %154 : vector<8x8xi1>
        %cst_49 = arith.constant 0xFF800000 : f32
        %157 = vector.broadcast %cst_49 : f32 to vector<8x8xf32>
        %158 = arith.select %156, %157, %134 : vector<8x8xi1>, vector<8x8xf32>
        %cst_50 = arith.constant dense<0xFF800000> : vector<8xf32>
        %159 = vector.multi_reduction <maximumf>, %151, %cst_50 [1] : vector<8x256xf32> to vector<8xf32>
        %160 = vector.shape_cast %159 : vector<8xf32> to vector<8x1xf32>
        %cst_51 = arith.constant dense<0xFF800000> : vector<8xf32>
        %161 = vector.multi_reduction <maximumf>, %158, %cst_51 [1] : vector<8x8xf32> to vector<8xf32>
        %162 = vector.shape_cast %161 : vector<8xf32> to vector<8x1xf32>
        %163 = arith.cmpf oge, %160, %162 : vector<8x1xf32>
        %164 = arith.maximumf %160, %162 : vector<8x1xf32>
        %c5_i32 = arith.constant 5 : i32
        %165 = vector.broadcast %c5_i32 : i32 to vector<8x8xi32>
        %166 = arith.cmpi eq, %37, %165 : vector<8x8xi32>
        %167 = vector.shape_cast %164 : vector<8x1xf32> to vector<8x1xf32>
        %168 = vector.broadcast %167 : vector<8x1xf32> to vector<8x8xf32>
        %169 = arith.select %166, %168, %145 : vector<8x8xi1>, vector<8x8xf32>
        %170 = vector.broadcast %160 : vector<8x1xf32> to vector<8x256xf32>
        %171 = arith.cmpf oeq, %151, %170 : vector<8x256xf32>
        %172 = vector.broadcast %163 : vector<8x1xi1> to vector<8x256xi1>
        %173 = arith.andi %172, %171 : vector<8x256xi1>
        %cst_52 = arith.constant 0xFF800000 : f32
        %174 = vector.broadcast %cst_52 : f32 to vector<8x256xf32>
        %175 = arith.select %173, %174, %151 : vector<8x256xi1>, vector<8x256xf32>
        %cst_53 = arith.constant dense<true> : vector<8x1xi1>
        %176 = arith.xori %163, %cst_53 : vector<8x1xi1>
        %177 = vector.broadcast %162 : vector<8x1xf32> to vector<8x8xf32>
        %178 = arith.cmpf oeq, %158, %177 : vector<8x8xf32>
        %179 = vector.broadcast %176 : vector<8x1xi1> to vector<8x8xi1>
        %180 = arith.andi %179, %178 : vector<8x8xi1>
        %cst_54 = arith.constant 0xFF800000 : f32
        %181 = vector.broadcast %cst_54 : f32 to vector<8x8xf32>
        %182 = arith.select %180, %181, %158 : vector<8x8xi1>, vector<8x8xf32>
        %cst_55 = arith.constant dense<0xFF800000> : vector<8xf32>
        %183 = vector.multi_reduction <maximumf>, %175, %cst_55 [1] : vector<8x256xf32> to vector<8xf32>
        %184 = vector.shape_cast %183 : vector<8xf32> to vector<8x1xf32>
        %cst_56 = arith.constant dense<0xFF800000> : vector<8xf32>
        %185 = vector.multi_reduction <maximumf>, %182, %cst_56 [1] : vector<8x8xf32> to vector<8xf32>
        %186 = vector.shape_cast %185 : vector<8xf32> to vector<8x1xf32>
        %187 = arith.cmpf oge, %184, %186 : vector<8x1xf32>
        %188 = arith.maximumf %184, %186 : vector<8x1xf32>
        %c6_i32 = arith.constant 6 : i32
        %189 = vector.broadcast %c6_i32 : i32 to vector<8x8xi32>
        %190 = arith.cmpi eq, %37, %189 : vector<8x8xi32>
        %191 = vector.shape_cast %188 : vector<8x1xf32> to vector<8x1xf32>
        %192 = vector.broadcast %191 : vector<8x1xf32> to vector<8x8xf32>
        %193 = arith.select %190, %192, %169 : vector<8x8xi1>, vector<8x8xf32>
        %194 = vector.broadcast %184 : vector<8x1xf32> to vector<8x256xf32>
        %195 = arith.cmpf oeq, %175, %194 : vector<8x256xf32>
        %196 = vector.broadcast %187 : vector<8x1xi1> to vector<8x256xi1>
        %197 = arith.andi %196, %195 : vector<8x256xi1>
        %cst_57 = arith.constant 0xFF800000 : f32
        %198 = vector.broadcast %cst_57 : f32 to vector<8x256xf32>
        %199 = arith.select %197, %198, %175 : vector<8x256xi1>, vector<8x256xf32>
        %cst_58 = arith.constant dense<true> : vector<8x1xi1>
        %200 = arith.xori %187, %cst_58 : vector<8x1xi1>
        %201 = vector.broadcast %186 : vector<8x1xf32> to vector<8x8xf32>
        %202 = arith.cmpf oeq, %182, %201 : vector<8x8xf32>
        %203 = vector.broadcast %200 : vector<8x1xi1> to vector<8x8xi1>
        %204 = arith.andi %203, %202 : vector<8x8xi1>
        %cst_59 = arith.constant 0xFF800000 : f32
        %205 = vector.broadcast %cst_59 : f32 to vector<8x8xf32>
        %206 = arith.select %204, %205, %182 : vector<8x8xi1>, vector<8x8xf32>
        %cst_60 = arith.constant dense<0xFF800000> : vector<8xf32>
        %207 = vector.multi_reduction <maximumf>, %199, %cst_60 [1] : vector<8x256xf32> to vector<8xf32>
        %208 = vector.shape_cast %207 : vector<8xf32> to vector<8x1xf32>
        %cst_61 = arith.constant dense<0xFF800000> : vector<8xf32>
        %209 = vector.multi_reduction <maximumf>, %206, %cst_61 [1] : vector<8x8xf32> to vector<8xf32>
        %210 = vector.shape_cast %209 : vector<8xf32> to vector<8x1xf32>
        %211 = arith.maximumf %208, %210 : vector<8x1xf32>
        %c7_i32 = arith.constant 7 : i32
        %212 = vector.broadcast %c7_i32 : i32 to vector<8x8xi32>
        %213 = arith.cmpi eq, %37, %212 : vector<8x8xi32>
        %214 = vector.shape_cast %211 : vector<8x1xf32> to vector<8x1xf32>
        %215 = vector.broadcast %214 : vector<8x1xf32> to vector<8x8xf32>
        %216 = arith.select %213, %215, %193 : vector<8x8xi1>, vector<8x8xf32>
        %c0_62 = arith.constant 0 : index
        %c0_63 = arith.constant 0 : index
        %217 = vector.load %arg10[%c0_62, %c0_63] : memref<8x8xf32, #tpu.memory_space<vmem>>, vector<8x8xf32>
        tpu.vector_store %arg10[%c0_62, %c0_63], %216 {strides = array<i32>} : memref<8x8xf32, #tpu.memory_space<vmem>>, vector<8x8xf32>,
      } else {
      }
      %c3_i32 = arith.constant 3 : i32
      %33 = arith.cmpi eq, %arg1, %c3_i32 : i32
      %34 = arith.extui %33 : i1 to i32
      %c0_i32_18 = arith.constant 0 : i32
      %35 = arith.cmpi ne, %34, %c0_i32_18 : i32
      scf.if %35 {
        %c0_19 = arith.constant 0 : index
        %c0_20 = arith.constant 0 : index
        %36 = vector.load %arg10[%c0_19, %c0_20] : memref<8x8xf32, #tpu.memory_space<vmem>>, vector<8x8xf32>
        %cst_21 = arith.constant dense<0x7F800000> : vector<8xf32>
        %37 = vector.multi_reduction <minimumf>, %36, %cst_21 [1] : vector<8x8xf32> to vector<8xf32>
        %38 = vector.shape_cast %37 : vector<8xf32> to vector<8x1xf32>
        %c0_22 = arith.constant 0 : index
        %c0_23 = arith.constant 0 : index
        %39 = vector.load %arg11[%c0_22, %c0_23] : memref<8x1xf32, #tpu.memory_space<vmem>>, vector<8x1xf32>
        tpu.vector_store %arg11[%c0_22, %c0_23], %38 {strides = array<i32>} : memref<8x1xf32, #tpu.memory_space<vmem>>, vector<8x1xf32>,
      } else {
      }
    } else {
    }
    %c4_i32_0 = arith.constant 4 : i32
    %3 = arith.cmpi sge, %arg1, %c4_i32_0 : i32
    %4 = arith.extui %3 : i1 to i32
    %c0_i32_1 = arith.constant 0 : i32
    %5 = arith.cmpi ne, %4, %c0_i32_1 : i32
    scf.if %5 {
      %c4_i32_2 = arith.constant 4 : i32
      %6 = arith.subi %arg1, %c4_i32_2 : i32
      %c0_i32_3 = arith.constant 0 : i32
      %7 = arith.cmpi eq, %6, %c0_i32_3 : i32
      %8 = arith.extui %7 : i1 to i32
      %c0_i32_4 = arith.constant 0 : i32
      %9 = arith.cmpi ne, %8, %c0_i32_4 : i32
      scf.if %9 {
        %cst_16 = arith.constant 0.000000e+00 : f32
        %27 = vector.broadcast %cst_16 : f32 to vector<8x256xf32>
        %c0_17 = arith.constant 0 : index
        %c0_18 = arith.constant 0 : index
        %28 = vector.load %arg12[%c0_17, %c0_18] : memref<8x256xf32, #tpu.memory_space<vmem>>, vector<8x256xf32>
        tpu.vector_store %arg12[%c0_17, %c0_18], %27 {strides = array<i32>} : memref<8x256xf32, #tpu.memory_space<vmem>>, vector<8x256xf32>,
      } else {
      }
      %10 = arith.index_cast %6 : i32 to index
      %c0 = arith.constant 0 : index
      %c0_5 = arith.constant 0 : index
      %11 = vector.load %arg9[%10, %c0, %c0_5] : memref<4x8x256xf32, #tpu.memory_space<vmem>>, vector<1x8x256xf32>
      %12 = vector.shape_cast %11 : vector<1x8x256xf32> to vector<8x256xf32>
      %13 = math.absf %12 : vector<8x256xf32>
      %c0_6 = arith.constant 0 : index
      %c0_7 = arith.constant 0 : index
      %14 = vector.load %arg11[%c0_6, %c0_7] : memref<8x1xf32, #tpu.memory_space<vmem>>, vector<8x1xf32>
      %15 = vector.broadcast %14 : vector<8x1xf32> to vector<8x256xf32>
      %16 = arith.cmpf oge, %13, %15 : vector<8x256xf32>
      %cst = arith.constant 0.000000e+00 : f32
      %17 = vector.broadcast %cst : f32 to vector<8x256xf32>
      %18 = arith.select %16, %12, %17 : vector<8x256xi1>, vector<8x256xf32>
      %c0_8 = arith.constant 0 : index
      %c0_9 = arith.constant 0 : index
      %19 = vector.load %arg12[%c0_8, %c0_9] : memref<8x256xf32, #tpu.memory_space<vmem>>, vector<8x256xf32>
      %c0_10 = arith.constant 0 : index
      %c0_11 = arith.constant 0 : index
      %20 = vector.load %arg5[%c0_10, %c0_11] : memref<256x256xf32, #tpu.memory_space<vmem>>, vector<256x256xf32>
      %cst_12 = arith.constant dense<0.000000e+00> : vector<8x256xf32>
      %21 = tpu.matmul %18, %20, %cst_12 {dimension_numbers = #tpu.dot_dimension_numbers<[1], [0], [0], [1], [0, 0, 1, 1], [], []>} : vector<8x256xf32>, vector<256x256xf32>, vector<8x256xf32> -> vector<8x256xf32>
      %22 = arith.addf %19, %21 : vector<8x256xf32>
      %c0_13 = arith.constant 0 : index
      %c0_14 = arith.constant 0 : index
      %23 = vector.load %arg12[%c0_13, %c0_14] : memref<8x256xf32, #tpu.memory_space<vmem>>, vector<8x256xf32>
      tpu.vector_store %arg12[%c0_13, %c0_14], %22 {strides = array<i32>} : memref<8x256xf32, #tpu.memory_space<vmem>>, vector<8x256xf32>,
      %c3_i32 = arith.constant 3 : i32
      %24 = arith.cmpi eq, %6, %c3_i32 : i32
      %25 = arith.extui %24 : i1 to i32
      %c0_i32_15 = arith.constant 0 : i32
      %26 = arith.cmpi ne, %25, %c0_i32_15 : i32
      scf.if %26 {
        %c0_16 = arith.constant 0 : index
        %c0_17 = arith.constant 0 : index
        %27 = vector.load %arg12[%c0_16, %c0_17] : memref<8x256xf32, #tpu.memory_space<vmem>>, vector<8x256xf32>
        %c0_18 = arith.constant 0 : index
        %c0_19 = arith.constant 0 : index
        %28 = vector.load %arg6[%c0_18, %c0_19] : memref<1x256xf32, #tpu.memory_space<vmem>>, vector<1x256xf32>
        %29 = vector.broadcast %28 : vector<1x256xf32> to vector<8x256xf32>
        %30 = arith.addf %27, %29 : vector<8x256xf32>
        %c0_20 = arith.constant 0 : index
        %c0_21 = arith.constant 0 : index
        %31 = vector.load %arg8[%c0_20, %c0_21] : memref<8x256xf32, #tpu.memory_space<vmem>>, vector<8x256xf32>
        tpu.vector_store %arg8[%c0_20, %c0_21], %30 {strides = array<i32>} : memref<8x256xf32, #tpu.memory_space<vmem>>, vector<8x256xf32>,
      } else {
      }
    } else {
    }
    return
  }
  func.func @transform_0(%arg0: i32, %arg1: i32) -> (i32, i32) {
    %c0_i32 = arith.constant 0 : i32
    %c0_i32_0 = arith.constant 0 : i32
    return %arg0, %c0_i32 : i32, i32
  }
  func.func @transform_1(%arg0: i32, %arg1: i32) -> (i32, i32) {
    %c3_i32 = arith.constant 3 : i32
    %0 = arith.minsi %arg1, %c3_i32 : i32
    %c0_i32 = arith.constant 0 : i32
    %c0_i32_0 = arith.constant 0 : i32
    return %c0_i32, %0 : i32, i32
  }
  func.func @transform_2(%arg0: i32, %arg1: i32) -> (i32, i32) {
    %c3_i32 = arith.constant 3 : i32
    %0 = arith.minsi %arg1, %c3_i32 : i32
    %c0_i32 = arith.constant 0 : i32
    %c0_i32_0 = arith.constant 0 : i32
    return %c0_i32, %0 : i32, i32
  }
  func.func @transform_3(%arg0: i32, %arg1: i32) -> (i32, i32) {
    %c4_i32 = arith.constant 4 : i32
    %0 = arith.subi %arg1, %c4_i32 : i32
    %c0_i32 = arith.constant 0 : i32
    %1 = arith.maxsi %0, %c0_i32 : i32
    %c0_i32_0 = arith.constant 0 : i32
    %c0_i32_1 = arith.constant 0 : i32
    return %1, %c0_i32_0 : i32, i32
  }
  func.func @transform_4(%arg0: i32, %arg1: i32) -> (i32, i32) {
    %c0_i32 = arith.constant 0 : i32
    %c0_i32_0 = arith.constant 0 : i32
    %c0_i32_1 = arith.constant 0 : i32
    return %c0_i32, %c0_i32_0 : i32, i32
  }
  func.func @transform_5(%arg0: i32, %arg1: i32) -> (i32, i32) {
    %c3_i32 = arith.constant 3 : i32
    %0 = arith.minsi %arg1, %c3_i32 : i32
    %c0_i32 = arith.constant 0 : i32
    return %arg0, %0 : i32, i32
  }
  func.func @transform_6(%arg0: i32, %arg1: i32) -> (i32, i32) {
    %c0_i32 = arith.constant 0 : i32
    %c0_i32_0 = arith.constant 0 : i32
    return %arg0, %c0_i32 : i32, i32
  }
}

module attributes {stable_mosaic.version = 11 : i64} {
  func.func @kernel(%arg0: i32, %arg1: i32, %arg2: memref<8x256xf32, #tpu.memory_space<vmem>>, %arg3: memref<256x256xf32, #tpu.memory_space<vmem>>, %arg4: memref<1x256xf32, #tpu.memory_space<vmem>>, %arg5: memref<256x256xf32, #tpu.memory_space<vmem>>, %arg6: memref<1x256xf32, #tpu.memory_space<vmem>>, %arg7: memref<8x256xf32, #tpu.memory_space<vmem>>, %arg8: memref<8x256xf32, #tpu.memory_space<vmem>>, %arg9: memref<4x8x256xf32, #tpu.memory_space<vmem>>, %arg10: memref<8x8xf32, #tpu.memory_space<vmem>>, %arg11: memref<8x1xf32, #tpu.memory_space<vmem>>, %arg12: memref<8x256xf32, #tpu.memory_space<vmem>>) attributes {dimension_semantics = [#tpu.dimension_semantics<parallel>, #tpu.dimension_semantics<arbitrary>], iteration_bounds = array<i64: 2, 8>, scalar_prefetch = 0 : i64, scratch_operands = 4 : i64, tpu.core_type = #tpu.core_type<tc>, window_params = [{transform_indices = @transform_0, window_bounds = array<i64: 8, 256>}, {transform_indices = @transform_1, window_bounds = array<i64: 256, 256>}, {transform_indices = @transform_2, window_bounds = array<i64: 1, 256>}, {transform_indices = @transform_3, window_bounds = array<i64: 256, 256>}, {pipeline_mode = #tpu.pipeline_mode<synchronous>, transform_indices = @transform_4, window_bounds = array<i64: 1, 256>}, {transform_indices = @transform_5, window_bounds = array<i64: 8, 256>}, {transform_indices = @transform_6, window_bounds = array<i64: 8, 256>}]} {
    %c4_i32 = arith.constant 4 : i32
    %0 = arith.cmpi slt, %arg1, %c4_i32 : i32
    %1 = arith.extui %0 : i1 to i32
    %c0_i32 = arith.constant 0 : i32
    %2 = arith.cmpi ne, %1, %c0_i32 : i32
    scf.if %2 {
      %c0_i32_2 = arith.constant 0 : i32
      %6 = arith.cmpi eq, %arg1, %c0_i32_2 : i32
      %7 = arith.extui %6 : i1 to i32
      %c0_i32_3 = arith.constant 0 : i32
      %8 = arith.cmpi ne, %7, %c0_i32_3 : i32
      scf.if %8 {
        %cst_59 = arith.constant 0xFF800000 : f32
        %206 = vector.broadcast %cst_59 : f32 to vector<8x8xf32>
        %c0_60 = arith.constant 0 : index
        %c0_61 = arith.constant 0 : index
        %207 = vector.load %arg10[%c0_60, %c0_61] : memref<8x8xf32, #tpu.memory_space<vmem>>, vector<8x8xf32>
        tpu.vector_store %arg10[%c0_60, %c0_61], %206 {strides = array<i32>} : memref<8x8xf32, #tpu.memory_space<vmem>>, vector<8x8xf32>,
      } else {
      }
      %c0 = arith.constant 0 : index
      %c0_4 = arith.constant 0 : index
      %9 = vector.load %arg2[%c0, %c0_4] : memref<8x256xf32, #tpu.memory_space<vmem>>, vector<8x256xf32>
      %c0_5 = arith.constant 0 : index
      %c0_6 = arith.constant 0 : index
      %10 = vector.load %arg3[%c0_5, %c0_6] : memref<256x256xf32, #tpu.memory_space<vmem>>, vector<256x256xf32>
      %cst = arith.constant dense<0.000000e+00> : vector<8x256xf32>
      %11 = tpu.matmul %9, %10, %cst {dimension_numbers = #tpu.dot_dimension_numbers<[1], [0], [0], [1], [0, 0, 1, 1], [], []>} : vector<8x256xf32>, vector<256x256xf32>, vector<8x256xf32> -> vector<8x256xf32>
      %c0_7 = arith.constant 0 : index
      %c0_8 = arith.constant 0 : index
      %12 = vector.load %arg4[%c0_7, %c0_8] : memref<1x256xf32, #tpu.memory_space<vmem>>, vector<1x256xf32>
      %13 = vector.broadcast %12 : vector<1x256xf32> to vector<8x256xf32>
      %14 = arith.addf %11, %13 : vector<8x256xf32>
      %c0_9 = arith.constant 0 : index
      %c0_10 = arith.constant 0 : index
      %15 = vector.load %arg7[%c0_9, %c0_10] : memref<8x256xf32, #tpu.memory_space<vmem>>, vector<8x256xf32>
      tpu.vector_store %arg7[%c0_9, %c0_10], %14 {strides = array<i32>} : memref<8x256xf32, #tpu.memory_space<vmem>>, vector<8x256xf32>,
      %16 = arith.index_cast %arg1 : i32 to index
      %c0_11 = arith.constant 0 : index
      %c0_12 = arith.constant 0 : index
      %17 = vector.load %arg9[%16, %c0_11, %c0_12] : memref<4x8x256xf32, #tpu.memory_space<vmem>>, vector<1x8x256xf32>
      %18 = vector.shape_cast %17 : vector<1x8x256xf32> to vector<8x256xf32>
      %19 = vector.shape_cast %14 : vector<8x256xf32> to vector<1x8x256xf32>
      tpu.vector_store %arg9[%16, %c0_11, %c0_12], %19 {strides = array<i32>} : memref<4x8x256xf32, #tpu.memory_space<vmem>>, vector<1x8x256xf32>,
      %20 = math.absf %14 : vector<8x256xf32>
      %c0_13 = arith.constant 0 : index
      %c0_14 = arith.constant 0 : index
      %21 = vector.load %arg10[%c0_13, %c0_14] : memref<8x8xf32, #tpu.memory_space<vmem>>, vector<8x8xf32>
      %22 = tpu.iota {dimensions = array<i32: 1>} : vector<8x8xi32>
      %cst_15 = arith.constant 0xFF800000 : f32
      %23 = vector.broadcast %cst_15 : f32 to vector<8x8xf32>
      %cst_16 = arith.constant dense<0xFF800000> : vector<8xf32>
      %24 = vector.multi_reduction <maximumf>, %20, %cst_16 [1] : vector<8x256xf32> to vector<8xf32>
      %25 = vector.shape_cast %24 : vector<8xf32> to vector<8x1xf32>
      %cst_17 = arith.constant dense<0xFF800000> : vector<8xf32>
      %26 = vector.multi_reduction <maximumf>, %21, %cst_17 [1] : vector<8x8xf32> to vector<8xf32>
      %27 = vector.shape_cast %26 : vector<8xf32> to vector<8x1xf32>
      %28 = arith.cmpf oge, %25, %27 : vector<8x1xf32>
      %29 = arith.maximumf %25, %27 : vector<8x1xf32>
      %c0_i32_18 = arith.constant 0 : i32
      %30 = vector.broadcast %c0_i32_18 : i32 to vector<8x8xi32>
      %31 = arith.cmpi eq, %22, %30 : vector<8x8xi32>
      %32 = vector.shape_cast %29 : vector<8x1xf32> to vector<8x1xf32>
      %33 = vector.broadcast %32 : vector<8x1xf32> to vector<8x8xf32>
      %34 = arith.select %31, %33, %23 : vector<8x8xi1>, vector<8x8xf32>
      %35 = vector.broadcast %25 : vector<8x1xf32> to vector<8x256xf32>
      %36 = arith.cmpf oeq, %20, %35 : vector<8x256xf32>
      %37 = vector.broadcast %28 : vector<8x1xi1> to vector<8x256xi1>
      %38 = arith.andi %37, %36 : vector<8x256xi1>
      %cst_19 = arith.constant 0xFF800000 : f32
      %39 = vector.broadcast %cst_19 : f32 to vector<8x256xf32>
      %40 = arith.select %38, %39, %20 : vector<8x256xi1>, vector<8x256xf32>
      %cst_20 = arith.constant dense<true> : vector<8x1xi1>
      %41 = arith.xori %28, %cst_20 : vector<8x1xi1>
      %42 = vector.broadcast %27 : vector<8x1xf32> to vector<8x8xf32>
      %43 = arith.cmpf oeq, %21, %42 : vector<8x8xf32>
      %44 = vector.broadcast %41 : vector<8x1xi1> to vector<8x8xi1>
      %45 = arith.andi %44, %43 : vector<8x8xi1>
      %cst_21 = arith.constant 0xFF800000 : f32
      %46 = vector.broadcast %cst_21 : f32 to vector<8x8xf32>
      %47 = arith.select %45, %46, %21 : vector<8x8xi1>, vector<8x8xf32>
      %cst_22 = arith.constant dense<0xFF800000> : vector<8xf32>
      %48 = vector.multi_reduction <maximumf>, %40, %cst_22 [1] : vector<8x256xf32> to vector<8xf32>
      %49 = vector.shape_cast %48 : vector<8xf32> to vector<8x1xf32>
      %cst_23 = arith.constant dense<0xFF800000> : vector<8xf32>
      %50 = vector.multi_reduction <maximumf>, %47, %cst_23 [1] : vector<8x8xf32> to vector<8xf32>
      %51 = vector.shape_cast %50 : vector<8xf32> to vector<8x1xf32>
      %52 = arith.cmpf oge, %49, %51 : vector<8x1xf32>
      %53 = arith.maximumf %49, %51 : vector<8x1xf32>
      %c1_i32 = arith.constant 1 : i32
      %54 = vector.broadcast %c1_i32 : i32 to vector<8x8xi32>
      %55 = arith.cmpi eq, %22, %54 : vector<8x8xi32>
      %56 = vector.shape_cast %53 : vector<8x1xf32> to vector<8x1xf32>
      %57 = vector.broadcast %56 : vector<8x1xf32> to vector<8x8xf32>
      %58 = arith.select %55, %57, %34 : vector<8x8xi1>, vector<8x8xf32>
      %59 = vector.broadcast %49 : vector<8x1xf32> to vector<8x256xf32>
      %60 = arith.cmpf oeq, %40, %59 : vector<8x256xf32>
      %61 = vector.broadcast %52 : vector<8x1xi1> to vector<8x256xi1>
      %62 = arith.andi %61, %60 : vector<8x256xi1>
      %cst_24 = arith.constant 0xFF800000 : f32
      %63 = vector.broadcast %cst_24 : f32 to vector<8x256xf32>
      %64 = arith.select %62, %63, %40 : vector<8x256xi1>, vector<8x256xf32>
      %cst_25 = arith.constant dense<true> : vector<8x1xi1>
      %65 = arith.xori %52, %cst_25 : vector<8x1xi1>
      %66 = vector.broadcast %51 : vector<8x1xf32> to vector<8x8xf32>
      %67 = arith.cmpf oeq, %47, %66 : vector<8x8xf32>
      %68 = vector.broadcast %65 : vector<8x1xi1> to vector<8x8xi1>
      %69 = arith.andi %68, %67 : vector<8x8xi1>
      %cst_26 = arith.constant 0xFF800000 : f32
      %70 = vector.broadcast %cst_26 : f32 to vector<8x8xf32>
      %71 = arith.select %69, %70, %47 : vector<8x8xi1>, vector<8x8xf32>
      %cst_27 = arith.constant dense<0xFF800000> : vector<8xf32>
      %72 = vector.multi_reduction <maximumf>, %64, %cst_27 [1] : vector<8x256xf32> to vector<8xf32>
      %73 = vector.shape_cast %72 : vector<8xf32> to vector<8x1xf32>
      %cst_28 = arith.constant dense<0xFF800000> : vector<8xf32>
      %74 = vector.multi_reduction <maximumf>, %71, %cst_28 [1] : vector<8x8xf32> to vector<8xf32>
      %75 = vector.shape_cast %74 : vector<8xf32> to vector<8x1xf32>
      %76 = arith.cmpf oge, %73, %75 : vector<8x1xf32>
      %77 = arith.maximumf %73, %75 : vector<8x1xf32>
      %c2_i32 = arith.constant 2 : i32
      %78 = vector.broadcast %c2_i32 : i32 to vector<8x8xi32>
      %79 = arith.cmpi eq, %22, %78 : vector<8x8xi32>
      %80 = vector.shape_cast %77 : vector<8x1xf32> to vector<8x1xf32>
      %81 = vector.broadcast %80 : vector<8x1xf32> to vector<8x8xf32>
      %82 = arith.select %79, %81, %58 : vector<8x8xi1>, vector<8x8xf32>
      %83 = vector.broadcast %73 : vector<8x1xf32> to vector<8x256xf32>
      %84 = arith.cmpf oeq, %64, %83 : vector<8x256xf32>
      %85 = vector.broadcast %76 : vector<8x1xi1> to vector<8x256xi1>
      %86 = arith.andi %85, %84 : vector<8x256xi1>
      %cst_29 = arith.constant 0xFF800000 : f32
      %87 = vector.broadcast %cst_29 : f32 to vector<8x256xf32>
      %88 = arith.select %86, %87, %64 : vector<8x256xi1>, vector<8x256xf32>
      %cst_30 = arith.constant dense<true> : vector<8x1xi1>
      %89 = arith.xori %76, %cst_30 : vector<8x1xi1>
      %90 = vector.broadcast %75 : vector<8x1xf32> to vector<8x8xf32>
      %91 = arith.cmpf oeq, %71, %90 : vector<8x8xf32>
      %92 = vector.broadcast %89 : vector<8x1xi1> to vector<8x8xi1>
      %93 = arith.andi %92, %91 : vector<8x8xi1>
      %cst_31 = arith.constant 0xFF800000 : f32
      %94 = vector.broadcast %cst_31 : f32 to vector<8x8xf32>
      %95 = arith.select %93, %94, %71 : vector<8x8xi1>, vector<8x8xf32>
      %cst_32 = arith.constant dense<0xFF800000> : vector<8xf32>
      %96 = vector.multi_reduction <maximumf>, %88, %cst_32 [1] : vector<8x256xf32> to vector<8xf32>
      %97 = vector.shape_cast %96 : vector<8xf32> to vector<8x1xf32>
      %cst_33 = arith.constant dense<0xFF800000> : vector<8xf32>
      %98 = vector.multi_reduction <maximumf>, %95, %cst_33 [1] : vector<8x8xf32> to vector<8xf32>
      %99 = vector.shape_cast %98 : vector<8xf32> to vector<8x1xf32>
      %100 = arith.cmpf oge, %97, %99 : vector<8x1xf32>
      %101 = arith.maximumf %97, %99 : vector<8x1xf32>
      %c3_i32 = arith.constant 3 : i32
      %102 = vector.broadcast %c3_i32 : i32 to vector<8x8xi32>
      %103 = arith.cmpi eq, %22, %102 : vector<8x8xi32>
      %104 = vector.shape_cast %101 : vector<8x1xf32> to vector<8x1xf32>
      %105 = vector.broadcast %104 : vector<8x1xf32> to vector<8x8xf32>
      %106 = arith.select %103, %105, %82 : vector<8x8xi1>, vector<8x8xf32>
      %107 = vector.broadcast %97 : vector<8x1xf32> to vector<8x256xf32>
      %108 = arith.cmpf oeq, %88, %107 : vector<8x256xf32>
      %109 = vector.broadcast %100 : vector<8x1xi1> to vector<8x256xi1>
      %110 = arith.andi %109, %108 : vector<8x256xi1>
      %cst_34 = arith.constant 0xFF800000 : f32
      %111 = vector.broadcast %cst_34 : f32 to vector<8x256xf32>
      %112 = arith.select %110, %111, %88 : vector<8x256xi1>, vector<8x256xf32>
      %cst_35 = arith.constant dense<true> : vector<8x1xi1>
      %113 = arith.xori %100, %cst_35 : vector<8x1xi1>
      %114 = vector.broadcast %99 : vector<8x1xf32> to vector<8x8xf32>
      %115 = arith.cmpf oeq, %95, %114 : vector<8x8xf32>
      %116 = vector.broadcast %113 : vector<8x1xi1> to vector<8x8xi1>
      %117 = arith.andi %116, %115 : vector<8x8xi1>
      %cst_36 = arith.constant 0xFF800000 : f32
      %118 = vector.broadcast %cst_36 : f32 to vector<8x8xf32>
      %119 = arith.select %117, %118, %95 : vector<8x8xi1>, vector<8x8xf32>
      %cst_37 = arith.constant dense<0xFF800000> : vector<8xf32>
      %120 = vector.multi_reduction <maximumf>, %112, %cst_37 [1] : vector<8x256xf32> to vector<8xf32>
      %121 = vector.shape_cast %120 : vector<8xf32> to vector<8x1xf32>
      %cst_38 = arith.constant dense<0xFF800000> : vector<8xf32>
      %122 = vector.multi_reduction <maximumf>, %119, %cst_38 [1] : vector<8x8xf32> to vector<8xf32>
      %123 = vector.shape_cast %122 : vector<8xf32> to vector<8x1xf32>
      %124 = arith.cmpf oge, %121, %123 : vector<8x1xf32>
      %125 = arith.maximumf %121, %123 : vector<8x1xf32>
      %c4_i32_39 = arith.constant 4 : i32
      %126 = vector.broadcast %c4_i32_39 : i32 to vector<8x8xi32>
      %127 = arith.cmpi eq, %22, %126 : vector<8x8xi32>
      %128 = vector.shape_cast %125 : vector<8x1xf32> to vector<8x1xf32>
      %129 = vector.broadcast %128 : vector<8x1xf32> to vector<8x8xf32>
      %130 = arith.select %127, %129, %106 : vector<8x8xi1>, vector<8x8xf32>
      %131 = vector.broadcast %121 : vector<8x1xf32> to vector<8x256xf32>
      %132 = arith.cmpf oeq, %112, %131 : vector<8x256xf32>
      %133 = vector.broadcast %124 : vector<8x1xi1> to vector<8x256xi1>
      %134 = arith.andi %133, %132 : vector<8x256xi1>
      %cst_40 = arith.constant 0xFF800000 : f32
      %135 = vector.broadcast %cst_40 : f32 to vector<8x256xf32>
      %136 = arith.select %134, %135, %112 : vector<8x256xi1>, vector<8x256xf32>
      %cst_41 = arith.constant dense<true> : vector<8x1xi1>
      %137 = arith.xori %124, %cst_41 : vector<8x1xi1>
      %138 = vector.broadcast %123 : vector<8x1xf32> to vector<8x8xf32>
      %139 = arith.cmpf oeq, %119, %138 : vector<8x8xf32>
      %140 = vector.broadcast %137 : vector<8x1xi1> to vector<8x8xi1>
      %141 = arith.andi %140, %139 : vector<8x8xi1>
      %cst_42 = arith.constant 0xFF800000 : f32
      %142 = vector.broadcast %cst_42 : f32 to vector<8x8xf32>
      %143 = arith.select %141, %142, %119 : vector<8x8xi1>, vector<8x8xf32>
      %cst_43 = arith.constant dense<0xFF800000> : vector<8xf32>
      %144 = vector.multi_reduction <maximumf>, %136, %cst_43 [1] : vector<8x256xf32> to vector<8xf32>
      %145 = vector.shape_cast %144 : vector<8xf32> to vector<8x1xf32>
      %cst_44 = arith.constant dense<0xFF800000> : vector<8xf32>
      %146 = vector.multi_reduction <maximumf>, %143, %cst_44 [1] : vector<8x8xf32> to vector<8xf32>
      %147 = vector.shape_cast %146 : vector<8xf32> to vector<8x1xf32>
      %148 = arith.cmpf oge, %145, %147 : vector<8x1xf32>
      %149 = arith.maximumf %145, %147 : vector<8x1xf32>
      %c5_i32 = arith.constant 5 : i32
      %150 = vector.broadcast %c5_i32 : i32 to vector<8x8xi32>
      %151 = arith.cmpi eq, %22, %150 : vector<8x8xi32>
      %152 = vector.shape_cast %149 : vector<8x1xf32> to vector<8x1xf32>
      %153 = vector.broadcast %152 : vector<8x1xf32> to vector<8x8xf32>
      %154 = arith.select %151, %153, %130 : vector<8x8xi1>, vector<8x8xf32>
      %155 = vector.broadcast %145 : vector<8x1xf32> to vector<8x256xf32>
      %156 = arith.cmpf oeq, %136, %155 : vector<8x256xf32>
      %157 = vector.broadcast %148 : vector<8x1xi1> to vector<8x256xi1>
      %158 = arith.andi %157, %156 : vector<8x256xi1>
      %cst_45 = arith.constant 0xFF800000 : f32
      %159 = vector.broadcast %cst_45 : f32 to vector<8x256xf32>
      %160 = arith.select %158, %159, %136 : vector<8x256xi1>, vector<8x256xf32>
      %cst_46 = arith.constant dense<true> : vector<8x1xi1>
      %161 = arith.xori %148, %cst_46 : vector<8x1xi1>
      %162 = vector.broadcast %147 : vector<8x1xf32> to vector<8x8xf32>
      %163 = arith.cmpf oeq, %143, %162 : vector<8x8xf32>
      %164 = vector.broadcast %161 : vector<8x1xi1> to vector<8x8xi1>
      %165 = arith.andi %164, %163 : vector<8x8xi1>
      %cst_47 = arith.constant 0xFF800000 : f32
      %166 = vector.broadcast %cst_47 : f32 to vector<8x8xf32>
      %167 = arith.select %165, %166, %143 : vector<8x8xi1>, vector<8x8xf32>
      %cst_48 = arith.constant dense<0xFF800000> : vector<8xf32>
      %168 = vector.multi_reduction <maximumf>, %160, %cst_48 [1] : vector<8x256xf32> to vector<8xf32>
      %169 = vector.shape_cast %168 : vector<8xf32> to vector<8x1xf32>
      %cst_49 = arith.constant dense<0xFF800000> : vector<8xf32>
      %170 = vector.multi_reduction <maximumf>, %167, %cst_49 [1] : vector<8x8xf32> to vector<8xf32>
      %171 = vector.shape_cast %170 : vector<8xf32> to vector<8x1xf32>
      %172 = arith.cmpf oge, %169, %171 : vector<8x1xf32>
      %173 = arith.maximumf %169, %171 : vector<8x1xf32>
      %c6_i32 = arith.constant 6 : i32
      %174 = vector.broadcast %c6_i32 : i32 to vector<8x8xi32>
      %175 = arith.cmpi eq, %22, %174 : vector<8x8xi32>
      %176 = vector.shape_cast %173 : vector<8x1xf32> to vector<8x1xf32>
      %177 = vector.broadcast %176 : vector<8x1xf32> to vector<8x8xf32>
      %178 = arith.select %175, %177, %154 : vector<8x8xi1>, vector<8x8xf32>
      %179 = vector.broadcast %169 : vector<8x1xf32> to vector<8x256xf32>
      %180 = arith.cmpf oeq, %160, %179 : vector<8x256xf32>
      %181 = vector.broadcast %172 : vector<8x1xi1> to vector<8x256xi1>
      %182 = arith.andi %181, %180 : vector<8x256xi1>
      %cst_50 = arith.constant 0xFF800000 : f32
      %183 = vector.broadcast %cst_50 : f32 to vector<8x256xf32>
      %184 = arith.select %182, %183, %160 : vector<8x256xi1>, vector<8x256xf32>
      %cst_51 = arith.constant dense<true> : vector<8x1xi1>
      %185 = arith.xori %172, %cst_51 : vector<8x1xi1>
      %186 = vector.broadcast %171 : vector<8x1xf32> to vector<8x8xf32>
      %187 = arith.cmpf oeq, %167, %186 : vector<8x8xf32>
      %188 = vector.broadcast %185 : vector<8x1xi1> to vector<8x8xi1>
      %189 = arith.andi %188, %187 : vector<8x8xi1>
      %cst_52 = arith.constant 0xFF800000 : f32
      %190 = vector.broadcast %cst_52 : f32 to vector<8x8xf32>
      %191 = arith.select %189, %190, %167 : vector<8x8xi1>, vector<8x8xf32>
      %cst_53 = arith.constant dense<0xFF800000> : vector<8xf32>
      %192 = vector.multi_reduction <maximumf>, %184, %cst_53 [1] : vector<8x256xf32> to vector<8xf32>
      %193 = vector.shape_cast %192 : vector<8xf32> to vector<8x1xf32>
      %cst_54 = arith.constant dense<0xFF800000> : vector<8xf32>
      %194 = vector.multi_reduction <maximumf>, %191, %cst_54 [1] : vector<8x8xf32> to vector<8xf32>
      %195 = vector.shape_cast %194 : vector<8xf32> to vector<8x1xf32>
      %196 = arith.maximumf %193, %195 : vector<8x1xf32>
      %c7_i32 = arith.constant 7 : i32
      %197 = vector.broadcast %c7_i32 : i32 to vector<8x8xi32>
      %198 = arith.cmpi eq, %22, %197 : vector<8x8xi32>
      %199 = vector.shape_cast %196 : vector<8x1xf32> to vector<8x1xf32>
      %200 = vector.broadcast %199 : vector<8x1xf32> to vector<8x8xf32>
      %201 = arith.select %198, %200, %178 : vector<8x8xi1>, vector<8x8xf32>
      %c0_55 = arith.constant 0 : index
      %c0_56 = arith.constant 0 : index
      %202 = vector.load %arg10[%c0_55, %c0_56] : memref<8x8xf32, #tpu.memory_space<vmem>>, vector<8x8xf32>
      tpu.vector_store %arg10[%c0_55, %c0_56], %201 {strides = array<i32>} : memref<8x8xf32, #tpu.memory_space<vmem>>, vector<8x8xf32>,
      %c3_i32_57 = arith.constant 3 : i32
      %203 = arith.cmpi eq, %arg1, %c3_i32_57 : i32
      %204 = arith.extui %203 : i1 to i32
      %c0_i32_58 = arith.constant 0 : i32
      %205 = arith.cmpi ne, %204, %c0_i32_58 : i32
      scf.if %205 {
        %c0_59 = arith.constant 0 : index
        %c0_60 = arith.constant 0 : index
        %206 = vector.load %arg10[%c0_59, %c0_60] : memref<8x8xf32, #tpu.memory_space<vmem>>, vector<8x8xf32>
        %cst_61 = arith.constant dense<0x7F800000> : vector<8xf32>
        %207 = vector.multi_reduction <minimumf>, %206, %cst_61 [1] : vector<8x8xf32> to vector<8xf32>
        %208 = vector.shape_cast %207 : vector<8xf32> to vector<8x1xf32>
        %c0_62 = arith.constant 0 : index
        %c0_63 = arith.constant 0 : index
        %209 = vector.load %arg11[%c0_62, %c0_63] : memref<8x1xf32, #tpu.memory_space<vmem>>, vector<8x1xf32>
        tpu.vector_store %arg11[%c0_62, %c0_63], %208 {strides = array<i32>} : memref<8x1xf32, #tpu.memory_space<vmem>>, vector<8x1xf32>,
      } else {
      }
    } else {
    }
    %c4_i32_0 = arith.constant 4 : i32
    %3 = arith.cmpi sge, %arg1, %c4_i32_0 : i32
    %4 = arith.extui %3 : i1 to i32
    %c0_i32_1 = arith.constant 0 : i32
    %5 = arith.cmpi ne, %4, %c0_i32_1 : i32
    scf.if %5 {
      %c4_i32_2 = arith.constant 4 : i32
      %6 = arith.subi %arg1, %c4_i32_2 : i32
      %c0_i32_3 = arith.constant 0 : i32
      %7 = arith.cmpi eq, %6, %c0_i32_3 : i32
      %8 = arith.extui %7 : i1 to i32
      %c0_i32_4 = arith.constant 0 : i32
      %9 = arith.cmpi ne, %8, %c0_i32_4 : i32
      scf.if %9 {
        %cst_16 = arith.constant 0.000000e+00 : f32
        %27 = vector.broadcast %cst_16 : f32 to vector<8x256xf32>
        %c0_17 = arith.constant 0 : index
        %c0_18 = arith.constant 0 : index
        %28 = vector.load %arg12[%c0_17, %c0_18] : memref<8x256xf32, #tpu.memory_space<vmem>>, vector<8x256xf32>
        tpu.vector_store %arg12[%c0_17, %c0_18], %27 {strides = array<i32>} : memref<8x256xf32, #tpu.memory_space<vmem>>, vector<8x256xf32>,
      } else {
      }
      %10 = arith.index_cast %6 : i32 to index
      %c0 = arith.constant 0 : index
      %c0_5 = arith.constant 0 : index
      %11 = vector.load %arg9[%10, %c0, %c0_5] : memref<4x8x256xf32, #tpu.memory_space<vmem>>, vector<1x8x256xf32>
      %12 = vector.shape_cast %11 : vector<1x8x256xf32> to vector<8x256xf32>
      %13 = math.absf %12 : vector<8x256xf32>
      %c0_6 = arith.constant 0 : index
      %c0_7 = arith.constant 0 : index
      %14 = vector.load %arg11[%c0_6, %c0_7] : memref<8x1xf32, #tpu.memory_space<vmem>>, vector<8x1xf32>
      %15 = vector.broadcast %14 : vector<8x1xf32> to vector<8x256xf32>
      %16 = arith.cmpf oge, %13, %15 : vector<8x256xf32>
      %cst = arith.constant 0.000000e+00 : f32
      %17 = vector.broadcast %cst : f32 to vector<8x256xf32>
      %18 = arith.select %16, %12, %17 : vector<8x256xi1>, vector<8x256xf32>
      %c0_8 = arith.constant 0 : index
      %c0_9 = arith.constant 0 : index
      %19 = vector.load %arg12[%c0_8, %c0_9] : memref<8x256xf32, #tpu.memory_space<vmem>>, vector<8x256xf32>
      %c0_10 = arith.constant 0 : index
      %c0_11 = arith.constant 0 : index
      %20 = vector.load %arg5[%c0_10, %c0_11] : memref<256x256xf32, #tpu.memory_space<vmem>>, vector<256x256xf32>
      %cst_12 = arith.constant dense<0.000000e+00> : vector<8x256xf32>
      %21 = tpu.matmul %18, %20, %cst_12 {dimension_numbers = #tpu.dot_dimension_numbers<[1], [0], [0], [1], [0, 0, 1, 1], [], []>} : vector<8x256xf32>, vector<256x256xf32>, vector<8x256xf32> -> vector<8x256xf32>
      %22 = arith.addf %19, %21 : vector<8x256xf32>
      %c0_13 = arith.constant 0 : index
      %c0_14 = arith.constant 0 : index
      %23 = vector.load %arg12[%c0_13, %c0_14] : memref<8x256xf32, #tpu.memory_space<vmem>>, vector<8x256xf32>
      tpu.vector_store %arg12[%c0_13, %c0_14], %22 {strides = array<i32>} : memref<8x256xf32, #tpu.memory_space<vmem>>, vector<8x256xf32>,
      %c3_i32 = arith.constant 3 : i32
      %24 = arith.cmpi eq, %6, %c3_i32 : i32
      %25 = arith.extui %24 : i1 to i32
      %c0_i32_15 = arith.constant 0 : i32
      %26 = arith.cmpi ne, %25, %c0_i32_15 : i32
      scf.if %26 {
        %c0_16 = arith.constant 0 : index
        %c0_17 = arith.constant 0 : index
        %27 = vector.load %arg12[%c0_16, %c0_17] : memref<8x256xf32, #tpu.memory_space<vmem>>, vector<8x256xf32>
        %c0_18 = arith.constant 0 : index
        %c0_19 = arith.constant 0 : index
        %28 = vector.load %arg6[%c0_18, %c0_19] : memref<1x256xf32, #tpu.memory_space<vmem>>, vector<1x256xf32>
        %29 = vector.broadcast %28 : vector<1x256xf32> to vector<8x256xf32>
        %30 = arith.addf %27, %29 : vector<8x256xf32>
        %c0_20 = arith.constant 0 : index
        %c0_21 = arith.constant 0 : index
        %31 = vector.load %arg8[%c0_20, %c0_21] : memref<8x256xf32, #tpu.memory_space<vmem>>, vector<8x256xf32>
        tpu.vector_store %arg8[%c0_20, %c0_21], %30 {strides = array<i32>} : memref<8x256xf32, #tpu.memory_space<vmem>>, vector<8x256xf32>,
      } else {
      }
    } else {
    }
    return
  }
  func.func @transform_0(%arg0: i32, %arg1: i32) -> (i32, i32) {
    %c0_i32 = arith.constant 0 : i32
    %c0_i32_0 = arith.constant 0 : i32
    return %arg0, %c0_i32 : i32, i32
  }
  func.func @transform_1(%arg0: i32, %arg1: i32) -> (i32, i32) {
    %c3_i32 = arith.constant 3 : i32
    %0 = arith.minsi %arg1, %c3_i32 : i32
    %c0_i32 = arith.constant 0 : i32
    %c0_i32_0 = arith.constant 0 : i32
    return %c0_i32, %0 : i32, i32
  }
  func.func @transform_2(%arg0: i32, %arg1: i32) -> (i32, i32) {
    %c3_i32 = arith.constant 3 : i32
    %0 = arith.minsi %arg1, %c3_i32 : i32
    %c0_i32 = arith.constant 0 : i32
    %c0_i32_0 = arith.constant 0 : i32
    return %c0_i32, %0 : i32, i32
  }
  func.func @transform_3(%arg0: i32, %arg1: i32) -> (i32, i32) {
    %c4_i32 = arith.constant 4 : i32
    %0 = arith.subi %arg1, %c4_i32 : i32
    %c0_i32 = arith.constant 0 : i32
    %1 = arith.maxsi %0, %c0_i32 : i32
    %c0_i32_0 = arith.constant 0 : i32
    %c0_i32_1 = arith.constant 0 : i32
    return %1, %c0_i32_0 : i32, i32
  }
  func.func @transform_4(%arg0: i32, %arg1: i32) -> (i32, i32) {
    %c0_i32 = arith.constant 0 : i32
    %c0_i32_0 = arith.constant 0 : i32
    %c0_i32_1 = arith.constant 0 : i32
    return %c0_i32, %c0_i32_0 : i32, i32
  }
  func.func @transform_5(%arg0: i32, %arg1: i32) -> (i32, i32) {
    %c3_i32 = arith.constant 3 : i32
    %0 = arith.minsi %arg1, %c3_i32 : i32
    %c0_i32 = arith.constant 0 : i32
    return %arg0, %0 : i32, i32
  }
  func.func @transform_6(%arg0: i32, %arg1: i32) -> (i32, i32) {
    %c0_i32 = arith.constant 0 : i32
    %c0_i32_0 = arith.constant 0 : i32
    return %arg0, %c0_i32 : i32, i32
  }
}

</mosaic_0001>

<bundles_post_ra>
// kernel: usae_forward.1
= control target key start
LH: loop header
LB: loop body
LE: loop exit
PB: predicated region body
PF: predicated region fallthrough
CT: control target
= control target key end

     0   :  { %s2527_s0 = inlined_call_operand.hbm [shape: f32[16,256], index: 0, kind: input, shape index: {}]   ;;  %s2528_s1 = inlined_call_operand.hbm [shape: f32[256,1024], index: 1, kind: input, shape index: {}]   ;;  %s2529_s2 = inlined_call_operand.hbm [shape: f32[1,1024], index: 2, kind: input, shape index: {}]   ;;  %s2530_s3 = inlined_call_operand.hbm [shape: f32[1024,256], index: 3, kind: input, shape index: {}]   ;;  %s2531_s4 = inlined_call_operand.vmem [shape: f32[1,256], index: 4, kind: input, shape index: {}]   ;;  %s2532_s5 = inlined_call_operand.hbm [shape: f32[16,1024], index: 5, kind: output, shape index: {0}]   ;;  %s2533_s6 = inlined_call_operand.hbm [shape: f32[16,256], index: 6, kind: output, shape index: {1}]  }
   0x1   :  { %2566 = sst [smem:[#allocation42_spill]] %s2527_s0 }
   0x2   :  { %2567 = sst [smem:[#allocation43_spill]] %s2528_s1 }
   0x3   :  { %2568 = sst [smem:[#allocation44_spill]] %s2529_s2 }
   0x4   :  { %2569 = sst [smem:[#allocation45_spill]] %s2530_s3 }
   0x5   :  { %2570 = sst [smem:[#allocation46_spill]] %s2531_s4 }
   0x6   :  { %2571 = sst [smem:[#allocation47_spill]] %s2532_s5 }
   0x7   :  { %2572 = sst [smem:[#allocation48_spill]] %s2533_s6 }
   0x8   :  { %12 = vsyncpa [#allocation7], 0 }
   0x9   :  { %14 = vsyncpa [#allocation7 + $0x1], 0 }
   0xa   :  { %15 = vsyncpa [#allocation10], 0 }
   0xb   :  { %17 = vsyncpa [#allocation10 + $0x1], 0 }
   0xc   :  { %18 = vsyncpa [#allocation13], 0 }
   0xd   :  { %20 = vsyncpa [#allocation13 + $0x1], 0 }
   0xe   :  { %21 = vsyncpa [#allocation8], 0 }
   0xf   :  { %23 = vsyncpa [#allocation8 + $0x1], 0 }
  0x10   :  { %24 = vsyncpa [#allocation16], 0 }
  0x11   :  { %26 = vsyncpa [#allocation16 + $0x1], 0  ;;  %s1851_s21 = smov 0   ;;  %s1853_s22 = smov 0  }
  0x12   :  { %s1855_s23 = smov 0   ;;  %s1857_s24 = smov 0  }
  0x13   :  { %s1859_s25 = smov 0   ;;  %s1861_s26 = smov 0  }
  0x14   :  { %s1863_s27 = smov 0   ;;  %s1865_s28 = smov 0  }
  0x15   :  { %s1867_s29 = smov 0   ;;  %s1869_s30 = smov 0  }
  0x16   :  { %s1871_s7 = smov 0   ;;  %s1873_s8 = smov 0  }
  0x17   :  { %s1875_s9 = smov 0   ;;  %s1877_s10 = smov 0  }
  0x18   :  { %s1879_s11 = smov 0   ;;  %s1881_s12 = smov 0  }
  0x19   :  { %s1883_s13 = smov 0  }
  0x1a LB: > { %2573 = sst [smem:[#allocation22_spill]] %s1745_s23  ;;  %p2542_p0 = scmp.eq.s32.totalorder %s1801_s13, 0  ;;  %s1801_s13 = sphi %s1883_s13, %s32_s13   ;;  %s1797_s12 = sphi %s1881_s12, %s2657_s12   ;;  %s1793_s11 = sphi %s1879_s11, %s2656_s11   ;;  %s1789_s10 = sphi %s1877_s10, %s2666_s10   ;;  %s1785_s9 = sphi %s1875_s9, %s2654_s9   ;;  %s1781_s8 = sphi %s1873_s8, %s2653_s8   ;;  %s1777_s7 = sphi %s1871_s7, %s2652_s7   ;;  %s1773_s30 = sphi %s1869_s30, %s2665_s30   ;;  %s1769_s29 = sphi %s1867_s29, %s2664_s29   ;;  %s1765_s28 = sphi %s1865_s28, %s2663_s28   ;;  %s1761_s27 = sphi %s1863_s27, %s2662_s27   ;;  %s1757_s26 = sphi %s1861_s26, %s2661_s26   ;;  %s1753_s25 = sphi %s1859_s25, %s2660_s25   ;;  %s1749_s24 = sphi %s1857_s24, %s2649_s24   ;;  %s1745_s23 = sphi %s1855_s23, %s2648_s23   ;;  %s1741_s22 = sphi %s1853_s22, %s2659_s22   ;;  %s1737_s21 = sphi %s1851_s21, %s2658_s21  }
  0x1b   : > { %2574 = sst [smem:[#allocation23_spill]] %s1749_s24  ;;  %p74_p1 = scmp.lt.s32.totalorder %s1793_s11, 3 }
  0x1c   : > { %2575 = sst [smem:[#allocation24_spill]] %s1753_s25  ;;  %p88_p2 = scmp.ne.s32.totalorder %s1769_s29, %s1765_s28 }
  0x1d   : > { %2576 = sst [smem:[#allocation25_spill]] %s1773_s30  ;;  %p94_p3 = scmp.ne.s32.totalorder %s1765_s28, %s1761_s27 }
  0x1e   : > { %2577 = sst [smem:[#allocation26_spill]] %s1777_s7  ;;  %p90_p4 = por %p88_p2, %p2542_p0 }
  0x1f   : > { %2578 = sst [smem:[#allocation27_spill]] %s1781_s8  ;;  %p2551_p5 = scmp.lt.s32.totalorder %s1801_s13, 16 }
  0x20   : > { %2579 = sst [smem:[#allocation28_spill]] %s1785_s9  ;;  %s281_s15 = sand.u32 1, %s1801_s13  }
  0x21   : > { %2580 = sst [smem:[#allocation29_spill]] %s1789_s10  ;;  %s2538_s16 = sand.u32 1, %s1769_s29  }
  0x22   : > { %2581 = sst [smem:[#allocation30_spill]] %s1793_s11  ;;  %s1253_s17 = sshll.u32 %s2538_s16, 9 }
  0x23   : > { %2582 = sst [smem:[#allocation31_spill]] %s1797_s12  ;;  %s285_s6 = scalar_lea.vmem [#allocation9], %s1253_s17 }
  0x24   : > { %s1943_s14 = scalar_select %p74_p1, %s1793_s11, 3 }
  0x25   : > { %s2583_s1 = sld [smem:[#allocation43_spill]]  ;;  %s294_s10 = sshll.u32 %s285_s6, 4  ;;  %s295_s10 = int_to_ptr.vmem [resolvable:$true] %s294_s10 }
  0x26   : > { %s1294_s18 = sshll.u32 %s1943_s14, 8  ;;  %p1958_p6 = pnand %p2551_p5, %p90_p4 }
  0x27   : > { %p1264_p7 = scmp.ge.s32.totalorder %s1801_s13, 1  ;;  %s1963_s9 = scalar_lea.sflag [#allocation10], %s281_s15 }
  0x28   : > { %p2548_p8 = pneg %p1958_p6  ;;  %s1496_s16 = scalar_lea.vmem %s295_s10, 8192 }
  0x29   : > { %p1497_p9 = scmp.ne.s32.totalorder %s295_s10, %s1496_s16  ;;  %s1803_s6 = smov [#allocation9]  }
  0x2a   : > { %s1501_s17 = sshll.u32 %s1803_s6, 4  ;;  %s1502_s17 = int_to_ptr.vmem [resolvable:$false] %s1501_s17 }
  0x2b   : > { %s293_s5 = scalar_lea.hbm %s2583_s1, %s1294_s18  ;;  %p1499_p10 = pnand %p1497_p9, %p2548_p8 }
  0x2c   : > { %s1503_s18 = scalar_lea.vmem %s1502_s17, 16384  ;;  %p1504_p12 = scmp.lt.s32.totalorder %s295_s10, %s1502_s17 }
  0x2d   : > { %p1500_p11 = pneg %p1499_p10  ;;  %p1505_p13 = scmp.lt.s32.totalorder %s1503_s18, %s1496_s16 }
  0x2f   : > { %p1506_p1 = por %p1505_p13, %p1504_p12 }
  0x31   : > { %p1507_p2 = pnand %p1506_p1, %p1500_p11 }
  0x33   : > { %1510 = shalt.err (!%p1507_p2)
}
  0x34   : > { %s1804_s19 = smov 1024   ;;  %s2539_s15 = smov 256  }
  0x35   : > { %s2540_s16 = smov 16   ;;  %p348_p4 = scmp.lt.s32.totalorder %s1801_s13, 17 }
  0x36   : > { %1323 = dma.hbm_to_vmem [thread:$0]  (!%p1958_p6), %s293_s5, 8192, %s295_s10, %s1963_s9, %s1804_s19, %s2539_s15, %s2540_s16  }
  0x37   : > { %p1978_p9 = pnand %p1264_p7, %p348_p4  ;;  %s1983_s6 = sadd.s32 4294967295, %s1801_s13  }
  0x38   : > { %s41_s18 = sadd.s32 1, %s1793_s11  ;;  %s44_s1 = sadd.s32 1, %s1797_s12 }
  0x39   : > { %s2585_s20 = scalar_select %p1978_p9, 1, 0 }
  0x3a   : > { %p42_p10 = scmp.ge.s32.totalorder %s41_s18, 8  ;;  %s51_s5 = sadd.s32 1, %s1781_s8 }
  0x3b   : > { %2586 = sst [smem:[#allocation32_spill]] %s2585_s20  ;;  %p58_p11 = scmp.ne.s32.totalorder %s1781_s8, %s1777_s7 }
  0x3c   : > { %p2552_p7 = scmp.ne.s32.totalorder %s1777_s7, %s1773_s30  ;;  %s2668_s18 = smov (%p42_p10, %s41_s18), 0 }
  0x3d   : > { %2587 = sst [smem:[#allocation33_spill]] %s2668_s18  ;;  %s2670_s1 = smov (!%p42_p10, %s44_s1), %s1797_s12 }
  0x3e   : > { %p2001_p12 = por %p2542_p0, %p58_p11  ;;  %p2546_p13 = scmp.eq.s32.totalorder %s1983_s6, 0 }
  0x3f   : > { %p46_p1 = scmp.ge.s32.totalorder %s2670_s1, 2  ;;  %p76_p2 = scmp.lt.s32.totalorder %s2668_s18, 3 }
  0x40   : > { %p2012_p4 = por %p2546_p13, %p2552_p7  ;;  %s81_s15 = sadd.s32 1, %s1769_s29 }
  0x41   : > { %s2672_s1 = smov (%p46_p1, %s2670_s1), 0  ;;  %p2027_p10 = por %p94_p3, %p2546_p13 }
  0x42   : > { %s2589_s19 = scalar_select %p2012_p4, 1, 0 }
  0x43   : > { %2591 = sst [smem:[#allocation35_spill]] %s2672_s1  ;;  %s48_s17 = ssub.s32 %s1797_s12, %s2672_s1 }
  0x44   : > { %2590 = sst [smem:[#allocation34_spill]] %s2589_s19  ;;  %p49_p0 = scmp.eq.s32.totalorder %s48_s17, 0 }
  0x45   : > { %s77_s16 = scalar_select %p76_p2, %s2668_s18, 3 }
  0x46   : > { %s2592_s20 = scalar_select %p2027_p10, 1, 0 }
  0x47   : > { %s78_s19 = ssub.s32 %s1943_s14, %s77_s16  ;;  %s196_s27 = sadd.s32 1, %s1745_s23 }
  0x48   : > { %2593 = sst [smem:[#allocation36_spill]] %s2592_s20  ;;  %p79_p1 = scmp.eq.s32.totalorder %s78_s19, 0 }
  0x49   : > { %s193_s3 = sor.u32 %s78_s19, %s48_s17  ;;  %p206_p3 = scmp.ne.s32.totalorder %s1745_s23, %s1741_s22 }
  0x4a   : > { %s2033_s24 = scalar_select %p49_p0, %s1781_s8, %s51_s5  }
  0x4b   : > { %s2036_s25 = scalar_select %p79_p1, %s1769_s29, %s81_s15  }
  0x4c   : > { %2594 = sst [smem:[#allocation37_spill]] %s2033_s24  ;;  %p194_p2 = scmp.eq.s32.totalorder %s193_s3, 0 }
  0x4d   : > { %2595 = sst [smem:[#allocation38_spill]] %s2036_s25  ;;  %p207_p13 = scmp.eq.s32.totalorder %s1983_s6, 15 }
  0x4e   : > { %s2043_s1 = scalar_select %p194_p2, %s1745_s23, %s196_s27  }
  0x4f   : > { %p2045_p8 = por %p207_p13, %p206_p3  ;;  %p212_p5 = scmp.ne.s32.totalorder %s1741_s22, %s1737_s21 }
  0x50   : > { %2596 = sst [smem:[#allocation39_spill]] %s2043_s1  ;;  %s2598_s16 = sadd.s32 4294967294, %s1801_s13  }
  0x51   : > { %s2597_s20 = scalar_select %p2045_p8, 1, 0 }
  0x52   : > { %p213_p7 = scmp.eq.s32.totalorder %s2598_s16, 15  ;;  %p2056_p0 = por %p207_p13, %p58_p11 }
  0x53   : > { %s262_s3 = sand.u32 1, %s1781_s8   ;;  %s1293_s17 = sshll.u32 %s1797_s12, 8 }
  0x54   : > { %s2599_s15 = scalar_select %p2056_p0, 1, 0 }
  0x55   : > { %p2062_p1 = por %p213_p7, %p212_p5  ;;  %p2602_p2 = scmp.ne.s32.totalorder %s1777_s7, %s1773_s30 }
  0x56   : > { %s1250_s27 = sshll.u32 %s262_s3, 4  ;;  %s2605_s0 = sld [smem:[#allocation42_spill]] }
  0x57   : > { %s2600_s5 = scalar_select %p2062_p1, 1, 0 }
  0x58   : > { %p2069_p10 = por %p213_p7, %p2602_p2  ;;  %s266_s1 = scalar_lea.vmem [#allocation6], %s1250_s27 }
  0x59   : > { %2601 = sst [smem:[#allocation40_spill]] %s2600_s5  ;;  %s274_s23 = sshll.u32 %s266_s1, 4  ;;  %s275_s23 = int_to_ptr.vmem [resolvable:$true] %s274_s23 }
  0x5a   : > { %s2603_s19 = scalar_select %p2069_p10, 1, 0 }
  0x5b   : > { %p2606_p11 = scmp.lt.s32.totalorder %s1801_s13, 16  ;;  %s2608_s8 = sand.u32 1, %s1769_s29  }
  0x5c   : > { %2604 = sst [smem:[#allocation41_spill]] %s2603_s19  ;;  %s272_s16 = scalar_lea.hbm %s2605_s0, %s1293_s17 }
  0x5d   : > { %p2080_p13 = pnand %p2606_p11, %p2001_p12  ;;  %s1256_s30 = sshll.u32 %s2608_s8, 1 }
  0x5e   : > { %s263_s5 = scalar_lea.sflag [#allocation7], %s262_s3  ;;  %s1524_s19 = scalar_lea.vmem %s275_s23, 256 }
  0x5f   : > { %p1513_p5 = pneg %p2080_p13  ;;  %p1525_p7 = scmp.ne.s32.totalorder %s275_s23, %s1524_s19 }
  0x60   : > { %s1807_s24 = smov [#allocation6]  }
  0x61   : > { %p1527_p3 = pnand %p1525_p7, %p1513_p5  ;;  %s1529_s25 = sshll.u32 %s1807_s24, 4  ;;  %s1530_s25 = int_to_ptr.vmem [resolvable:$false] %s1529_s25 }
  0x62   : > { %s1531_s1 = scalar_lea.vmem %s1530_s25, 512  ;;  %p1532_p10 = scmp.lt.s32.totalorder %s275_s23, %s1530_s25 }
  0x63   : > { %p1528_p2 = pneg %p1527_p3  ;;  %p1533_p12 = scmp.lt.s32.totalorder %s1531_s1, %s1524_s19 }
  0x65   : > { %p1534_p11 = por %p1533_p12, %p1532_p10 }
  0x67   : > { %p1535_p1 = pnand %p1534_p11, %p1528_p2 }
  0x69   : > { %1538 = shalt.err (!%p1535_p1)
}
  0x6a   : > { %1320 = dma.hbm_to_vmem [thread:$0]  (!%p2080_p13), %s272_s16, 256, %s275_s23, %s263_s5  }
  0x6b   : > { %s1295_s8 = sshll.u32 %s1943_s14, 5  ;;  %s308_s10 = scalar_lea.vmem [#allocation11], %s1256_s30 }
  0x6c   : > { %s318_s3 = sshll.u32 %s308_s10, 4  ;;  %s2609_s2 = sld [smem:[#allocation44_spill]]  ;;  %s319_s3 = int_to_ptr.vmem [resolvable:$true] %s318_s3 }
  0x6d   : > { %s1552_s24 = scalar_lea.vmem %s319_s3, 32  ;;  %p2610_p7 = pneg %p1958_p6 }
  0x6e   : > { %p1553_p5 = scmp.ne.s32.totalorder %s319_s3, %s1552_s24  ;;  %s1808_s19 = smov [#allocation11]  }
  0x6f   : > { %s1557_s25 = sshll.u32 %s1808_s19, 4  ;;  %s1558_s25 = int_to_ptr.vmem [resolvable:$false] %s1557_s25 }
  0x70   : > { %p1555_p10 = pnand %p1553_p5, %p2610_p7  ;;  %s1559_s12 = scalar_lea.vmem %s1558_s25, 64 }
  0x71   : > { %p1560_p1 = scmp.lt.s32.totalorder %s319_s3, %s1558_s25  ;;  %p1561_p13 = scmp.lt.s32.totalorder %s1559_s12, %s1552_s24 }
  0x72   : > { %s316_s0 = scalar_lea.hbm %s2609_s2, %s1295_s8  ;;  %p1556_p3 = pneg %p1555_p10 }
  0x73   : > { %p1562_p2 = por %p1561_p13, %p1560_p1 }
  0x75   : > { %p1563_p12 = pnand %p1562_p2, %p1556_p3 }
  0x77   : > { %1566 = shalt.err (!%p1563_p12)
}
  0x78   : > { %s2611_s23 = sld [smem:[#allocation24_spill]]  ;;  %s1246_s14 = sadd.s32 4294967292, %s1793_s11 }
  0x79   : > { %s2612_s30 = sld [smem:[#allocation23_spill]]  ;;  %s1247_s5 = sadd.s32 4294967292, %s2668_s18 }
  0x7a   : > { %1326 = dma.hbm_to_vmem [thread:$0]  (!%p1958_p6), %s316_s0, 32, %s319_s3, %s1963_s9  }
  0x7b   : > { %p135_p11 = scmp.gt.s32.totalorder %s1246_s14, 0  ;;  %p138_p5 = scmp.gt.s32.totalorder %s1247_s5, 0 }
  0x7c   : > { %s143_s16 = sadd.s32 1, %s1757_s26  ;;  %p2613_p10 = scmp.eq.s32.totalorder %s1801_s13, 0 }
  0x7d   : > { %s2674_s14 = smov (!%p135_p11, %s1246_s14), 0  ;;  %s2676_s5 = smov (!%p138_p5, %s1247_s5), 0 }
  0x7e   : > { %p150_p7 = scmp.ne.s32.totalorder %s1757_s26, %s2611_s23  ;;  %s140_s1 = ssub.s32 %s2674_s14, %s2676_s5 }
  0x7f   : > { %p156_p1 = scmp.ne.s32.totalorder %s2611_s23, %s2612_s30  ;;  %s325_s8 = sand.u32 1, %s1757_s26  }
  0x80   : > { %p2107_p3 = por %p150_p7, %p2613_p10  ;;  %p141_p6 = scmp.eq.s32.totalorder %s140_s1, 0 }
  0x81   : > { %p2615_p13 = scmp.eq.s32.totalorder %s1983_s6, 0  ;;  %s1259_s9 = sshll.u32 %s325_s8, 9 }
  0x82   : > { %s2121_s10 = scalar_select %p141_p6, %s1757_s26, %s143_s16  }
  0x83   : > { %p2116_p2 = por %p156_p1, %p2615_p13  ;;  %s1297_s3 = sshll.u32 %s2674_s14, 13 }
  0x84   : > { %s2617_s24 = sld [smem:[#allocation45_spill]]  ;;  %s329_s25 = scalar_lea.vmem [#allocation12], %s1259_s9 }
  0x85   : > { %s340_s12 = sshll.u32 %s329_s25, 4  ;;  %p2618_p12 = scmp.lt.s32.totalorder %s1801_s13, 16  ;;  %s341_s12 = int_to_ptr.vmem [resolvable:$true] %s340_s12 }
  0x86   : > { %s326_s30 = scalar_lea.sflag [#allocation13], %s325_s8  ;;  %s1580_s5 = scalar_lea.vmem %s341_s12, 8192 }
  0x87   : > { %p2130_p11 = pnand %p2618_p12, %p2107_p3  ;;  %p1581_p7 = scmp.ne.s32.totalorder %s341_s12, %s1580_s5 }
  0x88   : > { %s1809_s14 = smov [#allocation12]  }
  0x89   : > { %p1569_p5 = pneg %p2130_p11  ;;  %s1585_s16 = sshll.u32 %s1809_s14, 4  ;;  %s1586_s16 = int_to_ptr.vmem [resolvable:$false] %s1585_s16 }
  0x8a   : > { %s339_s19 = scalar_lea.hbm %s2617_s24, %s1297_s3  ;;  %s1587_s1 = scalar_lea.vmem %s1586_s16, 16384 }
  0x8b   : > { %p1583_p10 = pnand %p1581_p7, %p1569_p5  ;;  %p1588_p6 = scmp.lt.s32.totalorder %s341_s12, %s1586_s16 }
  0x8c   : > { %p1589_p13 = scmp.lt.s32.totalorder %s1587_s1, %s1580_s5 }
  0x8d   : > { %p1584_p1 = pneg %p1583_p10 }
  0x8e   : > { %p1590_p0 = por %p1589_p13, %p1588_p6 }
  0x90   : > { %p1591_p8 = pnand %p1590_p0, %p1584_p1 }
  0x92   : > { %1594 = shalt.err (!%p1591_p8)
}
  0x93   : > { %s2620_s4 = smov 16   ;;  %s2621_s9 = smov 256  }
  0x94   : > { %1329 = dma.hbm_to_vmem [thread:$0]  (!%p2130_p11), %s339_s19, 8192, %s341_s12, %s326_s30, %s2621_s9, %s2621_s9, %s2620_s4  }
  0x95   : > { %352 = sbr.rel (%p1978_p9) target bundleno = 2403 (0x963), region = 40  ;;  %s2144_s17 = sand.u32 (!%p1978_p9), 1, %s1777_s7  }
  0x96   : > { %s1265_s27 = sshll.u32 (!%p1978_p9), %s2144_s17, 4  ;;  %s355_s24 = scalar_lea.sflag (!%p1978_p9), [#allocation7], %s2144_s17 }
  0x97   : > { %s2148_s25 = scalar_lea.vmem (!%p1978_p9), [#allocation6], %s1265_s27 }
  0x9a   : > { %1716 = dma.done.wait (%p2012_p4), %s355_s24, 256  }
  0x9b   : > { %1718 = vsyncadd (%p2012_p4), %s355_s24, 4294967040  ;;  %s2624_s19 = sld [smem:[#allocation36_spill]]  ;;  %s363_s12 = sand.u32 1, %s1983_s6  }
  0x9c   : > { %s365_s23 = sand.u32 1, %s1765_s28   ;;  %s364_s5 = scalar_lea.sflag [#allocation10], %s363_s12 }
  0x9d   : > { %s1266_s30 = sshll.u32 %s365_s23, 9 }
  0x9e   : > { %s2156_s14 = scalar_lea.vmem [#allocation9], %s1266_s30 }
  0xa1   : > { %p2625_p8 = scmp.ne.s32.totalorder %s2624_s19, 0 }
  0xa3   : > { %1720 = dma.done.wait (%p2625_p8), %s364_s5, 8224  }
  0xa4   : > { %1722 = vsyncadd (%p2625_p8), %s364_s5, 4294959072  ;;  %s2626_s16 = sld [smem:[#allocation24_spill]]  ;;  %s2162_s1 = sshll.u32 %s365_s23, 1 }
  0xa5   : > { %s376_s8 = scalar_lea.vmem [#allocation11], %s2162_s1 }
  0xaa   : > { %s381_s4 = sand.u32 1, %s2626_s16  }
  0xab   : > { %s1268_s9 = sshll.u32 %s381_s4, 9  ;;  %s382_s3 = scalar_lea.sflag [#allocation13], %s381_s4 }
  0xac   : > { %s2166_s6 = scalar_lea.vmem [#allocation12], %s1268_s9 }
  0xad   : > { %1724 = dma.done.wait (%p2116_p2), %s382_s3, 8192  }
  0xae   : > { %1726 = vsyncadd (%p2116_p2), %s382_s3, 4294959104  ;;  %s2562_s24 = sand.u32 1, %s1741_s22   ;;  %s2177_s23 = scalar_lea.vmem [#allocation15], %s1265_s27 }
  0xaf   : > { %s1269_s19 = sshll.u32 %s2562_s24, 4  ;;  %s2627_s30 = sld [smem:[#allocation28_spill]] }
  0xb0   : > { %s2175_s12 = scalar_lea.vmem [#allocation14], %s1269_s19 }
  0xb5   : > { %p1271_p9 = scmp.ge.s32.totalorder %s2627_s30, 4 }
  0xb6   : > { %s2628_s5 = sld [smem:[#allocation28_spill]] (!%p1271_p9) }
  0xb7   : > { %450 = sbr.rel (%p1271_p9) target bundleno = 1988 (0x7c4), region = 60 }
  0xbc   : > { %p1272_p4 = scmp.ne.s32.totalorder %s2628_s5, 0 }
  0xbe   : > { %454 = sbr.rel (%p1272_p4) target bundleno = 197 (0xc5), region = 64 }
  0xc3   : > { %vm455_vm0 = vcmask 64512   ;;  %v1810_v0 = vmov -inf  }
  0xc4   : > { %456 = vst.msk [vmem:[#allocation3] sm:$0xff] %vm455_vm0, %v1810_v0 }
  0xc5 PF: > { %v490_v1 = vld [vmem:[%s2156_s14 + $0xf8] sm:$0xff]  ;;  %v489_v2 = vld [vmem:[%s2156_s14 + $0xf0] sm:$0xff]  ;;  %v488_v3 = vld [vmem:[%s2156_s14 + $0xe8] sm:$0xff]  ;;  %s2629_s0 = sld [smem:[#allocation28_spill]]  ;;  %vm626_vm1 = vcmask 64512  }
  0xc6   : > { %535 = vmatprep.subr.mxu0 %v490_v1  ;;  %v487_v4 = vld [vmem:[%s2156_s14 + $0xe0] sm:$0xff]  ;;  %v486_v5 = vld [vmem:[%s2156_s14 + $0xd8] sm:$0xff]  ;;  %v485_v6 = vld [vmem:[%s2156_s14 + $0xd0] sm:$0xff] }
  0xc7   : > { %536 = vmatpush1.msra.mxu0 %v489_v2  ;;  %v484_v7 = vld [vmem:[%s2156_s14 + $0xc8] sm:$0xff]  ;;  %v483_v8 = vld [vmem:[%s2156_s14 + $0xc0] sm:$0xff]  ;;  %v482_v9 = vld [vmem:[%s2156_s14 + $0xb8] sm:$0xff] }
  0xc8   : > { %537 = vmatprep.subr.mxu0 %v488_v3  ;;  %v481_v10 = vld [vmem:[%s2156_s14 + $0xb0] sm:$0xff]  ;;  %v480_v11 = vld [vmem:[%s2156_s14 + $0xa8] sm:$0xff]  ;;  %v479_v12 = vld [vmem:[%s2156_s14 + $0xa0] sm:$0xff]  ;;  %v525_v3 = vlaneseq }
  0xc9   : > { %538 = vmatpush1.msra.mxu0 %v487_v4  ;;  %v478_v13 = vld [vmem:[%s2156_s14 + $0x98] sm:$0xff]  ;;  %v477_v14 = vld [vmem:[%s2156_s14 + $0x90] sm:$0xff]  ;;  %v476_v15 = vld [vmem:[%s2156_s14 + $0x88] sm:$0xff] }
  0xca   : > { %539 = vmatprep.subr.mxu0 %v486_v5  ;;  %v475_v16 = vld [vmem:[%s2156_s14 + $0x80] sm:$0xff]  ;;  %v474_v17 = vld [vmem:[%s2156_s14 + $0x78] sm:$0xff]  ;;  %v473_v18 = vld [vmem:[%s2156_s14 + $0x70] sm:$0xff]  ;;  %v526_v4 = vshrl.u32 %v525_v3, 7 }
  0xcb   : > { %540 = vmatpush1.msra.mxu0 %v485_v6  ;;  %v472_v19 = vld [vmem:[%s2156_s14 + $0x68] sm:$0xff]  ;;  %v471_v20 = vld [vmem:[%s2156_s14 + $0x60] sm:$0xff]  ;;  %v470_v21 = vld [vmem:[%s2156_s14 + $0x58] sm:$0xff]  ;;  %s1298_s27 = sshll.u32 %s2629_s0, 4 }
  0xcc   : > { %541 = vmatprep.subr.mxu0 %v484_v7  ;;  %v469_v22 = vld [vmem:[%s2156_s14 + $0x50] sm:$0xff]  ;;  %v468_v23 = vld [vmem:[%s2156_s14 + $0x48] sm:$0xff]  ;;  %v467_v24 = vld [vmem:[%s2156_s14 + $0x40] sm:$0xff]  ;;  %v527_v5 = vsub.s32 0, %v526_v4  ;;  %v531_v7 = vsub.s32 1, %v526_v4 }
  0xcd   : > { %542 = vmatpush1.msra.mxu0 %v483_v8  ;;  %v458_v25 = vld [vmem:[%s2148_s25 + $0x8] sm:$0xff]  ;;  %v465_v27 = vld [vmem:[%s2156_s14 + $0x30] sm:$0xff]  ;;  %v463_v29 = vld [vmem:[%s2156_s14 + $0x20] sm:$0xff] }
  0xce   : > { %543 = vmatprep.subr.mxu0 %v482_v9  ;;  %v466_v26 = vld [vmem:[%s2156_s14 + $0x38] sm:$0xff]  ;;  %599 = vmatprep.mubr.f32.mxu0 %v458_v25  ;;  %v464_v28 = vld [vmem:[%s2156_s14 + $0x28] sm:$0xff]  ;;  %v461_v31 = vld [vmem:[%s2156_s14 + $0x10] sm:$0xff] }
  0xcf   : > { %544 = vmatpush1.msra.mxu0 %v481_v10  ;;  %v462_v30 = vld [vmem:[%s2156_s14 + $0x18] sm:$0xff]  ;;  %v460_v32 = vld [vmem:[%s2156_s14 + $0x8] sm:$0xff]  ;;  %v459_v33 = vld [vmem:[%s2156_s14] sm:$0xff] }
  0xd0   : > { %545 = vmatprep.subr.mxu0 %v480_v11  ;;  %v522_v34 = vld [vmem:[%s2156_s14 + $0x1f8] sm:$0xff]  ;;  %v521_v35 = vld [vmem:[%s2156_s14 + $0x1f0] sm:$0xff]  ;;  %v520_v36 = vld [vmem:[%s2156_s14 + $0x1e8] sm:$0xff] }
  0xd1   : > { %546 = vmatpush1.msra.mxu0 %v479_v12  ;;  %v519_v37 = vld [vmem:[%s2156_s14 + $0x1e0] sm:$0xff]  ;;  %v518_v38 = vld [vmem:[%s2156_s14 + $0x1d8] sm:$0xff]  ;;  %v517_v39 = vld [vmem:[%s2156_s14 + $0x1d0] sm:$0xff] }
  0xd2   : > { %547 = vmatprep.subr.mxu0 %v478_v13  ;;  %v516_v40 = vld [vmem:[%s2156_s14 + $0x1c8] sm:$0xff]  ;;  %v515_v41 = vld [vmem:[%s2156_s14 + $0x1c0] sm:$0xff]  ;;  %v514_v42 = vld [vmem:[%s2156_s14 + $0x1b8] sm:$0xff] }
  0xd3   : > { %548 = vmatpush1.msra.mxu0 %v477_v14  ;;  %v513_v43 = vld [vmem:[%s2156_s14 + $0x1b0] sm:$0xff]  ;;  %v512_v44 = vld [vmem:[%s2156_s14 + $0x1a8] sm:$0xff]  ;;  %v511_v45 = vld [vmem:[%s2156_s14 + $0x1a0] sm:$0xff] }
  0xd4   : > { %549 = vmatprep.subr.mxu0 %v476_v15  ;;  %v510_v46 = vld [vmem:[%s2156_s14 + $0x198] sm:$0xff]  ;;  %v509_v47 = vld [vmem:[%s2156_s14 + $0x190] sm:$0xff]  ;;  %v508_v48 = vld [vmem:[%s2156_s14 + $0x188] sm:$0xff] }
  0xd5   : > { %550 = vmatpush1.msra.mxu0 %v475_v16  ;;  %v507_v49 = vld [vmem:[%s2156_s14 + $0x180] sm:$0xff]  ;;  %v506_v50 = vld [vmem:[%s2156_s14 + $0x178] sm:$0xff]  ;;  %v505_v51 = vld [vmem:[%s2156_s14 + $0x170] sm:$0xff] }
  0xd6   : > { %551 = vmatprep.subr.mxu0 %v474_v17  ;;  %v504_v52 = vld [vmem:[%s2156_s14 + $0x168] sm:$0xff]  ;;  %v503_v53 = vld [vmem:[%s2156_s14 + $0x160] sm:$0xff]  ;;  %v502_v54 = vld [vmem:[%s2156_s14 + $0x158] sm:$0xff] }
  0xd7   : > { %552 = vmatpush1.msra.mxu0 %v473_v18  ;;  %v501_v55 = vld [vmem:[%s2156_s14 + $0x150] sm:$0xff]  ;;  %v500_v56 = vld [vmem:[%s2156_s14 + $0x148] sm:$0xff]  ;;  %v499_v57 = vld [vmem:[%s2156_s14 + $0x140] sm:$0xff] }
  0xd8   : > { %553 = vmatprep.subr.mxu0 %v472_v19  ;;  %v498_v58 = vld [vmem:[%s2156_s14 + $0x138] sm:$0xff]  ;;  %v497_v59 = vld [vmem:[%s2156_s14 + $0x130] sm:$0xff]  ;;  %v496_v60 = vld [vmem:[%s2156_s14 + $0x128] sm:$0xff] }
  0xd9   : > { %554 = vmatpush1.msra.mxu0 %v471_v20  ;;  %v495_v61 = vld [vmem:[%s2156_s14 + $0x120] sm:$0xff]  ;;  %v494_v62 = vld [vmem:[%s2156_s14 + $0x118] sm:$0xff]  ;;  %v493_v63 = vld [vmem:[%s2156_s14 + $0x110] sm:$0xff] }
  0xda   : > { %555 = vmatprep.subr.mxu0 %v470_v21  ;;  %v492_v0 = vld [vmem:[%s2156_s14 + $0x108] sm:$0xff]  ;;  %v491_v1 = vld [vmem:[%s2156_s14 + $0x100] sm:$0xff]  ;;  %s610_s14 = scalar_lea.vmem [#allocation2], %s1298_s27 }
  0xdb   : > { %556 = vmatpush1.msra.mxu0 %v469_v22  ;;  %v457_v2 = vld [vmem:[%s2148_s25] sm:$0xff] }
  0xdc   : > { %557 = vmatprep.subr.mxu0 %v468_v23  ;;  %v523_v6 = vld [vmem:[%s376_s8] sm:$0x3] }
  0xdd   : > { %558 = vmatpush1.msra.mxu0 %v467_v24  ;;  %v528_v8 = vrot.slane %v523_v6, %v527_v5  ;;  %v532_v9 = vrot.slane %v523_v6, %v531_v7  ;;  %v625_v17 = vld [vmem:[#allocation3] sm:$0xff] }
  0xde   : > { %559 = vmatprep.subr.mxu0 %v466_v26  ;;  %v627_v18 = vsel %vm626_vm1, %v625_v17, inf }
  0xdf   : > { %560 = vmatpush1.msra.mxu0 %v465_v27 }
  0xe0   : > { %561 = vmatprep.subr.mxu0 %v464_v28 }
  0xe1   : > { %562 = vmatpush1.msra.mxu0 %v463_v29 }
  0xe2   : > { %563 = vmatprep.subr.mxu0 %v462_v30 }
  0xe3   : > { %564 = vmatpush1.msra.mxu0 %v461_v31 }
  0xe4   : > { %565 = vmatprep.subr.mxu0 %v460_v32 }
  0xe5   : > { %566 = vmatpush1.msra.mxu0 %v459_v33 }
  0xe6   : > { %567 = vmatprep.subr.mxu0 %v522_v34 }
  0xe7   : > { %568 = vmatpush2.msra.mxu0 %v521_v35 }
  0xe8   : > { %569 = vmatprep.subr.mxu0 %v520_v36 }
  0xe9   : > { %570 = vmatpush2.msra.mxu0 %v519_v37 }
  0xea   : > { %571 = vmatprep.subr.mxu0 %v518_v38 }
  0xeb   : > { %572 = vmatpush2.msra.mxu0 %v517_v39 }
  0xec   : > { %573 = vmatprep.subr.mxu0 %v516_v40 }
  0xed   : > { %574 = vmatpush2.msra.mxu0 %v515_v41 }
  0xee   : > { %575 = vmatprep.subr.mxu0 %v514_v42 }
  0xef   : > { %576 = vmatpush2.msra.mxu0 %v513_v43 }
  0xf0   : > { %577 = vmatprep.subr.mxu0 %v512_v44 }
  0xf1   : > { %578 = vmatpush2.msra.mxu0 %v511_v45 }
  0xf2   : > { %579 = vmatprep.subr.mxu0 %v510_v46 }
  0xf3   : > { %580 = vmatpush2.msra.mxu0 %v509_v47 }
  0xf4   : > { %581 = vmatprep.subr.mxu0 %v508_v48 }
  0xf5   : > { %582 = vmatpush2.msra.mxu0 %v507_v49 }
  0xf6   : > { %583 = vmatprep.subr.mxu0 %v506_v50 }
  0xf7   : > { %584 = vmatpush2.msra.mxu0 %v505_v51 }
  0xf8   : > { %585 = vmatprep.subr.mxu0 %v504_v52 }
  0xf9   : > { %586 = vmatpush2.msra.mxu0 %v503_v53 }
  0xfa   : > { %587 = vmatprep.subr.mxu0 %v502_v54 }
  0xfb   : > { %588 = vmatpush2.msra.mxu0 %v501_v55 }
  0xfc   : > { %589 = vmatprep.subr.mxu0 %v500_v56 }
  0xfd   : > { %590 = vmatpush2.msra.mxu0 %v499_v57 }
  0xfe   : > { %591 = vmatprep.subr.mxu0 %v498_v58 }
  0xff   : > { %592 = vmatpush2.msra.mxu0 %v497_v59 }
 0x100   : > { %593 = vmatprep.subr.mxu0 %v496_v60 }
 0x101   : > { %594 = vmatpush2.msra.mxu0 %v495_v61 }
 0x102   : > { %595 = vmatprep.subr.mxu0 %v494_v62 }
 0x103   : > { %596 = vmatpush2.msra.mxu0 %v493_v63 }
 0x104   : > { %597 = vmatprep.subr.mxu0 %v492_v0 }
 0x105   : > { %598 = vmatpush2.msra.mxu0 %v491_v1 }
 0x106   : > { %600 = vmatmul.mubr.f32.vlgmr.msra.gmra.mxu0 %v457_v2 }
 0x1c6   : > { %v601_v10 = vpop.f32.mrf.mxu0 }
 0x1c7   : > { %v602_v11 = vadd.f32 %v601_v10, %v528_v8 }
 0x1c8   : > { %v603_v12 = vpop.f32.mrf.mxu0 }
 0x1c9   : > { %606 = vst [vmem:[%s2175_s12] sm:$0xff] %v602_v11  ;;  %611 = vst [vmem:[%s610_s14] sm:$0xff] %v602_v11  ;;  %v604_v13 = vadd.f32 %v603_v12, %v532_v9  ;;  %v613_v14 = vand.u32 2147483647, %v602_v11 }
 0x1cb   : > { %607 = vst [vmem:[%s2175_s12 + $0x8] sm:$0xff] %v604_v13  ;;  %612 = vst [vmem:[%s610_s14 + $0x8] sm:$0xff] %v604_v13  ;;  %v614_v15 = vand.u32 2147483647, %v604_v13 }
 0x1cd   : > { %v615_v16 = vmax.f32 %v613_v14, %v614_v15 }
 0x1cf   : > { %616 = vmax.xlane.f32.xlu0 %v615_v16 }
 0x1d3   : > { %628 = vmin.xlane.f32.xlu0 %v627_v18 }
 0x258   : > { %v2254_v19 = vpop.xlane.xlu0 %616 }
 0x259   : > { %v618_v20 = vrot.slane %v2254_v19, 4 }
 0x25b   : > { %v619_v21 = vmax.f32 %v2254_v19, %v618_v20 }
 0x25c   : > { %v629_v22 = vpop.xlane.xlu0 %628 }
 0x25d   : > { %v620_v23 = vrot.slane %v619_v21, 2  ;;  %v630_v24 = vrot.slane %v629_v22, 4 }
 0x25f   : > { %v631_v25 = vmin.f32 %v629_v22, %v630_v24  ;;  %v621_v26 = vmax.f32 %v619_v21, %v620_v23 }
 0x261   : > { %v632_v27 = vrot.slane %v631_v25, 2  ;;  %v622_v28 = vrot.slane %v621_v26, 1 }
 0x263   : > { %v633_v29 = vmin.f32 %v631_v25, %v632_v27  ;;  %v623_v30 = vmax.f32 %v621_v26, %v622_v28 }
 0x265   : > { %1301 = vpush %v623_v30  ;;  %v634_v31 = vrot.slane %v633_v29, 1 }
 0x267   : > { %v635_v32 = vmin.f32 %v633_v29, %v634_v31 }
 0x269   : > { %1303 = vpush %v635_v32 }
 0x296   : > { %s1302_s25 = spop %1301 }
 0x29a   : > { %s1304_s16 = spop %1303 }
 0x29b   : > { %p637_p0 = scmp.gt.f32.partialorder %s1302_s25, %s1304_s16 }
 0x29c   : > { %v641_v33 = vld [vmem:[#allocation3] sm:$0xff] (%p637_p0)  ;;  %vm651_vm4 = vcmp.eq.f32.partialorder (%p637_p0), %v613_v14, %v2254_v19  ;;  %vm1811_vm5 = vmmov (%p637_p0), 1   ;;  %vm652_vm7 = vcmp.eq.f32.partialorder (%p637_p0), %v614_v15, %v2254_v19  ;;  %v643_v21 = vand.u32 (%p637_p0), 127, %v525_v3 }
 0x29d   : > { %640 = sbr.rel (!%p637_p0) target bundleno = 1834 (0x72a), region = 68  ;;  %v644_v34 = vsel (%p637_p0), %vm626_vm1, %v641_v33, -inf }
 0x29e   : > { %645 = vmax.xlane.f32.xlu0 (%p637_p0), %v644_v34 }
 0x327   : > { %v2259_v35 = vpop.xlane.xlu0 %645 }
 0x328   : > { %vm647_vm2 = vcmp.ge.f32.partialorder %v2254_v19, %v2259_v35  ;;  %vm660_vm3 = vcmp.eq.f32.partialorder %v641_v33, %v2259_v35  ;;  %v648_v22 = vmax.f32 %v2254_v19, %v2259_v35 }
 0x329   : > { %vm659_vm6 = vmxor %vm647_vm2, %vm1811_vm5 }
 0x32a   : > { %vm663_vm8 = vmand %vm659_vm6, %vm660_vm3 }
 0x32b   : > { %v664_v36 = vsel %vm663_vm8, -inf, %v641_v33  ;;  %vm655_vm9 = vmand %vm647_vm2, %vm651_vm4 }
 0x32c   : > { %v668_v37 = vsel %vm626_vm1, %v664_v36, -inf  ;;  %vm656_vm10 = vmand %vm647_vm2, %vm652_vm7  ;;  %v657_v38 = vsel %vm655_vm9, -inf, %v613_v14 }
 0x32d   : > { %669 = vmax.xlane.f32.xlu1 %v668_v37  ;;  %v658_v39 = vsel %vm656_vm10, -inf, %v614_v15 }
 0x32e   : > { %v665_v40 = vmax.f32 %v657_v38, %v658_v39 }
 0x330   : > { %666 = vmax.xlane.f32.xlu0 %v665_v40 }
 0x3b6   : > { %v2268_v41 = vpop.xlane.xlu1 %669 }
 0x3b7   : > { %vm684_vm11 = vcmp.eq.f32.partialorder %v664_v36, %v2268_v41 }
 0x3b9   : > { %v2271_v42 = vpop.xlane.xlu0 %666 }
 0x3ba   : > { %vm671_vm12 = vcmp.ge.f32.partialorder %v2271_v42, %v2268_v41  ;;  %vm675_vm13 = vcmp.eq.f32.partialorder %v657_v38, %v2271_v42  ;;  %vm676_vm15 = vcmp.eq.f32.partialorder %v658_v39, %v2271_v42  ;;  %v672_v23 = vmax.f32 %v2271_v42, %v2268_v41 }
 0x3bb   : > { %vm683_vm14 = vmxor %vm671_vm12, %vm1811_vm5 }
 0x3bc   : > { %vm687_vm0 = vmand %vm683_vm14, %vm684_vm11 }
 0x3bd   : > { %v688_v43 = vsel %vm687_vm0, -inf, %v664_v36  ;;  %vm679_vm2 = vmand %vm671_vm12, %vm675_vm13 }
 0x3be   : > { %v692_v44 = vsel %vm626_vm1, %v688_v43, -inf  ;;  %vm680_vm3 = vmand %vm671_vm12, %vm676_vm15  ;;  %v681_v45 = vsel %vm679_vm2, -inf, %v657_v38 }
 0x3bf   : > { %693 = vmax.xlane.f32.xlu0 %v692_v44  ;;  %v682_v46 = vsel %vm680_vm3, -inf, %v658_v39 }
 0x3c0   : > { %v689_v47 = vmax.f32 %v681_v45, %v682_v46 }
 0x3c2   : > { %690 = vmax.xlane.f32.xlu1 %v689_v47 }
 0x448   : > { %v2279_v48 = vpop.xlane.xlu0 %693 }
 0x449   : > { %vm708_vm4 = vcmp.eq.f32.partialorder %v688_v43, %v2279_v48 }
 0x44b   : > { %v2282_v49 = vpop.xlane.xlu1 %690 }
 0x44c   : > { %vm695_vm6 = vcmp.ge.f32.partialorder %v2282_v49, %v2279_v48  ;;  %vm699_vm7 = vcmp.eq.f32.partialorder %v681_v45, %v2282_v49  ;;  %vm700_vm9 = vcmp.eq.f32.partialorder %v682_v46, %v2282_v49  ;;  %v696_v24 = vmax.f32 %v2282_v49, %v2279_v48 }
 0x44d   : > { %vm707_vm8 = vmxor %vm695_vm6, %vm1811_vm5 }
 0x44e   : > { %vm711_vm10 = vmand %vm707_vm8, %vm708_vm4 }
 0x44f   : > { %v712_v50 = vsel %vm711_vm10, -inf, %v688_v43  ;;  %vm703_vm11 = vmand %vm695_vm6, %vm699_vm7 }
 0x450   : > { %v716_v51 = vsel %vm626_vm1, %v712_v50, -inf  ;;  %vm704_vm12 = vmand %vm695_vm6, %vm700_vm9  ;;  %v705_v52 = vsel %vm703_vm11, -inf, %v681_v45 }
 0x451   : > { %717 = vmax.xlane.f32.xlu0 %v716_v51  ;;  %v706_v53 = vsel %vm704_vm12, -inf, %v682_v46 }
 0x452   : > { %v713_v54 = vmax.f32 %v705_v52, %v706_v53 }
 0x454   : > { %714 = vmax.xlane.f32.xlu1 %v713_v54 }
 0x4da   : > { %v2290_v55 = vpop.xlane.xlu0 %717 }
 0x4db   : > { %vm732_vm13 = vcmp.eq.f32.partialorder %v712_v50, %v2290_v55 }
 0x4dd   : > { %v2293_v56 = vpop.xlane.xlu1 %714 }
 0x4de   : > { %vm719_vm14 = vcmp.ge.f32.partialorder %v2293_v56, %v2290_v55  ;;  %vm723_vm15 = vcmp.eq.f32.partialorder %v705_v52, %v2293_v56  ;;  %vm724_vm2 = vcmp.eq.f32.partialorder %v706_v53, %v2293_v56  ;;  %v720_v25 = vmax.f32 %v2293_v56, %v2290_v55 }
 0x4df   : > { %vm731_vm0 = vmxor %vm719_vm14, %vm1811_vm5 }
 0x4e0   : > { %vm735_vm3 = vmand %vm731_vm0, %vm732_vm13 }
 0x4e1   : > { %v736_v57 = vsel %vm735_vm3, -inf, %v712_v50  ;;  %vm727_vm4 = vmand %vm719_vm14, %vm723_vm15 }
 0x4e2   : > { %v740_v58 = vsel %vm626_vm1, %v736_v57, -inf  ;;  %vm728_vm6 = vmand %vm719_vm14, %vm724_vm2  ;;  %v729_v59 = vsel %vm727_vm4, -inf, %v705_v52 }
 0x4e3   : > { %741 = vmax.xlane.f32.xlu0 %v740_v58  ;;  %v730_v60 = vsel %vm728_vm6, -inf, %v706_v53 }
 0x4e4   : > { %v737_v61 = vmax.f32 %v729_v59, %v730_v60 }
 0x4e6   : > { %738 = vmax.xlane.f32.xlu1 %v737_v61 }
 0x56c   : > { %v2301_v62 = vpop.xlane.xlu0 %741 }
 0x56d   : > { %vm756_vm7 = vcmp.eq.f32.partialorder %v736_v57, %v2301_v62 }
 0x56f   : > { %v2304_v63 = vpop.xlane.xlu1 %738 }
 0x570   : > { %vm743_vm8 = vcmp.ge.f32.partialorder %v2304_v63, %v2301_v62  ;;  %vm747_vm9 = vcmp.eq.f32.partialorder %v729_v59, %v2304_v63  ;;  %vm748_vm11 = vcmp.eq.f32.partialorder %v730_v60, %v2304_v63  ;;  %v744_v3 = vmax.f32 %v2304_v63, %v2301_v62 }
 0x571   : > { %vm755_vm10 = vmxor %vm743_vm8, %vm1811_vm5 }
 0x572   : > { %vm759_vm12 = vmand %vm755_vm10, %vm756_vm7 }
 0x573   : > { %v760_v0 = vsel %vm759_vm12, -inf, %v736_v57  ;;  %vm751_vm13 = vmand %vm743_vm8, %vm747_vm9 }
 0x574   : > { %v764_v1 = vsel %vm626_vm1, %v760_v0, -inf  ;;  %vm752_vm14 = vmand %vm743_vm8, %vm748_vm11  ;;  %v753_v2 = vsel %vm751_vm13, -inf, %v729_v59 }
 0x575   : > { %765 = vmax.xlane.f32.xlu0 %v764_v1  ;;  %v754_v4 = vsel %vm752_vm14, -inf, %v730_v60 }
 0x576   : > { %v761_v5 = vmax.f32 %v753_v2, %v754_v4 }
 0x578   : > { %762 = vmax.xlane.f32.xlu1 %v761_v5 }
 0x5fe   : > { %v766_v6 = vpop.xlane.xlu0 %765 }
 0x5ff   : > { %vm780_vm15 = vcmp.eq.f32.partialorder %v760_v0, %v766_v6 }
 0x601   : > { %v763_v7 = vpop.xlane.xlu1 %762 }
 0x602   : > { %vm767_vm0 = vcmp.ge.f32.partialorder %v763_v7, %v766_v6  ;;  %vm771_vm2 = vcmp.eq.f32.partialorder %v753_v2, %v763_v7  ;;  %vm772_vm4 = vcmp.eq.f32.partialorder %v754_v4, %v763_v7  ;;  %v768_v19 = vmax.f32 %v763_v7, %v766_v6 }
 0x603   : > { %vm779_vm3 = vmxor %vm767_vm0, %vm1811_vm5 }
 0x604   : > { %vm783_vm6 = vmand %vm779_vm3, %vm780_vm15  ;;  %vm697_vm3 = vcmp.eq.s32.totalorder %v643_v21, 2 }
 0x605   : > { %v784_v8 = vsel %vm783_vm6, -inf, %v760_v0  ;;  %vm775_vm7 = vmand %vm767_vm0, %vm771_vm2  ;;  %vm745_vm6 = vcmp.eq.s32.totalorder %v643_v21, 4 }
 0x606   : > { %v788_v9 = vsel %vm626_vm1, %v784_v8, -inf  ;;  %vm776_vm9 = vmand %vm767_vm0, %vm772_vm4  ;;  %v777_v10 = vsel %vm775_vm7, -inf, %v753_v2  ;;  %vm649_vm0 = vcmp.eq.s32.totalorder %v643_v21, 0  ;;  %vm721_vm4 = vcmp.eq.s32.totalorder %v643_v21, 3 }
 0x607   : > { %789 = vmax.xlane.f32.xlu0 %v788_v9  ;;  %v778_v11 = vsel %vm776_vm9, -inf, %v754_v4  ;;  %v650_v26 = vsel %vm649_vm0, %v648_v22, -inf  ;;  %vm769_vm7 = vcmp.eq.s32.totalorder %v643_v21, 5  ;;  %vm793_vm9 = vcmp.eq.s32.totalorder %v643_v21, 6 }
 0x608   : > { %v785_v12 = vmax.f32 %v777_v10, %v778_v11 }
 0x60a   : > { %786 = vmax.xlane.f32.xlu1 %v785_v12 }
 0x690   : > { %v790_v13 = vpop.xlane.xlu0 %789 }
 0x691   : > { %vm804_vm8 = vcmp.eq.f32.partialorder %v784_v8, %v790_v13 }
 0x693   : > { %v787_v14 = vpop.xlane.xlu1 %786 }
 0x694   : > { %vm791_vm10 = vcmp.ge.f32.partialorder %v787_v14, %v790_v13  ;;  %vm795_vm11 = vcmp.eq.f32.partialorder %v777_v10, %v787_v14  ;;  %vm796_vm13 = vcmp.eq.f32.partialorder %v778_v11, %v787_v14  ;;  %v792_v29 = vmax.f32 %v787_v14, %v790_v13 }
 0x695   : > { %vm803_vm12 = vmxor %vm791_vm10, %vm1811_vm5  ;;  %vm673_vm5 = vcmp.eq.s32.totalorder %v643_v21, 1 }
 0x696   : > { %vm807_vm14 = vmand %vm803_vm12, %vm804_vm8  ;;  %v674_v27 = vsel %vm673_vm5, %v672_v23, %v650_v26  ;;  %vm816_vm8 = vcmp.eq.s32.totalorder %v643_v21, 7 }
 0x697   : > { %v808_v15 = vsel %vm807_vm14, -inf, %v784_v8  ;;  %vm799_vm15 = vmand %vm791_vm10, %vm795_vm11  ;;  %v698_v28 = vsel %vm697_vm3, %v696_v24, %v674_v27 }
 0x698   : > { %v812_v16 = vsel %vm626_vm1, %v808_v15, -inf  ;;  %vm800_vm2 = vmand %vm791_vm10, %vm796_vm13  ;;  %v801_v17 = vsel %vm799_vm15, -inf, %v777_v10  ;;  %v722_v31 = vsel %vm721_vm4, %v720_v25, %v698_v28 }
 0x699   : > { %813 = vmax.xlane.f32.xlu0 %v812_v16  ;;  %v802_v18 = vsel %vm800_vm2, -inf, %v778_v11  ;;  %v746_v32 = vsel %vm745_vm6, %v744_v3, %v722_v31 }
 0x69a   : > { %v809_v20 = vmax.f32 %v801_v17, %v802_v18  ;;  %v770_v34 = vsel %vm769_vm7, %v768_v19, %v746_v32 }
 0x69b   : > { %v794_v36 = vsel %vm793_vm9, %v792_v29, %v770_v34 }
 0x69c   : > { %810 = vmax.xlane.f32.xlu1 %v809_v20 }
 0x722   : > { %v814_v30 = vpop.xlane.xlu0 %813 }
 0x725   : > { %v811_v33 = vpop.xlane.xlu1 %810 }
 0x726   : > { %v815_v35 = vmax.f32 %v811_v33, %v814_v30 }
 0x728   : > { %v817_v37 = vsel %vm816_vm8, %v815_v35, %v794_v36 }
 0x729   : > { %818 = vst.msk [vmem:[#allocation3] sm:$0xff] %vm626_vm1, %v817_v37 }
 0x72a PF: > { %s2630_s1 = sld [smem:[#allocation28_spill]] }
 0x730   : > { %p1275_p3 = scmp.ne.s32.totalorder %s2630_s1, 3 }
 0x732   : > { %822 = sbr.rel (%p1275_p3) target bundleno = 1988 (0x7c4), region = 72 }
 0x737   : > { %v823_v38 = vld [vmem:[#allocation3] sm:$0xff]  ;;  %vm827_vm10 = vcmask 7168  }
 0x738   : > { %v824_v39 = vsel %vm626_vm1, %v823_v38, inf }
 0x739   : > { %825 = vmin.xlane.f32.xlu0 %v824_v39 }
 0x7c2   : > { %v826_v40 = vpop.xlane.xlu0 %825 }
 0x7c3   : > { %828 = vst.msk [vmem:[#allocation4] sm:$0xff] %vm827_vm10, %v826_v40 }
 0x7c4 PF: > { %s2631_s4 = sld [smem:[#allocation28_spill]] }
 0x7ca   : > { %p1276_p2 = scmp.lt.s32.totalorder %s2631_s4, 4 }
 0x7cb   : > { %s2632_s9 = sld [smem:[#allocation28_spill]] (!%p1276_p2) }
 0x7cc   : > { %832 = sbr.rel (%p1276_p2) target bundleno = 2348 (0x92c), region = 76 }
 0x7d1   : > { %s2332_s8 = sadd.s32 4294967292, %s2632_s9 }
 0x7d2   : > { %p1278_p12 = scmp.ne.s32.totalorder %s2332_s8, 0 }
 0x7d4   : > { %837 = sbr.rel (%p1278_p12) target bundleno = 2011 (0x7db), region = 80 }
 0x7d9   : > { %v1812_v41 = vmov 0.0  }
 0x7da   : > { %838 = vst [vmem:[#allocation5] sm:$0xff] %v1812_v41  ;;  %839 = vst [vmem:[#allocation5 + $0x8] sm:$0xff] %v1812_v41 }
 0x7db PF: > { %v847_v42 = vld [vmem:[#allocation4] sm:$0xff]  ;;  %v890_v43 = vld [vmem:[%s2166_s6 + $0xf8] sm:$0xff]  ;;  %v889_v44 = vld [vmem:[%s2166_s6 + $0xf0] sm:$0xff]  ;;  %v1813_v45 = vmov 0   ;;  %s1299_s3 = sshll.u32 %s2332_s8, 4  ;;  %p1283_p11 = scmp.ne.s32.totalorder %s2332_s8, 3 }
 0x7dc   : > { %1482 = vset.pattern.permute.xlu0 %v1813_v45  ;;  %923 = vmatprep.subr.mxu0 %v890_v43  ;;  %v888_v46 = vld [vmem:[%s2166_s6 + $0xe8] sm:$0xff]  ;;  %v887_v47 = vld [vmem:[%s2166_s6 + $0xe0] sm:$0xff]  ;;  %v886_v48 = vld [vmem:[%s2166_s6 + $0xd8] sm:$0xff]  ;;  %s842_s19 = scalar_lea.vmem [#allocation2], %s1299_s3  ;;  %s2633_s5 = sld [smem:[#allocation46_spill]] (!%p1283_p11) }
 0x7dd   : > { %850 = vperm.xlu0 %1482, %v847_v42   ;;  %924 = vmatpush1.msra.mxu0 %v889_v44  ;;  %v885_v49 = vld [vmem:[%s2166_s6 + $0xd0] sm:$0xff]  ;;  %v884_v50 = vld [vmem:[%s2166_s6 + $0xc8] sm:$0xff]  ;;  %v883_v51 = vld [vmem:[%s2166_s6 + $0xc0] sm:$0xff] }
 0x7de   : > { %925 = vmatprep.subr.mxu0 %v888_v46  ;;  %v882_v52 = vld [vmem:[%s2166_s6 + $0xb8] sm:$0xff]  ;;  %v881_v53 = vld [vmem:[%s2166_s6 + $0xb0] sm:$0xff]  ;;  %v880_v54 = vld [vmem:[%s2166_s6 + $0xa8] sm:$0xff] }
 0x7df   : > { %926 = vmatpush1.msra.mxu0 %v887_v47  ;;  %v879_v55 = vld [vmem:[%s2166_s6 + $0xa0] sm:$0xff]  ;;  %v878_v56 = vld [vmem:[%s2166_s6 + $0x98] sm:$0xff]  ;;  %v877_v57 = vld [vmem:[%s2166_s6 + $0x90] sm:$0xff] }
 0x7e0   : > { %927 = vmatprep.subr.mxu0 %v886_v48  ;;  %v876_v58 = vld [vmem:[%s2166_s6 + $0x88] sm:$0xff]  ;;  %v875_v59 = vld [vmem:[%s2166_s6 + $0x80] sm:$0xff]  ;;  %v874_v60 = vld [vmem:[%s2166_s6 + $0x78] sm:$0xff] }
 0x7e1   : > { %928 = vmatpush1.msra.mxu0 %v885_v49  ;;  %v873_v61 = vld [vmem:[%s2166_s6 + $0x70] sm:$0xff]  ;;  %v872_v62 = vld [vmem:[%s2166_s6 + $0x68] sm:$0xff]  ;;  %v871_v63 = vld [vmem:[%s2166_s6 + $0x60] sm:$0xff] }
 0x7e2   : > { %929 = vmatprep.subr.mxu0 %v884_v50  ;;  %v870_v0 = vld [vmem:[%s2166_s6 + $0x58] sm:$0xff]  ;;  %v869_v1 = vld [vmem:[%s2166_s6 + $0x50] sm:$0xff]  ;;  %v868_v2 = vld [vmem:[%s2166_s6 + $0x48] sm:$0xff] }
 0x7e3   : > { %930 = vmatpush1.msra.mxu0 %v883_v51  ;;  %v867_v4 = vld [vmem:[%s2166_s6 + $0x40] sm:$0xff]  ;;  %v866_v5 = vld [vmem:[%s2166_s6 + $0x38] sm:$0xff]  ;;  %v865_v6 = vld [vmem:[%s2166_s6 + $0x30] sm:$0xff] }
 0x7e4   : > { %931 = vmatprep.subr.mxu0 %v882_v52  ;;  %v864_v7 = vld [vmem:[%s2166_s6 + $0x28] sm:$0xff]  ;;  %v863_v8 = vld [vmem:[%s2166_s6 + $0x20] sm:$0xff]  ;;  %v862_v9 = vld [vmem:[%s2166_s6 + $0x18] sm:$0xff] }
 0x7e5   : > { %932 = vmatpush1.msra.mxu0 %v881_v53  ;;  %v861_v10 = vld [vmem:[%s2166_s6 + $0x10] sm:$0xff]  ;;  %v860_v11 = vld [vmem:[%s2166_s6 + $0x8] sm:$0xff]  ;;  %v859_v12 = vld [vmem:[%s2166_s6] sm:$0xff] }
 0x7e6   : > { %933 = vmatprep.subr.mxu0 %v880_v54  ;;  %v922_v13 = vld [vmem:[%s2166_s6 + $0x1f8] sm:$0xff]  ;;  %v921_v14 = vld [vmem:[%s2166_s6 + $0x1f0] sm:$0xff]  ;;  %v920_v15 = vld [vmem:[%s2166_s6 + $0x1e8] sm:$0xff] }
 0x7e7   : > { %934 = vmatpush1.msra.mxu0 %v879_v55  ;;  %v919_v16 = vld [vmem:[%s2166_s6 + $0x1e0] sm:$0xff]  ;;  %v918_v17 = vld [vmem:[%s2166_s6 + $0x1d8] sm:$0xff]  ;;  %v917_v18 = vld [vmem:[%s2166_s6 + $0x1d0] sm:$0xff] }
 0x7e8   : > { %935 = vmatprep.subr.mxu0 %v878_v56  ;;  %v916_v20 = vld [vmem:[%s2166_s6 + $0x1c8] sm:$0xff]  ;;  %v915_v21 = vld [vmem:[%s2166_s6 + $0x1c0] sm:$0xff]  ;;  %v914_v22 = vld [vmem:[%s2166_s6 + $0x1b8] sm:$0xff] }
 0x7e9   : > { %936 = vmatpush1.msra.mxu0 %v877_v57  ;;  %v913_v23 = vld [vmem:[%s2166_s6 + $0x1b0] sm:$0xff]  ;;  %v912_v24 = vld [vmem:[%s2166_s6 + $0x1a8] sm:$0xff]  ;;  %v911_v25 = vld [vmem:[%s2166_s6 + $0x1a0] sm:$0xff] }
 0x7ea   : > { %937 = vmatprep.subr.mxu0 %v876_v58  ;;  %v910_v26 = vld [vmem:[%s2166_s6 + $0x198] sm:$0xff]  ;;  %v909_v3 = vld [vmem:[%s2166_s6 + $0x190] sm:$0xff]  ;;  %v908_v27 = vld [vmem:[%s2166_s6 + $0x188] sm:$0xff] }
 0x7eb   : > { %938 = vmatpush1.msra.mxu0 %v875_v59  ;;  %v907_v19 = vld [vmem:[%s2166_s6 + $0x180] sm:$0xff]  ;;  %v906_v28 = vld [vmem:[%s2166_s6 + $0x178] sm:$0xff]  ;;  %v905_v29 = vld [vmem:[%s2166_s6 + $0x170] sm:$0xff] }
 0x7ec   : > { %939 = vmatprep.subr.mxu0 %v874_v60  ;;  %v904_v30 = vld [vmem:[%s2166_s6 + $0x168] sm:$0xff]  ;;  %v903_v31 = vld [vmem:[%s2166_s6 + $0x160] sm:$0xff]  ;;  %v902_v32 = vld [vmem:[%s2166_s6 + $0x158] sm:$0xff] }
 0x7ed   : > { %940 = vmatpush1.msra.mxu0 %v873_v61  ;;  %v901_v33 = vld [vmem:[%s2166_s6 + $0x150] sm:$0xff]  ;;  %v900_v34 = vld [vmem:[%s2166_s6 + $0x148] sm:$0xff]  ;;  %v899_v35 = vld [vmem:[%s2166_s6 + $0x140] sm:$0xff] }
 0x7ee   : > { %941 = vmatprep.subr.mxu0 %v872_v62  ;;  %v898_v36 = vld [vmem:[%s2166_s6 + $0x138] sm:$0xff]  ;;  %v897_v37 = vld [vmem:[%s2166_s6 + $0x130] sm:$0xff]  ;;  %v896_v38 = vld [vmem:[%s2166_s6 + $0x128] sm:$0xff] }
 0x7ef   : > { %942 = vmatpush1.msra.mxu0 %v871_v63  ;;  %v895_v39 = vld [vmem:[%s2166_s6 + $0x120] sm:$0xff]  ;;  %v894_v40 = vld [vmem:[%s2166_s6 + $0x118] sm:$0xff]  ;;  %v893_v41 = vld [vmem:[%s2166_s6 + $0x110] sm:$0xff] }
 0x7f0   : > { %943 = vmatprep.subr.mxu0 %v870_v0  ;;  %v892_v42 = vld [vmem:[%s2166_s6 + $0x108] sm:$0xff]  ;;  %v891_v43 = vld [vmem:[%s2166_s6 + $0x100] sm:$0xff]  ;;  %v858_v51 = vld [vmem:[#allocation5 + $0x8] sm:$0xff] }
 0x7f1   : > { %944 = vmatpush1.msra.mxu0 %v869_v1  ;;  %v843_v44 = vld [vmem:[%s842_s19] sm:$0xff]  ;;  %v844_v45 = vld [vmem:[%s842_s19 + $0x8] sm:$0xff]  ;;  %v857_v49 = vld [vmem:[#allocation5] sm:$0xff] }
 0x7f2   : > { %945 = vmatprep.subr.mxu0 %v868_v2  ;;  %v845_v46 = vand.u32 2147483647, %v843_v44  ;;  %v846_v47 = vand.u32 2147483647, %v844_v45 }
 0x7f3   : > { %946 = vmatpush1.msra.mxu0 %v867_v4 }
 0x7f4   : > { %947 = vmatprep.subr.mxu0 %v866_v5 }
 0x7f5   : > { %948 = vmatpush1.msra.mxu0 %v865_v6 }
 0x7f6   : > { %949 = vmatprep.subr.mxu0 %v864_v7 }
 0x7f7   : > { %950 = vmatpush1.msra.mxu0 %v863_v8 }
 0x7f8   : > { %951 = vmatprep.subr.mxu0 %v862_v9 }
 0x7f9   : > { %952 = vmatpush1.msra.mxu0 %v861_v10 }
 0x7fa   : > { %953 = vmatprep.subr.mxu0 %v860_v11 }
 0x7fb   : > { %954 = vmatpush1.msra.mxu0 %v859_v12 }
 0x7fc   : > { %955 = vmatprep.subr.mxu0 %v922_v13 }
 0x7fd   : > { %956 = vmatpush2.msra.mxu0 %v921_v14 }
 0x7fe   : > { %957 = vmatprep.subr.mxu0 %v920_v15 }
 0x7ff   : > { %958 = vmatpush2.msra.mxu0 %v919_v16 }
 0x800   : > { %959 = vmatprep.subr.mxu0 %v918_v17 }
 0x801   : > { %960 = vmatpush2.msra.mxu0 %v917_v18 }
 0x802   : > { %961 = vmatprep.subr.mxu0 %v916_v20 }
 0x803   : > { %962 = vmatpush2.msra.mxu0 %v915_v21 }
 0x804   : > { %963 = vmatprep.subr.mxu0 %v914_v22 }
 0x805   : > { %964 = vmatpush2.msra.mxu0 %v913_v23 }
 0x806   : > { %965 = vmatprep.subr.mxu0 %v912_v24 }
 0x807   : > { %966 = vmatpush2.msra.mxu0 %v911_v25 }
 0x808   : > { %967 = vmatprep.subr.mxu0 %v910_v26 }
 0x809   : > { %968 = vmatpush2.msra.mxu0 %v909_v3 }
 0x80a   : > { %969 = vmatprep.subr.mxu0 %v908_v27 }
 0x80b   : > { %970 = vmatpush2.msra.mxu0 %v907_v19 }
 0x80c   : > { %971 = vmatprep.subr.mxu0 %v906_v28 }
 0x80d   : > { %972 = vmatpush2.msra.mxu0 %v905_v29 }
 0x80e   : > { %973 = vmatprep.subr.mxu0 %v904_v30 }
 0x80f   : > { %974 = vmatpush2.msra.mxu0 %v903_v31 }
 0x810   : > { %975 = vmatprep.subr.mxu0 %v902_v32 }
 0x811   : > { %976 = vmatpush2.msra.mxu0 %v901_v33 }
 0x812   : > { %977 = vmatprep.subr.mxu0 %v900_v34 }
 0x813   : > { %978 = vmatpush2.msra.mxu0 %v899_v35 }
 0x814   : > { %979 = vmatprep.subr.mxu0 %v898_v36 }
 0x815   : > { %980 = vmatpush2.msra.mxu0 %v897_v37 }
 0x816   : > { %981 = vmatprep.subr.mxu0 %v896_v38 }
 0x817   : > { %982 = vmatpush2.msra.mxu0 %v895_v39 }
 0x818   : > { %983 = vmatprep.subr.mxu0 %v894_v40 }
 0x819   : > { %984 = vmatpush2.msra.mxu0 %v893_v41 }
 0x81a   : > { %985 = vmatprep.subr.mxu0 %v892_v42 }
 0x81b   : > { %986 = vmatpush2.msra.mxu0 %v891_v43 }
 0x858   : > { %v851_v48 = vpop.permute.xlu0 %850 }
 0x859   : > { %vm853_vm1 = vcmp.ge.f32.partialorder %v845_v46, %v851_v48  ;;  %vm854_vm11 = vcmp.ge.f32.partialorder %v846_v47, %v851_v48 }
 0x85a   : > { %1281 = vmatprep.mubr.msk.f32.mxu0 %vm854_vm11, %v844_v45 }
 0x85b   : > { %1282 = vmatmul.mubr.msk.f32.vlgmr.msra.gmra.mxu0 %vm853_vm1, %v843_v44 }
 0x91b   : > { %v989_v50 = vpop.f32.mrf.mxu0 }
 0x91c   : > { %v994_v52 = vadd.f32 %v989_v50, %v857_v49  ;;  %1001 = sbr.rel (%p1283_p11) target bundleno = 2348 (0x92c), region = 84 }
 0x91d   : > { %v991_v53 = vpop.f32.mrf.mxu0 }
 0x91e   : > { %996 = vst [vmem:[#allocation5] sm:$0xff] %v994_v52  ;;  %v995_v54 = vadd.f32 %v991_v53, %v858_v51 }
 0x920   : > { %997 = vst [vmem:[#allocation5 + $0x8] sm:$0xff] %v995_v54 }
 0x921   : > { %v1006_v55 = vlaneseq  ;;  %v1004_v57 = vld [vmem:[%s2633_s5] sm:$0x3] }
 0x923   : > { %v1007_v56 = vshrl.u32 %v1006_v55, 7 }
 0x925   : > { %v1008_v58 = vsub.s32 0, %v1007_v56  ;;  %v1012_v59 = vsub.s32 1, %v1007_v56  ;;  %v1002_v60 = vld [vmem:[#allocation5] sm:$0xff] }
 0x927   : > { %v1003_v61 = vld [vmem:[#allocation5 + $0x8] sm:$0xff]  ;;  %v1009_v62 = vrot.slane %v1004_v57, %v1008_v58  ;;  %v1013_v63 = vrot.slane %v1004_v57, %v1012_v59 }
 0x929   : > { %v1016_v0 = vadd.f32 %v1009_v62, %v1002_v60  ;;  %v1017_v1 = vadd.f32 %v1013_v63, %v1003_v61 }
 0x92b   : > { %1018 = vst [vmem:[%s2177_s23] sm:$0xff] %v1016_v0  ;;  %1019 = vst [vmem:[%s2177_s23 + $0x8] sm:$0xff] %v1017_v1 }
 0x92c PF: > { %s2634_s0 = sld [smem:[#allocation28_spill]]  ;;  %s1044_s25 = sshll.u32 %s2175_s12, 4  ;;  %s2410_s25 = int_to_ptr.vmem [resolvable:$true] %s1044_s25 }
 0x92d   : > { %s2635_s27 = sld [smem:[#allocation29_spill]]  ;;  %s1058_s30 = sshll.u32 %s2177_s23, 4  ;;  %s2422_s30 = int_to_ptr.vmem [resolvable:$true] %s1058_s30 }
 0x92e   : > { %s2636_s3 = sld [smem:[#allocation48_spill]]  ;;  %s2638_s18 = sand.u32 1, %s1741_s22  }
 0x92f   : > { %s2637_s2 = sld [smem:[#allocation47_spill]]  ;;  %s1021_s11 = scalar_lea.sflag [#allocation8], %s2638_s18 }
 0x930   : > { %s1595_s7 = scalar_lea.vmem %s2410_s25, 256  ;;  %p2639_p10 = scmp.ne.s32.totalorder %s2597_s20, 0 }
 0x931   : > { %p1596_p7 = scmp.ne.s32.totalorder %s2410_s25, %s1595_s7 }
 0x932   : > { %p1033_p5 = scmp.lt.s32.totalorder %s2634_s0, 3 }
 0x933   : > { %s1287_s14 = sshll.u32 %s2635_s27, 3  ;;  %s1300_s1 = sshll.u32 %s2635_s27, 8 }
 0x934   : > { %s2678_s0 = smov (!%p1033_p5, %s2634_s0), 3  ;;  %s2416_s19 = scalar_lea.hbm %s2636_s3, %s1300_s1 }
 0x935   : > { %s1286_s16 = sshll.u32 %s2678_s0, 1  ;;  %p1597_p1 = pnand %p1596_p7, %p2639_p10 }
 0x936   : > { %s1040_s4 = sadd.s32 %s1287_s14, %s1286_s16  ;;  %s1814_s0 = smov [#allocation14]  }
 0x937   : > { %s1288_s6 = sshll.u32 %s1040_s4, 7  ;;  %p1598_p6 = pneg %p1597_p1 }
 0x938   : > { %s1042_s12 = scalar_lea.hbm %s2637_s2, %s1288_s6  ;;  %s1599_s27 = sshll.u32 %s1814_s0, 4  ;;  %s1600_s27 = int_to_ptr.vmem [resolvable:$false] %s1599_s27 }
 0x939   : > { %s1601_s14 = scalar_lea.vmem %s1600_s27, 512  ;;  %p1602_p13 = scmp.lt.s32.totalorder %s2410_s25, %s1600_s27 }
 0x93a   : > { %p1603_p8 = scmp.lt.s32.totalorder %s1601_s14, %s1595_s7 }
 0x93c   : > { %p1604_p9 = por %p1603_p8, %p1602_p13 }
 0x93e   : > { %p1605_p4 = pnand %p1604_p9, %p1598_p6 }
 0x940   : > { %1608 = shalt.err (!%p1605_p4)
}
 0x941   : > { %s1609_s24 = scalar_lea.hbm %s1042_s12, 256  ;;  %s1613_s16 = scalar_lea.hbm %s2637_s2, 2048 }
 0x942   : > { %p1610_p0 = scmp.ne.s32.totalorder %s1042_s12, %s1609_s24  ;;  %p1614_p12 = scmp.lt.s32.totalorder %s1042_s12, %s2637_s2 }
 0x943   : > { %p1615_p11 = scmp.lt.s32.totalorder %s1613_s16, %s1609_s24 }
 0x944   : > { %p1611_p3 = pnand %p1610_p0, %p2639_p10 }
 0x945   : > { %p1616_p5 = por %p1615_p11, %p1614_p12 }
 0x946   : > { %p1612_p2 = pneg %p1611_p3 }
 0x948   : > { %p1617_p7 = pnand %p1616_p5, %p1612_p2 }
 0x94a   : > { %1620 = shalt.err (!%p1617_p7)
}
 0x94b   : > { %1313 = dma.vmem_to_hbm [thread:$0]  (%p2639_p10), %s2410_s25, 256, %s1042_s12, %s1021_s11  }
 0x94c   : > { %s1026_s7 = scalar_lea.sflag [#allocation16], %s2144_s17  ;;  %s1621_s9 = scalar_lea.vmem %s2422_s30, 256 }
 0x94d   : > { %p1622_p1 = scmp.ne.s32.totalorder %s2422_s30, %s1621_s9  ;;  %p2640_p6 = scmp.ne.s32.totalorder %s2599_s15, 0 }
 0x94e   : > { %s1815_s8 = smov [#allocation15]  }
 0x94f   : > { %p1623_p13 = pnand %p1622_p1, %p2640_p6  ;;  %s1625_s6 = sshll.u32 %s1815_s8, 4  ;;  %s1626_s6 = int_to_ptr.vmem [resolvable:$false] %s1625_s6 }
 0x950   : > { %s1627_s5 = scalar_lea.vmem %s1626_s6, 512  ;;  %p1628_p9 = scmp.lt.s32.totalorder %s2422_s30, %s1626_s6 }
 0x951   : > { %p1624_p8 = pneg %p1623_p13  ;;  %p1629_p4 = scmp.lt.s32.totalorder %s1627_s5, %s1621_s9 }
 0x953   : > { %p1630_p0 = por %p1629_p4, %p1628_p9 }
 0x955   : > { %p1631_p3 = pnand %p1630_p0, %p1624_p8 }
 0x957   : > { %1634 = shalt.err (!%p1631_p3)
}
 0x958   : > { %s1635_s11 = scalar_lea.hbm %s2416_s19, 256  ;;  %s1639_s25 = scalar_lea.hbm %s2636_s3, 512 }
 0x959   : > { %p1636_p10 = scmp.ne.s32.totalorder %s2416_s19, %s1635_s11  ;;  %p1640_p11 = scmp.lt.s32.totalorder %s2416_s19, %s2636_s3 }
 0x95a   : > { %p1641_p5 = scmp.lt.s32.totalorder %s1639_s25, %s1635_s11 }
 0x95b   : > { %p1637_p2 = pnand %p1636_p10, %p2640_p6 }
 0x95c   : > { %p1642_p7 = por %p1641_p5, %p1640_p11 }
 0x95d   : > { %p1638_p12 = pneg %p1637_p2 }
 0x95f   : > { %p1643_p1 = pnand %p1642_p7, %p1638_p12 }
 0x961   : > { %1646 = shalt.err (!%p1643_p1)
}
 0x962   : > { %1314 = dma.vmem_to_hbm [thread:$0]  (%p2640_p6), %s2422_s30, 256, %s2416_s19, %s1026_s7  }
 0x963 PF: > { %s2641_s27 = sld [smem:[#allocation40_spill]]  ;;  %p1338_p13 = scmp.ge.s32.totalorder %s1801_s13, 2 }
 0x964   : > { %s1070_s14 = sand.u32 1, %s1737_s21  }
 0x965   : > { %s1071_s24 = scalar_lea.sflag [#allocation8], %s1070_s14 }
 0x969   : > { %p2642_p8 = scmp.ne.s32.totalorder %s2641_s27, 0 }
 0x96b   : > { %p1331_p9 = pnand %p1338_p13, %p2642_p8 }
 0x96d   : > { %p1332_p4 = pneg %p1331_p9 }
 0x96f   : > { %1728 = dma.done.wait (%p1332_p4), %s1071_s24, 256  }
 0x970   : > { %1730 = vsyncadd (%p1332_p4), %s1071_s24, 4294967040  ;;  %s2643_s18 = sld [smem:[#allocation25_spill]] }
 0x971   : > { %s2644_s23 = sld [smem:[#allocation41_spill]] }
 0x976   : > { %s1079_s16 = sand.u32 1, %s2643_s18  }
 0x977   : > { %p2645_p0 = scmp.ne.s32.totalorder %s2644_s23, 0  ;;  %s1080_s15 = scalar_lea.sflag [#allocation16], %s1079_s16 }
 0x979   : > { %p1334_p3 = pnand %p1338_p13, %p2645_p0 }
 0x97b   : > { %p1335_p10 = pneg %p1334_p3 }
 0x97d   : > { %1732 = dma.done.wait (%p1335_p10), %s1080_s15, 256  }
 0x97e   : > { %1734 = vsyncadd (%p1335_p10), %s1080_s15, 4294967040  ;;  %s32_s13 = sadd.s32 1, %s1801_s13   ;;  %s2647_s30 = sld [smem:[#allocation22_spill]] }
 0x97f   : > { %p2471_p6 = scmp.ge.s32.totalorder %s32_s13, 18   ;;  %s2648_s23 = sld [smem:[#allocation39_spill]] }
 0x980   : > { %s2649_s24 = sld [smem:[#allocation24_spill]]  ;;  %s2658_s21 = smov %s1741_s22 }
 0x981   : > { %s2650_s1 = sld [smem:[#allocation38_spill]]  ;;  %s2660_s25 = smov %s1757_s26 }
 0x982   : > { %s2651_s4 = sld [smem:[#allocation26_spill]]  ;;  %s2661_s26 = smov %s2121_s10 }
 0x983   : > { %s2652_s7 = sld [smem:[#allocation27_spill]]  ;;  %s2662_s27 = smov %s1765_s28 }
 0x984   : > { %s2653_s8 = sld [smem:[#allocation37_spill]]  ;;  %s2659_s22 = smov %s2647_s30 }
 0x985   : > { %s2654_s9 = sld [smem:[#allocation30_spill]]  ;;  %s2663_s28 = smov %s1769_s29 }
 0x986   : > { %s2655_s6 = sld [smem:[#allocation31_spill]] }
 0x987   : > { %s2656_s11 = sld [smem:[#allocation33_spill]]  ;;  %s2664_s29 = smov %s2650_s1 }
 0x988   : > { %s2657_s12 = sld [smem:[#allocation35_spill]]  ;;  %s2665_s30 = smov %s2651_s4 }
 0x989   :  { %31 = sbr.rel (!%p2471_p6) target bundleno = 26 (0x1a), region = 169 }
 0x98c   : > { %s2666_s10 = smov %s2655_s6 }
 0x98e   :  { %1085 = vsyncpa [#allocation7], 1 }
 0x98f   :  { %1087 = vsyncpa [#allocation7 + $0x1], 1 }
 0x990   :  { %1088 = vsyncpa [#allocation10], 1 }
 0x991   :  { %1090 = vsyncpa [#allocation10 + $0x1], 1 }
 0x992   :  { %1091 = vsyncpa [#allocation13], 1 }
 0x993   :  { %1093 = vsyncpa [#allocation13 + $0x1], 1 }
 0x994   :  { %1094 = vsyncpa [#allocation8], 1 }
 0x995   :  { %1096 = vsyncpa [#allocation8 + $0x1], 1 }
 0x996   :  { %1097 = vsyncpa [#allocation16], 1 }
 0x997   :  { %1099 = vsyncpa [#allocation16 + $0x1], 1 }

// kernel: usae_forward.1
= control target key start
LH: loop header
LB: loop body
LE: loop exit
PB: predicated region body
PF: predicated region fallthrough
CT: control target
= control target key end

     0   :  { %s2487_s0 = inlined_call_operand.hbm [shape: f32[16,256], index: 0, kind: input, shape index: {}]   ;;  %s2488_s1 = inlined_call_operand.hbm [shape: f32[256,1024], index: 1, kind: input, shape index: {}]   ;;  %s2489_s2 = inlined_call_operand.hbm [shape: f32[1,1024], index: 2, kind: input, shape index: {}]   ;;  %s2490_s3 = inlined_call_operand.hbm [shape: f32[1024,256], index: 3, kind: input, shape index: {}]   ;;  %s2491_s4 = inlined_call_operand.vmem [shape: f32[1,256], index: 4, kind: input, shape index: {}]   ;;  %s2492_s5 = inlined_call_operand.hbm [shape: f32[16,1024], index: 5, kind: output, shape index: {0}]   ;;  %s2493_s6 = inlined_call_operand.hbm [shape: f32[16,256], index: 6, kind: output, shape index: {1}]  }
   0x1   :  { %2527 = sst [smem:[#allocation42_spill]] %s2487_s0 }
   0x2   :  { %2528 = sst [smem:[#allocation43_spill]] %s2488_s1 }
   0x3   :  { %2529 = sst [smem:[#allocation44_spill]] %s2489_s2 }
   0x4   :  { %2530 = sst [smem:[#allocation45_spill]] %s2490_s3 }
   0x5   :  { %2531 = sst [smem:[#allocation46_spill]] %s2491_s4 }
   0x6   :  { %2532 = sst [smem:[#allocation47_spill]] %s2492_s5 }
   0x7   :  { %2533 = sst [smem:[#allocation48_spill]] %s2493_s6 }
   0x8   :  { %12 = vsyncpa [#allocation7], 0 }
   0x9   :  { %14 = vsyncpa [#allocation7 + $0x1], 0 }
   0xa   :  { %15 = vsyncpa [#allocation10], 0 }
   0xb   :  { %17 = vsyncpa [#allocation10 + $0x1], 0 }
   0xc   :  { %18 = vsyncpa [#allocation13], 0 }
   0xd   :  { %20 = vsyncpa [#allocation13 + $0x1], 0 }
   0xe   :  { %21 = vsyncpa [#allocation8], 0 }
   0xf   :  { %23 = vsyncpa [#allocation8 + $0x1], 0 }
  0x10   :  { %24 = vsyncpa [#allocation16], 0 }
  0x11   :  { %26 = vsyncpa [#allocation16 + $0x1], 0  ;;  %s1825_s21 = smov 0   ;;  %s1827_s22 = smov 0  }
  0x12   :  { %s1829_s23 = smov 0   ;;  %s1831_s24 = smov 0  }
  0x13   :  { %s1833_s25 = smov 0   ;;  %s1835_s26 = smov 0  }
  0x14   :  { %s1837_s27 = smov 0   ;;  %s1839_s28 = smov 0  }
  0x15   :  { %s1841_s29 = smov 0   ;;  %s1843_s30 = smov 0  }
  0x16   :  { %s1845_s7 = smov 0   ;;  %s1847_s8 = smov 0  }
  0x17   :  { %s1849_s9 = smov 0   ;;  %s1851_s10 = smov 0  }
  0x18   :  { %s1853_s11 = smov 0   ;;  %s1855_s12 = smov 0  }
  0x19   :  { %s1857_s13 = smov 0  }
  0x1a LB: > { %2534 = sst [smem:[#allocation22_spill]] %s1719_s23  ;;  %p2503_p0 = scmp.eq.s32.totalorder %s1775_s13, 0  ;;  %s1775_s13 = sphi %s1857_s13, %s32_s13   ;;  %s1771_s12 = sphi %s1855_s12, %s2617_s12   ;;  %s1767_s11 = sphi %s1853_s11, %s2616_s11   ;;  %s1763_s10 = sphi %s1851_s10, %s2627_s10   ;;  %s1759_s9 = sphi %s1849_s9, %s2626_s9   ;;  %s1755_s8 = sphi %s1847_s8, %s2613_s8   ;;  %s1751_s7 = sphi %s1845_s7, %s2612_s7   ;;  %s1747_s30 = sphi %s1843_s30, %s2611_s30   ;;  %s1743_s29 = sphi %s1841_s29, %s2625_s29   ;;  %s1739_s28 = sphi %s1839_s28, %s2624_s28   ;;  %s1735_s27 = sphi %s1837_s27, %s2623_s27   ;;  %s1731_s26 = sphi %s1835_s26, %s2622_s26   ;;  %s1727_s25 = sphi %s1833_s25, %s2621_s25   ;;  %s1723_s24 = sphi %s1831_s24, %s2609_s24   ;;  %s1719_s23 = sphi %s1829_s23, %s2608_s23   ;;  %s1715_s22 = sphi %s1827_s22, %s2619_s22   ;;  %s1711_s21 = sphi %s1825_s21, %s2618_s21  }
  0x1b   : > { %2535 = sst [smem:[#allocation23_spill]] %s1723_s24  ;;  %p74_p1 = scmp.lt.s32.totalorder %s1767_s11, 3 }
  0x1c   : > { %2536 = sst [smem:[#allocation24_spill]] %s1727_s25  ;;  %p88_p2 = scmp.ne.s32.totalorder %s1743_s29, %s1739_s28 }
  0x1d   : > { %2537 = sst [smem:[#allocation25_spill]] %s1747_s30  ;;  %p94_p3 = scmp.ne.s32.totalorder %s1739_s28, %s1735_s27 }
  0x1e   : > { %2538 = sst [smem:[#allocation26_spill]] %s1751_s7  ;;  %p90_p4 = por %p88_p2, %p2503_p0 }
  0x1f   : > { %2539 = sst [smem:[#allocation27_spill]] %s1755_s8  ;;  %p2512_p5 = scmp.lt.s32.totalorder %s1775_s13, 16 }
  0x20   : > { %2540 = sst [smem:[#allocation28_spill]] %s1759_s9  ;;  %s281_s15 = sand.u32 1, %s1775_s13  }
  0x21   : > { %2541 = sst [smem:[#allocation29_spill]] %s1763_s10  ;;  %s2499_s16 = sand.u32 1, %s1743_s29  }
  0x22   : > { %2542 = sst [smem:[#allocation30_spill]] %s1767_s11  ;;  %s1231_s17 = sshll.u32 %s2499_s16, 9 }
  0x23   : > { %2543 = sst [smem:[#allocation31_spill]] %s1771_s12  ;;  %s285_s6 = scalar_lea.vmem [#allocation9], %s1231_s17 }
  0x24   : > { %s1917_s14 = scalar_select %p74_p1, %s1767_s11, 3 }
  0x25   : > { %s2544_s1 = sld [smem:[#allocation43_spill]]  ;;  %s294_s10 = sshll.u32 %s285_s6, 4  ;;  %s295_s10 = int_to_ptr.vmem [resolvable:$true] %s294_s10 }
  0x26   : > { %s1272_s18 = sshll.u32 %s1917_s14, 8  ;;  %p1932_p6 = pnand %p2512_p5, %p90_p4 }
  0x27   : > { %p1242_p7 = scmp.ge.s32.totalorder %s1775_s13, 1  ;;  %s1937_s9 = scalar_lea.sflag [#allocation10], %s281_s15 }
  0x28   : > { %p2509_p8 = pneg %p1932_p6  ;;  %s1470_s16 = scalar_lea.vmem %s295_s10, 8192 }
  0x29   : > { %p1471_p9 = scmp.ne.s32.totalorder %s295_s10, %s1470_s16  ;;  %s1777_s6 = smov [#allocation9]  }
  0x2a   : > { %s1475_s17 = sshll.u32 %s1777_s6, 4  ;;  %s1476_s17 = int_to_ptr.vmem [resolvable:$false] %s1475_s17 }
  0x2b   : > { %s293_s5 = scalar_lea.hbm %s2544_s1, %s1272_s18  ;;  %p1473_p10 = pnand %p1471_p9, %p2509_p8 }
  0x2c   : > { %s1477_s18 = scalar_lea.vmem %s1476_s17, 16384  ;;  %p1478_p12 = scmp.lt.s32.totalorder %s295_s10, %s1476_s17 }
  0x2d   : > { %p1474_p11 = pneg %p1473_p10  ;;  %p1479_p13 = scmp.lt.s32.totalorder %s1477_s18, %s1470_s16 }
  0x2f   : > { %p1480_p1 = por %p1479_p13, %p1478_p12 }
  0x31   : > { %p1481_p2 = pnand %p1480_p1, %p1474_p11 }
  0x33   : > { %1484 = shalt.err (!%p1481_p2)
}
  0x34   : > { %s1778_s19 = smov 1024   ;;  %s2500_s15 = smov 256  }
  0x35   : > { %s2501_s16 = smov 16   ;;  %p348_p4 = scmp.lt.s32.totalorder %s1775_s13, 17 }
  0x36   : > { %1297 = dma.hbm_to_vmem [thread:$0]  (!%p1932_p6), %s293_s5, 8192, %s295_s10, %s1937_s9, %s1778_s19, %s2500_s15, %s2501_s16  }
  0x37   : > { %p1952_p9 = pnand %p1242_p7, %p348_p4  ;;  %s1957_s6 = sadd.s32 4294967295, %s1775_s13  }
  0x38   : > { %s41_s18 = sadd.s32 1, %s1767_s11  ;;  %s44_s1 = sadd.s32 1, %s1771_s12 }
  0x39   : > { %s2546_s20 = scalar_select %p1952_p9, 1, 0 }
  0x3a   : > { %p42_p10 = scmp.ge.s32.totalorder %s41_s18, 8  ;;  %s51_s5 = sadd.s32 1, %s1755_s8 }
  0x3b   : > { %2547 = sst [smem:[#allocation32_spill]] %s2546_s20  ;;  %p58_p11 = scmp.ne.s32.totalorder %s1755_s8, %s1751_s7 }
  0x3c   : > { %p2513_p7 = scmp.ne.s32.totalorder %s1751_s7, %s1747_s30  ;;  %s2629_s18 = smov (%p42_p10, %s41_s18), 0 }
  0x3d   : > { %2548 = sst [smem:[#allocation33_spill]] %s2629_s18  ;;  %s2631_s1 = smov (!%p42_p10, %s44_s1), %s1771_s12 }
  0x3e   : > { %p1975_p12 = por %p2503_p0, %p58_p11  ;;  %p2507_p13 = scmp.eq.s32.totalorder %s1957_s6, 0 }
  0x3f   : > { %p46_p1 = scmp.ge.s32.totalorder %s2631_s1, 2  ;;  %p76_p2 = scmp.lt.s32.totalorder %s2629_s18, 3 }
  0x40   : > { %p1986_p4 = por %p2507_p13, %p2513_p7  ;;  %s81_s15 = sadd.s32 1, %s1743_s29 }
  0x41   : > { %s2633_s1 = smov (%p46_p1, %s2631_s1), 0  ;;  %p2001_p10 = por %p94_p3, %p2507_p13 }
  0x42   : > { %s2550_s19 = scalar_select %p1986_p4, 1, 0 }
  0x43   : > { %2552 = sst [smem:[#allocation35_spill]] %s2633_s1  ;;  %s48_s17 = ssub.s32 %s1771_s12, %s2633_s1 }
  0x44   : > { %2551 = sst [smem:[#allocation34_spill]] %s2550_s19  ;;  %p49_p0 = scmp.eq.s32.totalorder %s48_s17, 0 }
  0x45   : > { %s77_s16 = scalar_select %p76_p2, %s2629_s18, 3 }
  0x46   : > { %s2553_s20 = scalar_select %p2001_p10, 1, 0 }
  0x47   : > { %s78_s19 = ssub.s32 %s1917_s14, %s77_s16  ;;  %s196_s27 = sadd.s32 1, %s1719_s23 }
  0x48   : > { %2554 = sst [smem:[#allocation36_spill]] %s2553_s20  ;;  %p79_p1 = scmp.eq.s32.totalorder %s78_s19, 0 }
  0x49   : > { %s193_s3 = sor.u32 %s78_s19, %s48_s17  ;;  %p206_p3 = scmp.ne.s32.totalorder %s1719_s23, %s1715_s22 }
  0x4a   : > { %s2007_s24 = scalar_select %p49_p0, %s1755_s8, %s51_s5  }
  0x4b   : > { %s2010_s25 = scalar_select %p79_p1, %s1743_s29, %s81_s15  }
  0x4c   : > { %2555 = sst [smem:[#allocation37_spill]] %s2007_s24  ;;  %p194_p2 = scmp.eq.s32.totalorder %s193_s3, 0 }
  0x4d   : > { %2556 = sst [smem:[#allocation38_spill]] %s2010_s25  ;;  %p207_p13 = scmp.eq.s32.totalorder %s1957_s6, 15 }
  0x4e   : > { %s2017_s1 = scalar_select %p194_p2, %s1719_s23, %s196_s27  }
  0x4f   : > { %p2019_p8 = por %p207_p13, %p206_p3  ;;  %p212_p5 = scmp.ne.s32.totalorder %s1715_s22, %s1711_s21 }
  0x50   : > { %2557 = sst [smem:[#allocation39_spill]] %s2017_s1  ;;  %s2559_s16 = sadd.s32 4294967294, %s1775_s13  }
  0x51   : > { %s2558_s20 = scalar_select %p2019_p8, 1, 0 }
  0x52   : > { %p213_p7 = scmp.eq.s32.totalorder %s2559_s16, 15  ;;  %p2030_p0 = por %p207_p13, %p58_p11 }
  0x53   : > { %s262_s3 = sand.u32 1, %s1755_s8   ;;  %s1271_s17 = sshll.u32 %s1771_s12, 8 }
  0x54   : > { %s2560_s15 = scalar_select %p2030_p0, 1, 0 }
  0x55   : > { %p2036_p1 = por %p213_p7, %p212_p5  ;;  %p2563_p2 = scmp.ne.s32.totalorder %s1751_s7, %s1747_s30 }
  0x56   : > { %s1228_s27 = sshll.u32 %s262_s3, 4  ;;  %s2566_s0 = sld [smem:[#allocation42_spill]] }
  0x57   : > { %s2561_s5 = scalar_select %p2036_p1, 1, 0 }
  0x58   : > { %p2043_p10 = por %p213_p7, %p2563_p2  ;;  %s266_s1 = scalar_lea.vmem [#allocation6], %s1228_s27 }
  0x59   : > { %2562 = sst [smem:[#allocation40_spill]] %s2561_s5  ;;  %s274_s23 = sshll.u32 %s266_s1, 4  ;;  %s275_s23 = int_to_ptr.vmem [resolvable:$true] %s274_s23 }
  0x5a   : > { %s2564_s19 = scalar_select %p2043_p10, 1, 0 }
  0x5b   : > { %p2567_p11 = scmp.lt.s32.totalorder %s1775_s13, 16  ;;  %s2569_s8 = sand.u32 1, %s1743_s29  }
  0x5c   : > { %2565 = sst [smem:[#allocation41_spill]] %s2564_s19  ;;  %s272_s16 = scalar_lea.hbm %s2566_s0, %s1271_s17 }
  0x5d   : > { %p2054_p13 = pnand %p2567_p11, %p1975_p12  ;;  %s1234_s30 = sshll.u32 %s2569_s8, 1 }
  0x5e   : > { %s263_s5 = scalar_lea.sflag [#allocation7], %s262_s3  ;;  %s1498_s19 = scalar_lea.vmem %s275_s23, 256 }
  0x5f   : > { %p1487_p5 = pneg %p2054_p13  ;;  %p1499_p7 = scmp.ne.s32.totalorder %s275_s23, %s1498_s19 }
  0x60   : > { %s1781_s24 = smov [#allocation6]  }
  0x61   : > { %p1501_p3 = pnand %p1499_p7, %p1487_p5  ;;  %s1503_s25 = sshll.u32 %s1781_s24, 4  ;;  %s1504_s25 = int_to_ptr.vmem [resolvable:$false] %s1503_s25 }
  0x62   : > { %s1505_s1 = scalar_lea.vmem %s1504_s25, 512  ;;  %p1506_p10 = scmp.lt.s32.totalorder %s275_s23, %s1504_s25 }
  0x63   : > { %p1502_p2 = pneg %p1501_p3  ;;  %p1507_p12 = scmp.lt.s32.totalorder %s1505_s1, %s1498_s19 }
  0x65   : > { %p1508_p11 = por %p1507_p12, %p1506_p10 }
  0x67   : > { %p1509_p1 = pnand %p1508_p11, %p1502_p2 }
  0x69   : > { %1512 = shalt.err (!%p1509_p1)
}
  0x6a   : > { %1294 = dma.hbm_to_vmem [thread:$0]  (!%p2054_p13), %s272_s16, 256, %s275_s23, %s263_s5  }
  0x6b   : > { %s1273_s8 = sshll.u32 %s1917_s14, 5  ;;  %s308_s10 = scalar_lea.vmem [#allocation11], %s1234_s30 }
  0x6c   : > { %s318_s3 = sshll.u32 %s308_s10, 4  ;;  %s2570_s2 = sld [smem:[#allocation44_spill]]  ;;  %s319_s3 = int_to_ptr.vmem [resolvable:$true] %s318_s3 }
  0x6d   : > { %s1526_s24 = scalar_lea.vmem %s319_s3, 32  ;;  %p2571_p7 = pneg %p1932_p6 }
  0x6e   : > { %p1527_p5 = scmp.ne.s32.totalorder %s319_s3, %s1526_s24  ;;  %s1782_s19 = smov [#allocation11]  }
  0x6f   : > { %s1531_s25 = sshll.u32 %s1782_s19, 4  ;;  %s1532_s25 = int_to_ptr.vmem [resolvable:$false] %s1531_s25 }
  0x70   : > { %p1529_p10 = pnand %p1527_p5, %p2571_p7  ;;  %s1533_s12 = scalar_lea.vmem %s1532_s25, 64 }
  0x71   : > { %p1534_p1 = scmp.lt.s32.totalorder %s319_s3, %s1532_s25  ;;  %p1535_p13 = scmp.lt.s32.totalorder %s1533_s12, %s1526_s24 }
  0x72   : > { %s316_s0 = scalar_lea.hbm %s2570_s2, %s1273_s8  ;;  %p1530_p3 = pneg %p1529_p10 }
  0x73   : > { %p1536_p2 = por %p1535_p13, %p1534_p1 }
  0x75   : > { %p1537_p12 = pnand %p1536_p2, %p1530_p3 }
  0x77   : > { %1540 = shalt.err (!%p1537_p12)
}
  0x78   : > { %s2572_s23 = sld [smem:[#allocation24_spill]]  ;;  %s1224_s14 = sadd.s32 4294967292, %s1767_s11 }
  0x79   : > { %s2573_s30 = sld [smem:[#allocation23_spill]]  ;;  %s1225_s5 = sadd.s32 4294967292, %s2629_s18 }
  0x7a   : > { %1300 = dma.hbm_to_vmem [thread:$0]  (!%p1932_p6), %s316_s0, 32, %s319_s3, %s1937_s9  }
  0x7b   : > { %p135_p11 = scmp.gt.s32.totalorder %s1224_s14, 0  ;;  %p138_p5 = scmp.gt.s32.totalorder %s1225_s5, 0 }
  0x7c   : > { %s143_s16 = sadd.s32 1, %s1731_s26  ;;  %p2574_p10 = scmp.eq.s32.totalorder %s1775_s13, 0 }
  0x7d   : > { %s2635_s14 = smov (!%p135_p11, %s1224_s14), 0  ;;  %s2637_s5 = smov (!%p138_p5, %s1225_s5), 0 }
  0x7e   : > { %p150_p7 = scmp.ne.s32.totalorder %s1731_s26, %s2572_s23  ;;  %s140_s1 = ssub.s32 %s2635_s14, %s2637_s5 }
  0x7f   : > { %p156_p1 = scmp.ne.s32.totalorder %s2572_s23, %s2573_s30  ;;  %s325_s8 = sand.u32 1, %s1731_s26  }
  0x80   : > { %p2081_p3 = por %p150_p7, %p2574_p10  ;;  %p141_p6 = scmp.eq.s32.totalorder %s140_s1, 0 }
  0x81   : > { %p2576_p13 = scmp.eq.s32.totalorder %s1957_s6, 0  ;;  %s1237_s9 = sshll.u32 %s325_s8, 9 }
  0x82   : > { %s2095_s10 = scalar_select %p141_p6, %s1731_s26, %s143_s16  }
  0x83   : > { %p2090_p2 = por %p156_p1, %p2576_p13  ;;  %s1275_s3 = sshll.u32 %s2635_s14, 13 }
  0x84   : > { %s2578_s24 = sld [smem:[#allocation45_spill]]  ;;  %s329_s25 = scalar_lea.vmem [#allocation12], %s1237_s9 }
  0x85   : > { %s340_s12 = sshll.u32 %s329_s25, 4  ;;  %p2579_p12 = scmp.lt.s32.totalorder %s1775_s13, 16  ;;  %s341_s12 = int_to_ptr.vmem [resolvable:$true] %s340_s12 }
  0x86   : > { %s326_s30 = scalar_lea.sflag [#allocation13], %s325_s8  ;;  %s1554_s5 = scalar_lea.vmem %s341_s12, 8192 }
  0x87   : > { %p2104_p11 = pnand %p2579_p12, %p2081_p3  ;;  %p1555_p7 = scmp.ne.s32.totalorder %s341_s12, %s1554_s5 }
  0x88   : > { %s1783_s14 = smov [#allocation12]  }
  0x89   : > { %p1543_p5 = pneg %p2104_p11  ;;  %s1559_s16 = sshll.u32 %s1783_s14, 4  ;;  %s1560_s16 = int_to_ptr.vmem [resolvable:$false] %s1559_s16 }
  0x8a   : > { %s339_s19 = scalar_lea.hbm %s2578_s24, %s1275_s3  ;;  %s1561_s1 = scalar_lea.vmem %s1560_s16, 16384 }
  0x8b   : > { %p1557_p10 = pnand %p1555_p7, %p1543_p5  ;;  %p1562_p6 = scmp.lt.s32.totalorder %s341_s12, %s1560_s16 }
  0x8c   : > { %p1563_p13 = scmp.lt.s32.totalorder %s1561_s1, %s1554_s5 }
  0x8d   : > { %p1558_p1 = pneg %p1557_p10 }
  0x8e   : > { %p1564_p0 = por %p1563_p13, %p1562_p6 }
  0x90   : > { %p1565_p8 = pnand %p1564_p0, %p1558_p1 }
  0x92   : > { %1568 = shalt.err (!%p1565_p8)
}
  0x93   : > { %s2581_s4 = smov 16   ;;  %s2582_s9 = smov 256  }
  0x94   : > { %1303 = dma.hbm_to_vmem [thread:$0]  (!%p2104_p11), %s339_s19, 8192, %s341_s12, %s326_s30, %s2582_s9, %s2582_s9, %s2581_s4  }
  0x95   : > { %352 = sbr.rel (%p1952_p9) target bundleno = 2195 (0x893), region = 40  ;;  %s2118_s17 = sand.u32 (!%p1952_p9), 1, %s1751_s7  }
  0x96   : > { %s1243_s27 = sshll.u32 (!%p1952_p9), %s2118_s17, 4  ;;  %s355_s24 = scalar_lea.sflag (!%p1952_p9), [#allocation7], %s2118_s17 }
  0x97   : > { %s2122_s25 = scalar_lea.vmem (!%p1952_p9), [#allocation6], %s1243_s27 }
  0x9a   : > { %1690 = dma.done.wait (%p1986_p4), %s355_s24, 256  }
  0x9b   : > { %1692 = vsyncadd (%p1986_p4), %s355_s24, 4294967040  ;;  %s2585_s19 = sld [smem:[#allocation36_spill]]  ;;  %s363_s12 = sand.u32 1, %s1957_s6  }
  0x9c   : > { %s365_s23 = sand.u32 1, %s1739_s28   ;;  %s364_s5 = scalar_lea.sflag [#allocation10], %s363_s12 }
  0x9d   : > { %s1244_s30 = sshll.u32 %s365_s23, 9 }
  0x9e   : > { %s2130_s14 = scalar_lea.vmem [#allocation9], %s1244_s30 }
  0xa1   : > { %p2586_p8 = scmp.ne.s32.totalorder %s2585_s19, 0 }
  0xa3   : > { %1694 = dma.done.wait (%p2586_p8), %s364_s5, 8224  }
  0xa4   : > { %1696 = vsyncadd (%p2586_p8), %s364_s5, 4294959072  ;;  %s2587_s16 = sld [smem:[#allocation24_spill]]  ;;  %s2136_s1 = sshll.u32 %s365_s23, 1 }
  0xa5   : > { %s376_s8 = scalar_lea.vmem [#allocation11], %s2136_s1 }
  0xaa   : > { %s381_s4 = sand.u32 1, %s2587_s16  }
  0xab   : > { %s1246_s9 = sshll.u32 %s381_s4, 9  ;;  %s382_s3 = scalar_lea.sflag [#allocation13], %s381_s4 }
  0xac   : > { %s2140_s6 = scalar_lea.vmem [#allocation12], %s1246_s9 }
  0xad   : > { %1698 = dma.done.wait (%p2090_p2), %s382_s3, 8192  }
  0xae   : > { %1700 = vsyncadd (%p2090_p2), %s382_s3, 4294959104  ;;  %s2523_s24 = sand.u32 1, %s1715_s22   ;;  %s2151_s23 = scalar_lea.vmem [#allocation15], %s1243_s27 }
  0xaf   : > { %s1247_s19 = sshll.u32 %s2523_s24, 4  ;;  %s2588_s30 = sld [smem:[#allocation28_spill]] }
  0xb0   : > { %s2149_s12 = scalar_lea.vmem [#allocation14], %s1247_s19 }
  0xb5   : > { %p1249_p9 = scmp.ge.s32.totalorder %s2588_s30, 4 }
  0xb6   : > { %s2589_s5 = sld [smem:[#allocation28_spill]] (!%p1249_p9) }
  0xb7   : > { %450 = sbr.rel (%p1249_p9) target bundleno = 1780 (0x6f4), region = 60 }
  0xbc   : > { %p1250_p4 = scmp.ne.s32.totalorder %s2589_s5, 0 }
  0xbe   : > { %454 = sbr.rel (%p1250_p4) target bundleno = 197 (0xc5), region = 64 }
  0xc3   : > { %vm455_vm0 = vcmask 64512   ;;  %v1784_v0 = vmov -inf  }
  0xc4   : > { %456 = vst.msk [vmem:[#allocation3] sm:$0xff] %vm455_vm0, %v1784_v0 }
  0xc5 PF: > { %v490_v1 = vld [vmem:[%s2130_s14 + $0xf8] sm:$0xff]  ;;  %v489_v2 = vld [vmem:[%s2130_s14 + $0xf0] sm:$0xff]  ;;  %v488_v3 = vld [vmem:[%s2130_s14 + $0xe8] sm:$0xff]  ;;  %s2590_s0 = sld [smem:[#allocation28_spill]]  ;;  %vm621_vm1 = vcmask 64512   ;;  %vm1785_vm8 = vmmov 1  }
  0xc6   : > { %535 = vmatprep.subr.mxu0 %v490_v1  ;;  %v487_v4 = vld [vmem:[%s2130_s14 + $0xe0] sm:$0xff]  ;;  %v486_v5 = vld [vmem:[%s2130_s14 + $0xd8] sm:$0xff]  ;;  %v485_v6 = vld [vmem:[%s2130_s14 + $0xd0] sm:$0xff] }
  0xc7   : > { %536 = vmatpush1.msra.mxu0 %v489_v2  ;;  %v484_v7 = vld [vmem:[%s2130_s14 + $0xc8] sm:$0xff]  ;;  %v483_v8 = vld [vmem:[%s2130_s14 + $0xc0] sm:$0xff]  ;;  %v482_v9 = vld [vmem:[%s2130_s14 + $0xb8] sm:$0xff] }
  0xc8   : > { %537 = vmatprep.subr.mxu0 %v488_v3  ;;  %v481_v10 = vld [vmem:[%s2130_s14 + $0xb0] sm:$0xff]  ;;  %v480_v11 = vld [vmem:[%s2130_s14 + $0xa8] sm:$0xff]  ;;  %v479_v12 = vld [vmem:[%s2130_s14 + $0xa0] sm:$0xff]  ;;  %v525_v3 = vlaneseq }
  0xc9   : > { %538 = vmatpush1.msra.mxu0 %v487_v4  ;;  %v478_v13 = vld [vmem:[%s2130_s14 + $0x98] sm:$0xff]  ;;  %v477_v14 = vld [vmem:[%s2130_s14 + $0x90] sm:$0xff]  ;;  %v476_v15 = vld [vmem:[%s2130_s14 + $0x88] sm:$0xff] }
  0xca   : > { %539 = vmatprep.subr.mxu0 %v486_v5  ;;  %v475_v16 = vld [vmem:[%s2130_s14 + $0x80] sm:$0xff]  ;;  %v474_v17 = vld [vmem:[%s2130_s14 + $0x78] sm:$0xff]  ;;  %v473_v18 = vld [vmem:[%s2130_s14 + $0x70] sm:$0xff]  ;;  %v526_v4 = vshrl.u32 %v525_v3, 7 }
  0xcb   : > { %540 = vmatpush1.msra.mxu0 %v485_v6  ;;  %v472_v19 = vld [vmem:[%s2130_s14 + $0x68] sm:$0xff]  ;;  %v471_v20 = vld [vmem:[%s2130_s14 + $0x60] sm:$0xff]  ;;  %v470_v21 = vld [vmem:[%s2130_s14 + $0x58] sm:$0xff]  ;;  %s1276_s27 = sshll.u32 %s2590_s0, 4  ;;  %p1253_p0 = scmp.ne.s32.totalorder %s2590_s0, 3 }
  0xcc   : > { %541 = vmatprep.subr.mxu0 %v484_v7  ;;  %v469_v22 = vld [vmem:[%s2130_s14 + $0x50] sm:$0xff]  ;;  %v468_v23 = vld [vmem:[%s2130_s14 + $0x48] sm:$0xff]  ;;  %v467_v24 = vld [vmem:[%s2130_s14 + $0x40] sm:$0xff]  ;;  %v527_v5 = vsub.s32 0, %v526_v4  ;;  %v531_v7 = vsub.s32 1, %v526_v4 }
  0xcd   : > { %542 = vmatpush1.msra.mxu0 %v483_v8  ;;  %v458_v25 = vld [vmem:[%s2122_s25 + $0x8] sm:$0xff]  ;;  %v465_v27 = vld [vmem:[%s2130_s14 + $0x30] sm:$0xff]  ;;  %v463_v29 = vld [vmem:[%s2130_s14 + $0x20] sm:$0xff] }
  0xce   : > { %543 = vmatprep.subr.mxu0 %v482_v9  ;;  %v466_v26 = vld [vmem:[%s2130_s14 + $0x38] sm:$0xff]  ;;  %599 = vmatprep.mubr.f32.mxu0 %v458_v25  ;;  %v464_v28 = vld [vmem:[%s2130_s14 + $0x28] sm:$0xff]  ;;  %v461_v31 = vld [vmem:[%s2130_s14 + $0x10] sm:$0xff] }
  0xcf   : > { %544 = vmatpush1.msra.mxu0 %v481_v10  ;;  %v462_v30 = vld [vmem:[%s2130_s14 + $0x18] sm:$0xff]  ;;  %v460_v32 = vld [vmem:[%s2130_s14 + $0x8] sm:$0xff]  ;;  %v459_v33 = vld [vmem:[%s2130_s14] sm:$0xff] }
  0xd0   : > { %545 = vmatprep.subr.mxu0 %v480_v11  ;;  %v522_v34 = vld [vmem:[%s2130_s14 + $0x1f8] sm:$0xff]  ;;  %v521_v35 = vld [vmem:[%s2130_s14 + $0x1f0] sm:$0xff]  ;;  %v520_v36 = vld [vmem:[%s2130_s14 + $0x1e8] sm:$0xff] }
  0xd1   : > { %546 = vmatpush1.msra.mxu0 %v479_v12  ;;  %v519_v37 = vld [vmem:[%s2130_s14 + $0x1e0] sm:$0xff]  ;;  %v518_v38 = vld [vmem:[%s2130_s14 + $0x1d8] sm:$0xff]  ;;  %v517_v39 = vld [vmem:[%s2130_s14 + $0x1d0] sm:$0xff] }
  0xd2   : > { %547 = vmatprep.subr.mxu0 %v478_v13  ;;  %v516_v40 = vld [vmem:[%s2130_s14 + $0x1c8] sm:$0xff]  ;;  %v515_v41 = vld [vmem:[%s2130_s14 + $0x1c0] sm:$0xff]  ;;  %v514_v42 = vld [vmem:[%s2130_s14 + $0x1b8] sm:$0xff] }
  0xd3   : > { %548 = vmatpush1.msra.mxu0 %v477_v14  ;;  %v513_v43 = vld [vmem:[%s2130_s14 + $0x1b0] sm:$0xff]  ;;  %v512_v44 = vld [vmem:[%s2130_s14 + $0x1a8] sm:$0xff]  ;;  %v511_v45 = vld [vmem:[%s2130_s14 + $0x1a0] sm:$0xff] }
  0xd4   : > { %549 = vmatprep.subr.mxu0 %v476_v15  ;;  %v510_v46 = vld [vmem:[%s2130_s14 + $0x198] sm:$0xff]  ;;  %v509_v47 = vld [vmem:[%s2130_s14 + $0x190] sm:$0xff]  ;;  %v508_v48 = vld [vmem:[%s2130_s14 + $0x188] sm:$0xff] }
  0xd5   : > { %550 = vmatpush1.msra.mxu0 %v475_v16  ;;  %v507_v49 = vld [vmem:[%s2130_s14 + $0x180] sm:$0xff]  ;;  %v506_v50 = vld [vmem:[%s2130_s14 + $0x178] sm:$0xff]  ;;  %v505_v51 = vld [vmem:[%s2130_s14 + $0x170] sm:$0xff] }
  0xd6   : > { %551 = vmatprep.subr.mxu0 %v474_v17  ;;  %v504_v52 = vld [vmem:[%s2130_s14 + $0x168] sm:$0xff]  ;;  %v503_v53 = vld [vmem:[%s2130_s14 + $0x160] sm:$0xff]  ;;  %v502_v54 = vld [vmem:[%s2130_s14 + $0x158] sm:$0xff] }
  0xd7   : > { %552 = vmatpush1.msra.mxu0 %v473_v18  ;;  %v501_v55 = vld [vmem:[%s2130_s14 + $0x150] sm:$0xff]  ;;  %v500_v56 = vld [vmem:[%s2130_s14 + $0x148] sm:$0xff]  ;;  %v499_v57 = vld [vmem:[%s2130_s14 + $0x140] sm:$0xff] }
  0xd8   : > { %553 = vmatprep.subr.mxu0 %v472_v19  ;;  %v498_v58 = vld [vmem:[%s2130_s14 + $0x138] sm:$0xff]  ;;  %v497_v59 = vld [vmem:[%s2130_s14 + $0x130] sm:$0xff]  ;;  %v496_v60 = vld [vmem:[%s2130_s14 + $0x128] sm:$0xff] }
  0xd9   : > { %554 = vmatpush1.msra.mxu0 %v471_v20  ;;  %v495_v61 = vld [vmem:[%s2130_s14 + $0x120] sm:$0xff]  ;;  %v494_v62 = vld [vmem:[%s2130_s14 + $0x118] sm:$0xff]  ;;  %v493_v63 = vld [vmem:[%s2130_s14 + $0x110] sm:$0xff] }
  0xda   : > { %555 = vmatprep.subr.mxu0 %v470_v21  ;;  %v492_v0 = vld [vmem:[%s2130_s14 + $0x108] sm:$0xff]  ;;  %v491_v1 = vld [vmem:[%s2130_s14 + $0x100] sm:$0xff]  ;;  %s610_s14 = scalar_lea.vmem [#allocation2], %s1276_s27 }
  0xdb   : > { %556 = vmatpush1.msra.mxu0 %v469_v22  ;;  %v457_v2 = vld [vmem:[%s2122_s25] sm:$0xff] }
  0xdc   : > { %557 = vmatprep.subr.mxu0 %v468_v23  ;;  %v523_v6 = vld [vmem:[%s376_s8] sm:$0x3] }
  0xdd   : > { %558 = vmatpush1.msra.mxu0 %v467_v24  ;;  %v528_v8 = vrot.slane %v523_v6, %v527_v5  ;;  %v532_v9 = vrot.slane %v523_v6, %v531_v7  ;;  %v615_v17 = vld [vmem:[#allocation3] sm:$0xff] }
  0xde   : > { %559 = vmatprep.subr.mxu0 %v466_v26  ;;  %v622_v18 = vsel %vm621_vm1, %v615_v17, -inf  ;;  %v2229_v26 = vand.u32 127, %v525_v3 }
  0xdf   : > { %560 = vmatpush1.msra.mxu0 %v465_v27 }
  0xe0   : > { %561 = vmatprep.subr.mxu0 %v464_v28  ;;  %vm627_vm11 = vcmp.eq.s32.totalorder %v2229_v26, 0  ;;  %vm651_vm12 = vcmp.eq.s32.totalorder %v2229_v26, 1 }
  0xe1   : > { %562 = vmatpush1.msra.mxu0 %v463_v29 }
  0xe2   : > { %563 = vmatprep.subr.mxu0 %v462_v30 }
  0xe3   : > { %564 = vmatpush1.msra.mxu0 %v461_v31 }
  0xe4   : > { %565 = vmatprep.subr.mxu0 %v460_v32 }
  0xe5   : > { %566 = vmatpush1.msra.mxu0 %v459_v33 }
  0xe6   : > { %567 = vmatprep.subr.mxu0 %v522_v34 }
  0xe7   : > { %568 = vmatpush2.msra.mxu0 %v521_v35 }
  0xe8   : > { %569 = vmatprep.subr.mxu0 %v520_v36 }
  0xe9   : > { %570 = vmatpush2.msra.mxu0 %v519_v37 }
  0xea   : > { %571 = vmatprep.subr.mxu0 %v518_v38 }
  0xeb   : > { %572 = vmatpush2.msra.mxu0 %v517_v39 }
  0xec   : > { %573 = vmatprep.subr.mxu0 %v516_v40 }
  0xed   : > { %574 = vmatpush2.msra.mxu0 %v515_v41 }
  0xee   : > { %575 = vmatprep.subr.mxu0 %v514_v42 }
  0xef   : > { %576 = vmatpush2.msra.mxu0 %v513_v43 }
  0xf0   : > { %577 = vmatprep.subr.mxu0 %v512_v44 }
  0xf1   : > { %578 = vmatpush2.msra.mxu0 %v511_v45 }
  0xf2   : > { %579 = vmatprep.subr.mxu0 %v510_v46 }
  0xf3   : > { %580 = vmatpush2.msra.mxu0 %v509_v47 }
  0xf4   : > { %581 = vmatprep.subr.mxu0 %v508_v48 }
  0xf5   : > { %582 = vmatpush2.msra.mxu0 %v507_v49 }
  0xf6   : > { %583 = vmatprep.subr.mxu0 %v506_v50 }
  0xf7   : > { %584 = vmatpush2.msra.mxu0 %v505_v51 }
  0xf8   : > { %585 = vmatprep.subr.mxu0 %v504_v52 }
  0xf9   : > { %586 = vmatpush2.msra.mxu0 %v503_v53 }
  0xfa   : > { %587 = vmatprep.subr.mxu0 %v502_v54 }
  0xfb   : > { %588 = vmatpush2.msra.mxu0 %v501_v55 }
  0xfc   : > { %589 = vmatprep.subr.mxu0 %v500_v56 }
  0xfd   : > { %590 = vmatpush2.msra.mxu0 %v499_v57 }
  0xfe   : > { %591 = vmatprep.subr.mxu0 %v498_v58 }
  0xff   : > { %592 = vmatpush2.msra.mxu0 %v497_v59 }
 0x100   : > { %593 = vmatprep.subr.mxu0 %v496_v60 }
 0x101   : > { %594 = vmatpush2.msra.mxu0 %v495_v61 }
 0x102   : > { %595 = vmatprep.subr.mxu0 %v494_v62 }
 0x103   : > { %596 = vmatpush2.msra.mxu0 %v493_v63 }
 0x104   : > { %597 = vmatprep.subr.mxu0 %v492_v0 }
 0x105   : > { %598 = vmatpush2.msra.mxu0 %v491_v1 }
 0x106   : > { %600 = vmatmul.mubr.f32.vlgmr.msra.gmra.mxu0 %v457_v2 }
 0x1c6   : > { %v601_v10 = vpop.f32.mrf.mxu0 }
 0x1c7   : > { %v602_v11 = vadd.f32 %v601_v10, %v528_v8 }
 0x1c8   : > { %v603_v12 = vpop.f32.mrf.mxu0 }
 0x1c9   : > { %606 = vst [vmem:[%s2149_s12] sm:$0xff] %v602_v11  ;;  %611 = vst [vmem:[%s610_s14] sm:$0xff] %v602_v11  ;;  %v604_v13 = vadd.f32 %v603_v12, %v532_v9  ;;  %v613_v14 = vand.u32 2147483647, %v602_v11 }
 0x1cb   : > { %607 = vst [vmem:[%s2149_s12 + $0x8] sm:$0xff] %v604_v13  ;;  %612 = vst [vmem:[%s610_s14 + $0x8] sm:$0xff] %v604_v13  ;;  %v614_v15 = vand.u32 2147483647, %v604_v13 }
 0x1cd   : > { %v618_v16 = vmax.f32 %v613_v14, %v614_v15 }
 0x1cf   : > { %619 = vmax.xlane.f32.xlu0 %v618_v16 }
 0x1d3   : > { %623 = vmax.xlane.f32.xlu0 %v622_v18 }
 0x258   : > { %v620_v19 = vpop.xlane.xlu0 %619 }
 0x259   : > { %vm629_vm3 = vcmp.eq.f32.partialorder %v613_v14, %v620_v19  ;;  %vm630_vm5 = vcmp.eq.f32.partialorder %v614_v15, %v620_v19 }
 0x25c   : > { %v624_v20 = vpop.xlane.xlu0 %623 }
 0x25d   : > { %vm625_vm2 = vcmp.ge.f32.partialorder %v620_v19, %v624_v20  ;;  %vm638_vm4 = vcmp.eq.f32.partialorder %v615_v17, %v624_v20  ;;  %v626_v28 = vmax.f32 %v620_v19, %v624_v20 }
 0x25e   : > { %vm633_vm6 = vmand %vm625_vm2, %vm629_vm3 }
 0x25f   : > { %vm634_vm7 = vmand %vm625_vm2, %vm630_vm5  ;;  %v635_v21 = vsel %vm633_vm6, -inf, %v613_v14  ;;  %v628_v31 = vsel %vm627_vm11, %v626_v28, -inf }
 0x260   : > { %v636_v22 = vsel %vm634_vm7, -inf, %v614_v15  ;;  %vm637_vm9 = vmxor %vm625_vm2, %vm1785_vm8 }
 0x261   : > { %v643_v23 = vmax.f32 %v635_v21, %v636_v22  ;;  %vm641_vm10 = vmand %vm637_vm9, %vm638_vm4 }
 0x262   : > { %v642_v24 = vsel %vm641_vm10, -inf, %v615_v17 }
 0x263   : > { %644 = vmax.xlane.f32.xlu1 %v643_v23  ;;  %v646_v25 = vsel %vm621_vm1, %v642_v24, -inf }
 0x267   : > { %647 = vmax.xlane.f32.xlu1 %v646_v25 }
 0x2ec   : > { %v645_v27 = vpop.xlane.xlu1 %644 }
 0x2ed   : > { %vm653_vm2 = vcmp.eq.f32.partialorder %v635_v21, %v645_v27  ;;  %vm654_vm3 = vcmp.eq.f32.partialorder %v636_v22, %v645_v27 }
 0x2f0   : > { %v648_v29 = vpop.xlane.xlu1 %647 }
 0x2f1   : > { %vm649_vm13 = vcmp.ge.f32.partialorder %v645_v27, %v648_v29  ;;  %v650_v30 = vmax.f32 %v645_v27, %v648_v29  ;;  %vm662_vm14 = vcmp.eq.f32.partialorder %v642_v24, %v648_v29 }
 0x2f2   : > { %vm661_vm15 = vmxor %vm649_vm13, %vm1785_vm8 }
 0x2f3   : > { %v2234_v32 = vsel %vm651_vm12, %v650_v30, %v628_v31  ;;  %vm665_vm0 = vmand %vm661_vm15, %vm662_vm14 }
 0x2f4   : > { %v666_v33 = vsel %vm665_vm0, -inf, %v642_v24  ;;  %vm657_vm4 = vmand %vm649_vm13, %vm653_vm2 }
 0x2f5   : > { %v670_v34 = vsel %vm621_vm1, %v666_v33, -inf  ;;  %vm658_vm5 = vmand %vm649_vm13, %vm654_vm3  ;;  %v659_v35 = vsel %vm657_vm4, -inf, %v635_v21 }
 0x2f6   : > { %671 = vmax.xlane.f32.xlu1 %v670_v34  ;;  %v660_v36 = vsel %vm658_vm5, -inf, %v636_v22 }
 0x2f7   : > { %v667_v37 = vmax.f32 %v659_v35, %v660_v36 }
 0x2f9   : > { %668 = vmax.xlane.f32.xlu0 %v667_v37 }
 0x37f   : > { %v2237_v38 = vpop.xlane.xlu1 %671 }
 0x380   : > { %vm686_vm6 = vcmp.eq.f32.partialorder %v666_v33, %v2237_v38 }
 0x382   : > { %v2240_v39 = vpop.xlane.xlu0 %668 }
 0x383   : > { %vm673_vm7 = vcmp.ge.f32.partialorder %v2240_v39, %v2237_v38  ;;  %vm677_vm9 = vcmp.eq.f32.partialorder %v659_v35, %v2240_v39  ;;  %vm678_vm11 = vcmp.eq.f32.partialorder %v660_v36, %v2240_v39  ;;  %v674_v9 = vmax.f32 %v2240_v39, %v2237_v38 }
 0x384   : > { %vm685_vm10 = vmxor %vm673_vm7, %vm1785_vm8 }
 0x385   : > { %vm689_vm12 = vmand %vm685_vm10, %vm686_vm6 }
 0x386   : > { %v690_v40 = vsel %vm689_vm12, -inf, %v666_v33  ;;  %vm681_vm13 = vmand %vm673_vm7, %vm677_vm9 }
 0x387   : > { %v694_v41 = vsel %vm621_vm1, %v690_v40, -inf  ;;  %vm682_vm14 = vmand %vm673_vm7, %vm678_vm11  ;;  %v683_v42 = vsel %vm681_vm13, -inf, %v659_v35 }
 0x388   : > { %695 = vmax.xlane.f32.xlu1 %v694_v41  ;;  %v684_v43 = vsel %vm682_vm14, -inf, %v660_v36 }
 0x389   : > { %v691_v44 = vmax.f32 %v683_v42, %v684_v43 }
 0x38b   : > { %692 = vmax.xlane.f32.xlu0 %v691_v44 }
 0x411   : > { %v2248_v45 = vpop.xlane.xlu1 %695 }
 0x412   : > { %vm710_vm15 = vcmp.eq.f32.partialorder %v690_v40, %v2248_v45 }
 0x414   : > { %v2251_v46 = vpop.xlane.xlu0 %692 }
 0x415   : > { %vm697_vm0 = vcmp.ge.f32.partialorder %v2251_v46, %v2248_v45  ;;  %vm701_vm2 = vcmp.eq.f32.partialorder %v683_v42, %v2251_v46  ;;  %vm702_vm4 = vcmp.eq.f32.partialorder %v684_v43, %v2251_v46  ;;  %v698_v10 = vmax.f32 %v2251_v46, %v2248_v45 }
 0x416   : > { %vm709_vm3 = vmxor %vm697_vm0, %vm1785_vm8 }
 0x417   : > { %vm713_vm5 = vmand %vm709_vm3, %vm710_vm15 }
 0x418   : > { %v714_v47 = vsel %vm713_vm5, -inf, %v690_v40  ;;  %vm705_vm6 = vmand %vm697_vm0, %vm701_vm2 }
 0x419   : > { %v718_v48 = vsel %vm621_vm1, %v714_v47, -inf  ;;  %vm706_vm7 = vmand %vm697_vm0, %vm702_vm4  ;;  %v707_v49 = vsel %vm705_vm6, -inf, %v683_v42 }
 0x41a   : > { %719 = vmax.xlane.f32.xlu1 %v718_v48  ;;  %v708_v50 = vsel %vm706_vm7, -inf, %v684_v43 }
 0x41b   : > { %v715_v51 = vmax.f32 %v707_v49, %v708_v50 }
 0x41d   : > { %716 = vmax.xlane.f32.xlu0 %v715_v51 }
 0x4a3   : > { %v2259_v52 = vpop.xlane.xlu1 %719 }
 0x4a4   : > { %vm734_vm9 = vcmp.eq.f32.partialorder %v714_v47, %v2259_v52 }
 0x4a6   : > { %v2262_v53 = vpop.xlane.xlu0 %716 }
 0x4a7   : > { %vm721_vm10 = vcmp.ge.f32.partialorder %v2262_v53, %v2259_v52  ;;  %vm725_vm11 = vcmp.eq.f32.partialorder %v707_v49, %v2262_v53  ;;  %vm726_vm13 = vcmp.eq.f32.partialorder %v708_v50, %v2262_v53  ;;  %v722_v11 = vmax.f32 %v2262_v53, %v2259_v52 }
 0x4a8   : > { %vm733_vm12 = vmxor %vm721_vm10, %vm1785_vm8 }
 0x4a9   : > { %vm737_vm14 = vmand %vm733_vm12, %vm734_vm9 }
 0x4aa   : > { %v738_v54 = vsel %vm737_vm14, -inf, %v714_v47  ;;  %vm729_vm15 = vmand %vm721_vm10, %vm725_vm11 }
 0x4ab   : > { %v742_v55 = vsel %vm621_vm1, %v738_v54, -inf  ;;  %vm730_vm0 = vmand %vm721_vm10, %vm726_vm13  ;;  %v731_v56 = vsel %vm729_vm15, -inf, %v707_v49 }
 0x4ac   : > { %743 = vmax.xlane.f32.xlu1 %v742_v55  ;;  %v732_v57 = vsel %vm730_vm0, -inf, %v708_v50 }
 0x4ad   : > { %v739_v58 = vmax.f32 %v731_v56, %v732_v57 }
 0x4af   : > { %740 = vmax.xlane.f32.xlu0 %v739_v58 }
 0x535   : > { %v744_v59 = vpop.xlane.xlu1 %743 }
 0x536   : > { %vm758_vm2 = vcmp.eq.f32.partialorder %v738_v54, %v744_v59 }
 0x538   : > { %v741_v60 = vpop.xlane.xlu0 %740 }
 0x539   : > { %vm745_vm3 = vcmp.ge.f32.partialorder %v741_v60, %v744_v59  ;;  %vm749_vm4 = vcmp.eq.f32.partialorder %v731_v56, %v741_v60  ;;  %vm750_vm6 = vcmp.eq.f32.partialorder %v732_v57, %v741_v60  ;;  %v746_v12 = vmax.f32 %v741_v60, %v744_v59 }
 0x53a   : > { %vm757_vm5 = vmxor %vm745_vm3, %vm1785_vm8 }
 0x53b   : > { %vm761_vm7 = vmand %vm757_vm5, %vm758_vm2  ;;  %vm723_vm5 = vcmp.eq.s32.totalorder %v2229_v26, 4 }
 0x53c   : > { %v762_v61 = vsel %vm761_vm7, -inf, %v738_v54  ;;  %vm753_vm9 = vmand %vm745_vm3, %vm749_vm4  ;;  %vm771_vm7 = vcmp.eq.s32.totalorder %v2229_v26, 6 }
 0x53d   : > { %v766_v62 = vsel %vm621_vm1, %v762_v61, -inf  ;;  %vm754_vm11 = vmand %vm745_vm3, %vm750_vm6  ;;  %v755_v63 = vsel %vm753_vm9, -inf, %v731_v56  ;;  %vm675_vm3 = vcmp.eq.s32.totalorder %v2229_v26, 2  ;;  %vm747_vm6 = vcmp.eq.s32.totalorder %v2229_v26, 5 }
 0x53e   : > { %767 = vmax.xlane.f32.xlu1 %v766_v62  ;;  %v756_v0 = vsel %vm754_vm11, -inf, %v732_v57  ;;  %v676_v13 = vsel %vm675_vm3, %v674_v9, %v2234_v32  ;;  %vm794_vm9 = vcmp.eq.s32.totalorder %v2229_v26, 7 }
 0x53f   : > { %v763_v1 = vmax.f32 %v755_v63, %v756_v0 }
 0x541   : > { %764 = vmax.xlane.f32.xlu0 %v763_v1 }
 0x5c7   : > { %v768_v2 = vpop.xlane.xlu1 %767 }
 0x5c8   : > { %vm782_vm10 = vcmp.eq.f32.partialorder %v762_v61, %v768_v2 }
 0x5ca   : > { %v765_v3 = vpop.xlane.xlu0 %764 }
 0x5cb   : > { %vm769_vm12 = vcmp.ge.f32.partialorder %v765_v3, %v768_v2  ;;  %vm773_vm13 = vcmp.eq.f32.partialorder %v755_v63, %v765_v3  ;;  %vm774_vm15 = vcmp.eq.f32.partialorder %v756_v0, %v765_v3  ;;  %v770_v14 = vmax.f32 %v765_v3, %v768_v2 }
 0x5cc   : > { %vm781_vm14 = vmxor %vm769_vm12, %vm1785_vm8  ;;  %vm699_vm8 = vcmp.eq.s32.totalorder %v2229_v26, 3 }
 0x5cd   : > { %vm785_vm0 = vmand %vm781_vm14, %vm782_vm10  ;;  %v700_v16 = vsel %vm699_vm8, %v698_v10, %v676_v13 }
 0x5ce   : > { %v786_v4 = vsel %vm785_vm0, -inf, %v762_v61  ;;  %vm777_vm2 = vmand %vm769_vm12, %vm773_vm13  ;;  %v724_v17 = vsel %vm723_vm5, %v722_v11, %v700_v16 }
 0x5cf   : > { %v790_v5 = vsel %vm621_vm1, %v786_v4, -inf  ;;  %vm778_vm4 = vmand %vm769_vm12, %vm774_vm15  ;;  %v779_v6 = vsel %vm777_vm2, -inf, %v755_v63  ;;  %v748_v19 = vsel %vm747_vm6, %v746_v12, %v724_v17 }
 0x5d0   : > { %791 = vmax.xlane.f32.xlu1 %v790_v5  ;;  %v780_v7 = vsel %vm778_vm4, -inf, %v756_v0  ;;  %v772_v21 = vsel %vm771_vm7, %v770_v14, %v748_v19 }
 0x5d1   : > { %v787_v8 = vmax.f32 %v779_v6, %v780_v7 }
 0x5d3   : > { %788 = vmax.xlane.f32.xlu0 %v787_v8 }
 0x659   : > { %v792_v15 = vpop.xlane.xlu1 %791 }
 0x65c   : > { %v789_v18 = vpop.xlane.xlu0 %788  ;;  %800 = sbr.rel (%p1253_p0) target bundleno = 1780 (0x6f4), region = 68 }
 0x65d   : > { %v793_v20 = vmax.f32 %v789_v18, %v792_v15 }
 0x65f   : > { %v795_v22 = vsel %vm794_vm9, %v793_v20, %v772_v21 }
 0x660   : > { %796 = vst.msk [vmem:[#allocation3] sm:$0xff] %vm621_vm1, %v795_v22 }
 0x661   : > { %vm805_vm11 = vcmask 7168  }
 0x667   : > { %v801_v23 = vld [vmem:[#allocation3] sm:$0xff] }
 0x668   : > { %v802_v24 = vsel %vm621_vm1, %v801_v23, inf }
 0x669   : > { %803 = vmin.xlane.f32.xlu0 %v802_v24 }
 0x6f2   : > { %v804_v25 = vpop.xlane.xlu0 %803 }
 0x6f3   : > { %806 = vst.msk [vmem:[#allocation4] sm:$0xff] %vm805_vm11, %v804_v25 }
 0x6f4 PF: > { %s2591_s25 = sld [smem:[#allocation28_spill]] }
 0x6fa   : > { %p1254_p3 = scmp.lt.s32.totalorder %s2591_s25, 4 }
 0x6fb   : > { %s2592_s16 = sld [smem:[#allocation28_spill]] (!%p1254_p3) }
 0x6fc   : > { %810 = sbr.rel (%p1254_p3) target bundleno = 2140 (0x85c), region = 72 }
 0x701   : > { %s2292_s1 = sadd.s32 4294967292, %s2592_s16 }
 0x702   : > { %p1256_p2 = scmp.ne.s32.totalorder %s2292_s1, 0 }
 0x704   : > { %815 = sbr.rel (%p1256_p2) target bundleno = 1803 (0x70b), region = 76 }
 0x709   : > { %v1786_v26 = vmov 0.0  }
 0x70a   : > { %816 = vst [vmem:[#allocation5] sm:$0xff] %v1786_v26  ;;  %817 = vst [vmem:[#allocation5 + $0x8] sm:$0xff] %v1786_v26 }
 0x70b PF: > { %v825_v27 = vld [vmem:[#allocation4] sm:$0xff]  ;;  %v868_v28 = vld [vmem:[%s2140_s6 + $0xf8] sm:$0xff]  ;;  %v867_v29 = vld [vmem:[%s2140_s6 + $0xf0] sm:$0xff]  ;;  %v1787_v30 = vmov 0   ;;  %s1277_s4 = sshll.u32 %s2292_s1, 4  ;;  %p1261_p12 = scmp.ne.s32.totalorder %s2292_s1, 3 }
 0x70c   : > { %1456 = vset.pattern.permute.xlu0 %v1787_v30  ;;  %901 = vmatprep.subr.mxu0 %v868_v28  ;;  %v866_v31 = vld [vmem:[%s2140_s6 + $0xe8] sm:$0xff]  ;;  %v865_v32 = vld [vmem:[%s2140_s6 + $0xe0] sm:$0xff]  ;;  %v864_v33 = vld [vmem:[%s2140_s6 + $0xd8] sm:$0xff]  ;;  %s820_s9 = scalar_lea.vmem [#allocation2], %s1277_s4 }
 0x70d   : > { %828 = vperm.xlu0 %1456, %v825_v27   ;;  %902 = vmatpush1.msra.mxu0 %v867_v29  ;;  %v863_v34 = vld [vmem:[%s2140_s6 + $0xd0] sm:$0xff]  ;;  %v862_v35 = vld [vmem:[%s2140_s6 + $0xc8] sm:$0xff]  ;;  %v861_v36 = vld [vmem:[%s2140_s6 + $0xc0] sm:$0xff] }
 0x70e   : > { %903 = vmatprep.subr.mxu0 %v866_v31  ;;  %v860_v37 = vld [vmem:[%s2140_s6 + $0xb8] sm:$0xff]  ;;  %v859_v38 = vld [vmem:[%s2140_s6 + $0xb0] sm:$0xff]  ;;  %v858_v39 = vld [vmem:[%s2140_s6 + $0xa8] sm:$0xff] }
 0x70f   : > { %904 = vmatpush1.msra.mxu0 %v865_v32  ;;  %v857_v40 = vld [vmem:[%s2140_s6 + $0xa0] sm:$0xff]  ;;  %v856_v41 = vld [vmem:[%s2140_s6 + $0x98] sm:$0xff]  ;;  %v855_v42 = vld [vmem:[%s2140_s6 + $0x90] sm:$0xff] }
 0x710   : > { %905 = vmatprep.subr.mxu0 %v864_v33  ;;  %v854_v43 = vld [vmem:[%s2140_s6 + $0x88] sm:$0xff]  ;;  %v853_v44 = vld [vmem:[%s2140_s6 + $0x80] sm:$0xff]  ;;  %v852_v45 = vld [vmem:[%s2140_s6 + $0x78] sm:$0xff] }
 0x711   : > { %906 = vmatpush1.msra.mxu0 %v863_v34  ;;  %v851_v46 = vld [vmem:[%s2140_s6 + $0x70] sm:$0xff]  ;;  %v850_v47 = vld [vmem:[%s2140_s6 + $0x68] sm:$0xff]  ;;  %v849_v48 = vld [vmem:[%s2140_s6 + $0x60] sm:$0xff] }
 0x712   : > { %907 = vmatprep.subr.mxu0 %v862_v35  ;;  %v848_v49 = vld [vmem:[%s2140_s6 + $0x58] sm:$0xff]  ;;  %v847_v50 = vld [vmem:[%s2140_s6 + $0x50] sm:$0xff]  ;;  %v846_v51 = vld [vmem:[%s2140_s6 + $0x48] sm:$0xff] }
 0x713   : > { %908 = vmatpush1.msra.mxu0 %v861_v36  ;;  %v845_v52 = vld [vmem:[%s2140_s6 + $0x40] sm:$0xff]  ;;  %v844_v53 = vld [vmem:[%s2140_s6 + $0x38] sm:$0xff]  ;;  %v843_v54 = vld [vmem:[%s2140_s6 + $0x30] sm:$0xff] }
 0x714   : > { %909 = vmatprep.subr.mxu0 %v860_v37  ;;  %v842_v55 = vld [vmem:[%s2140_s6 + $0x28] sm:$0xff]  ;;  %v841_v56 = vld [vmem:[%s2140_s6 + $0x20] sm:$0xff]  ;;  %v840_v57 = vld [vmem:[%s2140_s6 + $0x18] sm:$0xff] }
 0x715   : > { %910 = vmatpush1.msra.mxu0 %v859_v38  ;;  %v839_v58 = vld [vmem:[%s2140_s6 + $0x10] sm:$0xff]  ;;  %v838_v59 = vld [vmem:[%s2140_s6 + $0x8] sm:$0xff]  ;;  %v837_v60 = vld [vmem:[%s2140_s6] sm:$0xff] }
 0x716   : > { %911 = vmatprep.subr.mxu0 %v858_v39  ;;  %v900_v61 = vld [vmem:[%s2140_s6 + $0x1f8] sm:$0xff]  ;;  %v899_v62 = vld [vmem:[%s2140_s6 + $0x1f0] sm:$0xff]  ;;  %v898_v63 = vld [vmem:[%s2140_s6 + $0x1e8] sm:$0xff] }
 0x717   : > { %912 = vmatpush1.msra.mxu0 %v857_v40  ;;  %v897_v0 = vld [vmem:[%s2140_s6 + $0x1e0] sm:$0xff]  ;;  %v896_v1 = vld [vmem:[%s2140_s6 + $0x1d8] sm:$0xff]  ;;  %v895_v2 = vld [vmem:[%s2140_s6 + $0x1d0] sm:$0xff] }
 0x718   : > { %913 = vmatprep.subr.mxu0 %v856_v41  ;;  %v894_v3 = vld [vmem:[%s2140_s6 + $0x1c8] sm:$0xff]  ;;  %v893_v4 = vld [vmem:[%s2140_s6 + $0x1c0] sm:$0xff]  ;;  %v892_v5 = vld [vmem:[%s2140_s6 + $0x1b8] sm:$0xff] }
 0x719   : > { %914 = vmatpush1.msra.mxu0 %v855_v42  ;;  %v891_v6 = vld [vmem:[%s2140_s6 + $0x1b0] sm:$0xff]  ;;  %v890_v7 = vld [vmem:[%s2140_s6 + $0x1a8] sm:$0xff]  ;;  %v889_v8 = vld [vmem:[%s2140_s6 + $0x1a0] sm:$0xff] }
 0x71a   : > { %915 = vmatprep.subr.mxu0 %v854_v43  ;;  %v888_v9 = vld [vmem:[%s2140_s6 + $0x198] sm:$0xff]  ;;  %v887_v10 = vld [vmem:[%s2140_s6 + $0x190] sm:$0xff]  ;;  %v886_v11 = vld [vmem:[%s2140_s6 + $0x188] sm:$0xff] }
 0x71b   : > { %916 = vmatpush1.msra.mxu0 %v853_v44  ;;  %v885_v12 = vld [vmem:[%s2140_s6 + $0x180] sm:$0xff]  ;;  %v884_v13 = vld [vmem:[%s2140_s6 + $0x178] sm:$0xff]  ;;  %v883_v14 = vld [vmem:[%s2140_s6 + $0x170] sm:$0xff] }
 0x71c   : > { %917 = vmatprep.subr.mxu0 %v852_v45  ;;  %v882_v15 = vld [vmem:[%s2140_s6 + $0x168] sm:$0xff]  ;;  %v881_v16 = vld [vmem:[%s2140_s6 + $0x160] sm:$0xff]  ;;  %v880_v17 = vld [vmem:[%s2140_s6 + $0x158] sm:$0xff] }
 0x71d   : > { %918 = vmatpush1.msra.mxu0 %v851_v46  ;;  %v879_v18 = vld [vmem:[%s2140_s6 + $0x150] sm:$0xff]  ;;  %v878_v19 = vld [vmem:[%s2140_s6 + $0x148] sm:$0xff]  ;;  %v877_v20 = vld [vmem:[%s2140_s6 + $0x140] sm:$0xff] }
 0x71e   : > { %919 = vmatprep.subr.mxu0 %v850_v47  ;;  %v876_v21 = vld [vmem:[%s2140_s6 + $0x138] sm:$0xff]  ;;  %v875_v22 = vld [vmem:[%s2140_s6 + $0x130] sm:$0xff]  ;;  %v874_v23 = vld [vmem:[%s2140_s6 + $0x128] sm:$0xff] }
 0x71f   : > { %920 = vmatpush1.msra.mxu0 %v849_v48  ;;  %v873_v24 = vld [vmem:[%s2140_s6 + $0x120] sm:$0xff]  ;;  %v872_v25 = vld [vmem:[%s2140_s6 + $0x118] sm:$0xff]  ;;  %v871_v26 = vld [vmem:[%s2140_s6 + $0x110] sm:$0xff] }
 0x720   : > { %921 = vmatprep.subr.mxu0 %v848_v49  ;;  %v870_v27 = vld [vmem:[%s2140_s6 + $0x108] sm:$0xff]  ;;  %v869_v28 = vld [vmem:[%s2140_s6 + $0x100] sm:$0xff]  ;;  %v836_v36 = vld [vmem:[#allocation5 + $0x8] sm:$0xff]  ;;  %s2593_s6 = sld [smem:[#allocation46_spill]] (!%p1261_p12) }
 0x721   : > { %922 = vmatpush1.msra.mxu0 %v847_v50  ;;  %v821_v29 = vld [vmem:[%s820_s9] sm:$0xff]  ;;  %v822_v30 = vld [vmem:[%s820_s9 + $0x8] sm:$0xff]  ;;  %v835_v34 = vld [vmem:[#allocation5] sm:$0xff] }
 0x722   : > { %923 = vmatprep.subr.mxu0 %v846_v51  ;;  %v823_v31 = vand.u32 2147483647, %v821_v29  ;;  %v824_v32 = vand.u32 2147483647, %v822_v30 }
 0x723   : > { %924 = vmatpush1.msra.mxu0 %v845_v52 }
 0x724   : > { %925 = vmatprep.subr.mxu0 %v844_v53 }
 0x725   : > { %926 = vmatpush1.msra.mxu0 %v843_v54 }
 0x726   : > { %927 = vmatprep.subr.mxu0 %v842_v55 }
 0x727   : > { %928 = vmatpush1.msra.mxu0 %v841_v56 }
 0x728   : > { %929 = vmatprep.subr.mxu0 %v840_v57 }
 0x729   : > { %930 = vmatpush1.msra.mxu0 %v839_v58 }
 0x72a   : > { %931 = vmatprep.subr.mxu0 %v838_v59 }
 0x72b   : > { %932 = vmatpush1.msra.mxu0 %v837_v60 }
 0x72c   : > { %933 = vmatprep.subr.mxu0 %v900_v61 }
 0x72d   : > { %934 = vmatpush2.msra.mxu0 %v899_v62 }
 0x72e   : > { %935 = vmatprep.subr.mxu0 %v898_v63 }
 0x72f   : > { %936 = vmatpush2.msra.mxu0 %v897_v0 }
 0x730   : > { %937 = vmatprep.subr.mxu0 %v896_v1 }
 0x731   : > { %938 = vmatpush2.msra.mxu0 %v895_v2 }
 0x732   : > { %939 = vmatprep.subr.mxu0 %v894_v3 }
 0x733   : > { %940 = vmatpush2.msra.mxu0 %v893_v4 }
 0x734   : > { %941 = vmatprep.subr.mxu0 %v892_v5 }
 0x735   : > { %942 = vmatpush2.msra.mxu0 %v891_v6 }
 0x736   : > { %943 = vmatprep.subr.mxu0 %v890_v7 }
 0x737   : > { %944 = vmatpush2.msra.mxu0 %v889_v8 }
 0x738   : > { %945 = vmatprep.subr.mxu0 %v888_v9 }
 0x739   : > { %946 = vmatpush2.msra.mxu0 %v887_v10 }
 0x73a   : > { %947 = vmatprep.subr.mxu0 %v886_v11 }
 0x73b   : > { %948 = vmatpush2.msra.mxu0 %v885_v12 }
 0x73c   : > { %949 = vmatprep.subr.mxu0 %v884_v13 }
 0x73d   : > { %950 = vmatpush2.msra.mxu0 %v883_v14 }
 0x73e   : > { %951 = vmatprep.subr.mxu0 %v882_v15 }
 0x73f   : > { %952 = vmatpush2.msra.mxu0 %v881_v16 }
 0x740   : > { %953 = vmatprep.subr.mxu0 %v880_v17 }
 0x741   : > { %954 = vmatpush2.msra.mxu0 %v879_v18 }
 0x742   : > { %955 = vmatprep.subr.mxu0 %v878_v19 }
 0x743   : > { %956 = vmatpush2.msra.mxu0 %v877_v20 }
 0x744   : > { %957 = vmatprep.subr.mxu0 %v876_v21 }
 0x745   : > { %958 = vmatpush2.msra.mxu0 %v875_v22 }
 0x746   : > { %959 = vmatprep.subr.mxu0 %v874_v23 }
 0x747   : > { %960 = vmatpush2.msra.mxu0 %v873_v24 }
 0x748   : > { %961 = vmatprep.subr.mxu0 %v872_v25 }
 0x749   : > { %962 = vmatpush2.msra.mxu0 %v871_v26 }
 0x74a   : > { %963 = vmatprep.subr.mxu0 %v870_v27 }
 0x74b   : > { %964 = vmatpush2.msra.mxu0 %v869_v28 }
 0x788   : > { %v829_v33 = vpop.permute.xlu0 %828 }
 0x789   : > { %vm831_vm1 = vcmp.ge.f32.partialorder %v823_v31, %v829_v33  ;;  %vm832_vm10 = vcmp.ge.f32.partialorder %v824_v32, %v829_v33 }
 0x78a   : > { %1259 = vmatprep.mubr.msk.f32.mxu0 %vm832_vm10, %v822_v30 }
 0x78b   : > { %1260 = vmatmul.mubr.msk.f32.vlgmr.msra.gmra.mxu0 %vm831_vm1, %v821_v29 }
 0x84b   : > { %v967_v35 = vpop.f32.mrf.mxu0 }
 0x84c   : > { %v972_v37 = vadd.f32 %v967_v35, %v835_v34  ;;  %979 = sbr.rel (%p1261_p12) target bundleno = 2140 (0x85c), region = 80 }
 0x84d   : > { %v969_v38 = vpop.f32.mrf.mxu0 }
 0x84e   : > { %974 = vst [vmem:[#allocation5] sm:$0xff] %v972_v37  ;;  %v973_v39 = vadd.f32 %v969_v38, %v836_v36 }
 0x850   : > { %975 = vst [vmem:[#allocation5 + $0x8] sm:$0xff] %v973_v39 }
 0x851   : > { %v984_v40 = vlaneseq  ;;  %v982_v42 = vld [vmem:[%s2593_s6] sm:$0x3] }
 0x853   : > { %v985_v41 = vshrl.u32 %v984_v40, 7 }
 0x855   : > { %v986_v43 = vsub.s32 0, %v985_v41  ;;  %v990_v44 = vsub.s32 1, %v985_v41  ;;  %v980_v45 = vld [vmem:[#allocation5] sm:$0xff] }
 0x857   : > { %v981_v46 = vld [vmem:[#allocation5 + $0x8] sm:$0xff]  ;;  %v987_v47 = vrot.slane %v982_v42, %v986_v43  ;;  %v991_v48 = vrot.slane %v982_v42, %v990_v44 }
 0x859   : > { %v994_v49 = vadd.f32 %v987_v47, %v980_v45  ;;  %v995_v50 = vadd.f32 %v991_v48, %v981_v46 }
 0x85b   : > { %996 = vst [vmem:[%s2151_s23] sm:$0xff] %v994_v49  ;;  %997 = vst [vmem:[%s2151_s23 + $0x8] sm:$0xff] %v995_v50 }
 0x85c PF: > { %s2594_s19 = sld [smem:[#allocation28_spill]]  ;;  %s1022_s0 = sshll.u32 %s2149_s12, 4  ;;  %s2370_s0 = int_to_ptr.vmem [resolvable:$true] %s1022_s0 }
 0x85d   : > { %s2595_s30 = sld [smem:[#allocation29_spill]]  ;;  %s1036_s3 = sshll.u32 %s2151_s23, 4  ;;  %s2382_s3 = int_to_ptr.vmem [resolvable:$true] %s1036_s3 }
 0x85e   : > { %s2596_s4 = sld [smem:[#allocation48_spill]]  ;;  %s2598_s18 = sand.u32 1, %s1715_s22  }
 0x85f   : > { %s2597_s2 = sld [smem:[#allocation47_spill]]  ;;  %s999_s11 = scalar_lea.sflag [#allocation8], %s2598_s18 }
 0x860   : > { %s1569_s7 = scalar_lea.vmem %s2370_s0, 256  ;;  %p2599_p7 = scmp.ne.s32.totalorder %s2558_s20, 0 }
 0x861   : > { %p1570_p5 = scmp.ne.s32.totalorder %s2370_s0, %s1569_s7 }
 0x862   : > { %p1011_p11 = scmp.lt.s32.totalorder %s2594_s19, 3 }
 0x863   : > { %s1265_s5 = sshll.u32 %s2595_s30, 3  ;;  %s1278_s14 = sshll.u32 %s2595_s30, 8 }
 0x864   : > { %s2639_s19 = smov (!%p1011_p11, %s2594_s19), 3  ;;  %s2376_s9 = scalar_lea.hbm %s2596_s4, %s1278_s14 }
 0x865   : > { %s1264_s27 = sshll.u32 %s2639_s19, 1  ;;  %p1571_p10 = pnand %p1570_p5, %p2599_p7 }
 0x866   : > { %s1018_s25 = sadd.s32 %s1265_s5, %s1264_s27  ;;  %s1788_s19 = smov [#allocation14]  }
 0x867   : > { %s1266_s8 = sshll.u32 %s1018_s25, 7  ;;  %p1572_p1 = pneg %p1571_p10 }
 0x868   : > { %s1020_s12 = scalar_lea.hbm %s2597_s2, %s1266_s8  ;;  %s1573_s30 = sshll.u32 %s1788_s19, 4  ;;  %s1574_s30 = int_to_ptr.vmem [resolvable:$false] %s1573_s30 }
 0x869   : > { %s1575_s5 = scalar_lea.vmem %s1574_s30, 512  ;;  %p1576_p6 = scmp.lt.s32.totalorder %s2370_s0, %s1574_s30 }
 0x86a   : > { %p1577_p13 = scmp.lt.s32.totalorder %s1575_s5, %s1569_s7 }
 0x86c   : > { %p1578_p8 = por %p1577_p13, %p1576_p6 }
 0x86e   : > { %p1579_p9 = pnand %p1578_p8, %p1572_p1 }
 0x870   : > { %1582 = shalt.err (!%p1579_p9)
}
 0x871   : > { %s1583_s24 = scalar_lea.hbm %s1020_s12, 256  ;;  %s1587_s27 = scalar_lea.hbm %s2597_s2, 2048 }
 0x872   : > { %p1584_p4 = scmp.ne.s32.totalorder %s1020_s12, %s1583_s24  ;;  %p1588_p2 = scmp.lt.s32.totalorder %s1020_s12, %s2597_s2 }
 0x873   : > { %p1589_p12 = scmp.lt.s32.totalorder %s1587_s27, %s1583_s24 }
 0x874   : > { %p1585_p0 = pnand %p1584_p4, %p2599_p7 }
 0x875   : > { %p1590_p11 = por %p1589_p12, %p1588_p2 }
 0x876   : > { %p1586_p3 = pneg %p1585_p0 }
 0x878   : > { %p1591_p5 = pnand %p1590_p11, %p1586_p3 }
 0x87a   : > { %1594 = shalt.err (!%p1591_p5)
}
 0x87b   : > { %1287 = dma.vmem_to_hbm [thread:$0]  (%p2599_p7), %s2370_s0, 256, %s1020_s12, %s999_s11  }
 0x87c   : > { %s1004_s7 = scalar_lea.sflag [#allocation16], %s2118_s17  ;;  %s1595_s16 = scalar_lea.vmem %s2382_s3, 256 }
 0x87d   : > { %p1596_p10 = scmp.ne.s32.totalorder %s2382_s3, %s1595_s16  ;;  %p2600_p1 = scmp.ne.s32.totalorder %s2560_s15, 0 }
 0x87e   : > { %s1789_s1 = smov [#allocation15]  }
 0x87f   : > { %p1597_p6 = pnand %p1596_p10, %p2600_p1  ;;  %s1599_s8 = sshll.u32 %s1789_s1, 4  ;;  %s1600_s8 = int_to_ptr.vmem [resolvable:$false] %s1599_s8 }
 0x880   : > { %s1601_s6 = scalar_lea.vmem %s1600_s8, 512  ;;  %p1602_p8 = scmp.lt.s32.totalorder %s2382_s3, %s1600_s8 }
 0x881   : > { %p1598_p13 = pneg %p1597_p6  ;;  %p1603_p9 = scmp.lt.s32.totalorder %s1601_s6, %s1595_s16 }
 0x883   : > { %p1604_p4 = por %p1603_p9, %p1602_p8 }
 0x885   : > { %p1605_p0 = pnand %p1604_p4, %p1598_p13 }
 0x887   : > { %1608 = shalt.err (!%p1605_p0)
}
 0x888   : > { %s1609_s11 = scalar_lea.hbm %s2376_s9, 256  ;;  %s1613_s0 = scalar_lea.hbm %s2596_s4, 512 }
 0x889   : > { %p1610_p7 = scmp.ne.s32.totalorder %s2376_s9, %s1609_s11  ;;  %p1614_p12 = scmp.lt.s32.totalorder %s2376_s9, %s2596_s4 }
 0x88a   : > { %p1615_p11 = scmp.lt.s32.totalorder %s1613_s0, %s1609_s11 }
 0x88b   : > { %p1611_p3 = pnand %p1610_p7, %p2600_p1 }
 0x88c   : > { %p1616_p5 = por %p1615_p11, %p1614_p12 }
 0x88d   : > { %p1612_p2 = pneg %p1611_p3 }
 0x88f   : > { %p1617_p10 = pnand %p1616_p5, %p1612_p2 }
 0x891   : > { %1620 = shalt.err (!%p1617_p10)
}
 0x892   : > { %1288 = dma.vmem_to_hbm [thread:$0]  (%p2600_p1), %s2382_s3, 256, %s2376_s9, %s1004_s7  }
 0x893 PF: > { %s2601_s30 = sld [smem:[#allocation40_spill]]  ;;  %p1312_p6 = scmp.ge.s32.totalorder %s1775_s13, 2 }
 0x894   : > { %s1048_s5 = sand.u32 1, %s1711_s21  }
 0x895   : > { %s1049_s24 = scalar_lea.sflag [#allocation8], %s1048_s5 }
 0x899   : > { %p2602_p13 = scmp.ne.s32.totalorder %s2601_s30, 0 }
 0x89b   : > { %p1305_p8 = pnand %p1312_p6, %p2602_p13 }
 0x89d   : > { %p1306_p9 = pneg %p1305_p8 }
 0x89f   : > { %1702 = dma.done.wait (%p1306_p9), %s1049_s24, 256  }
 0x8a0   : > { %1704 = vsyncadd (%p1306_p9), %s1049_s24, 4294967040  ;;  %s2603_s18 = sld [smem:[#allocation25_spill]] }
 0x8a1   : > { %s2604_s23 = sld [smem:[#allocation41_spill]] }
 0x8a6   : > { %s1057_s27 = sand.u32 1, %s2603_s18  }
 0x8a7   : > { %p2605_p4 = scmp.ne.s32.totalorder %s2604_s23, 0  ;;  %s1058_s15 = scalar_lea.sflag [#allocation16], %s1057_s27 }
 0x8a9   : > { %p1308_p0 = pnand %p1312_p6, %p2605_p4 }
 0x8ab   : > { %p1309_p7 = pneg %p1308_p0 }
 0x8ad   : > { %1706 = dma.done.wait (%p1309_p7), %s1058_s15, 256  }
 0x8ae   : > { %1708 = vsyncadd (%p1309_p7), %s1058_s15, 4294967040  ;;  %s32_s13 = sadd.s32 1, %s1775_s13   ;;  %s2607_s3 = sld [smem:[#allocation22_spill]] }
 0x8af   : > { %p2431_p1 = scmp.ge.s32.totalorder %s32_s13, 18   ;;  %s2608_s23 = sld [smem:[#allocation39_spill]] }
 0x8b0   : > { %s2609_s24 = sld [smem:[#allocation24_spill]]  ;;  %s2618_s21 = smov %s1715_s22 }
 0x8b1   : > { %s2610_s14 = sld [smem:[#allocation38_spill]]  ;;  %s2621_s25 = smov %s1731_s26 }
 0x8b2   : > { %s2611_s30 = sld [smem:[#allocation26_spill]]  ;;  %s2622_s26 = smov %s2095_s10 }
 0x8b3   : > { %s2612_s7 = sld [smem:[#allocation27_spill]]  ;;  %s2623_s27 = smov %s1739_s28 }
 0x8b4   : > { %s2613_s8 = sld [smem:[#allocation37_spill]]  ;;  %s2619_s22 = smov %s2607_s3 }
 0x8b5   : > { %s2614_s16 = sld [smem:[#allocation30_spill]]  ;;  %s2624_s28 = smov %s1743_s29 }
 0x8b6   : > { %s2615_s1 = sld [smem:[#allocation31_spill]] }
 0x8b7   : > { %s2616_s11 = sld [smem:[#allocation33_spill]]  ;;  %s2625_s29 = smov %s2610_s14 }
 0x8b8   : > { %s2617_s12 = sld [smem:[#allocation35_spill]]  ;;  %31 = sbr.rel (!%p2431_p1) target bundleno = 26 (0x1a), region = 165 }
 0x8bb   : > { %s2626_s9 = smov %s2614_s16 }
 0x8bc   : > { %s2627_s10 = smov %s2615_s1 }
 0x8bd   :  { %1063 = vsyncpa [#allocation7], 1 }
 0x8be   :  { %1065 = vsyncpa [#allocation7 + $0x1], 1 }
 0x8bf   :  { %1066 = vsyncpa [#allocation10], 1 }
 0x8c0   :  { %1068 = vsyncpa [#allocation10 + $0x1], 1 }
 0x8c1   :  { %1069 = vsyncpa [#allocation13], 1 }
 0x8c2   :  { %1071 = vsyncpa [#allocation13 + $0x1], 1 }
 0x8c3   :  { %1072 = vsyncpa [#allocation8], 1 }
 0x8c4   :  { %1074 = vsyncpa [#allocation8 + $0x1], 1 }
 0x8c5   :  { %1075 = vsyncpa [#allocation16], 1 }
 0x8c6   :  { %1077 = vsyncpa [#allocation16 + $0x1], 1 }

</bundles_post_ra>
